<compile_context>
chip_gen: v5e
topology: v5e:2x2
jax: 0.10.0
libtpu: 0.0.40
codegen_flags: <defaults>
</compile_context>

<pallas_src>
import jax
import jax.numpy as jnp
from jax import lax
from jax.experimental import pallas as pl
from jax.experimental.pallas import tpu as pltpu


def make_kernel(Ks, L, Co, KROWS, col_off, F_PAD):
    """Kernel over one tile of TN rows. Refs:
       cid (TN, L+1) i32          combined ids (+ conv-bias row index)
       P   (KROWS, C_PAD) bf16    embedding folded into block-shifted conv W (+ bias row)
       W1  (F_PAD, H_PAD) bf16    fc1 weights at pooled-feature lane offsets (+ b1 row)
       w2  (1, H_PAD) f32         fc2 weights (row vector)
       b2  (1, 1) f32             fc2 bias
       out (TN, 1) f32"""
    nK = len(Ks)

    def kernel(cid_ref, p_ref, w1_ref, w2_ref, b2_ref, out_ref):
        cid = cid_ref[...]                                     # (TN, L+1) int32
        tn = cid.shape[0]
        iota = lax.broadcasted_iota(jnp.int32, (tn, KROWS), 1)

        # One fused one-hot over all L positions + the conv-bias row (disjoint
        # index ranges -> OR == sum), then a SINGLE K=KROWS MXU dot that does
        # embedding gather + every conv position + conv bias at once.
        oh = cid[:, 0:1] == iota
        for l in range(1, L + 1):                              # static unroll (L small)
            oh = jnp.logical_or(oh, cid[:, l:l + 1] == iota)
        z = jnp.dot(oh.astype(jnp.bfloat16), p_ref[...],
                    preferred_element_type=jnp.float32)        # (TN, C_PAD) f32

        # Per-kernel-size max-pool over time + ReLU (relu(max) == max(relu, 0)).
        feats = []
        for i, K in enumerate(Ks):
            T = L - K + 1
            off = col_off[i]
            p = z[:, off:off + Co]
            for t in range(1, T):
                p = jnp.maximum(p, z[:, off + t * Co: off + (t + 1) * Co])
            feats.append(jnp.maximum(p, 0.0))
        feats.append(jnp.ones((tn, 8), jnp.float32))           # constant-1 block -> b1 row
        used = nK * Co + 8
        if F_PAD > used:
            feats.append(jnp.zeros((tn, F_PAD - used), jnp.float32))
        f = jnp.concatenate(feats, axis=1).astype(jnp.bfloat16)   # (TN, F_PAD) bf16

        # fc1 as ONE dot (b1 folded via the constant-1 lane), ReLU in f32.
        h = jnp.maximum(
            jnp.dot(f, w1_ref[...], preferred_element_type=jnp.float32), 0.0)

        # fc2 on the VPU/XLU (dropout == identity in eval mode): broadcast-mul
        # against the w2 row + cross-lane sum; only one output column is useful.
        y = jnp.sum(h * w2_ref[...], axis=-1, keepdims=True) + b2_ref[...]
        out_ref[...] = y.astype(out_ref.dtype)                 # (TN, 1)

    return kernel


def cnn_forward(ids, params, *, Ks, L, D, Co, Out, hidden=1000, block_n=512):
    assert Out == 1, "final .view(B, W) implies output_dim == 1"
    B, W, Lc = ids.shape
    assert Lc == L
    nK = len(Ks)
    N = B * W
    TN = block_n
    N_pad = pl.cdiv(N, TN) * TN
    G = N_pad // TN

    table = params["embedding"].astype(jnp.float32)            # (Nc, D)
    Nc = table.shape[0]
    Ts = [L - K + 1 for K in Ks]
    C_total = sum(Ts) * Co
    C_PAD = max(128, ((C_total + 127) // 128) * 128)
    H_PAD = ((hidden + 127) // 128) * 128
    F_PAD = 128                                                 # pooled-feature lane width
    assert nK * Co + 8 <= F_PAD
    KROWS = ((L * Nc + 1 + 127) // 128) * 128                   # one-hot depth (+ bias row)
    BIAS_ROW = L * Nc

    # Block-shifted conv weights: column block (i, t) holds conv_w[i] at row
    # offset t*D; conv bias replicated across its time columns.
    col_off, off = [], 0
    W_big = jnp.zeros((L * D, C_PAD), jnp.float32)
    bconv = jnp.zeros((1, C_PAD), jnp.float32)
    for i, K in enumerate(Ks):
        col_off.append(off)
        for t in range(Ts[i]):
            c0 = off + t * Co
            W_big = W_big.at[t * D:(t + K) * D, c0:c0 + Co].set(
                params["conv_w"][i].astype(jnp.float32))
            bconv = bconv.at[:, c0:c0 + Co].set(
                params["conv_b"][i].astype(jnp.float32).reshape(1, Co))
        off += Ts[i] * Co

    # Fold the embedding table into the conv weights and flatten across the L
    # character positions; the last used row carries the conv bias.
    # NOTE: this reassociates the K*D reduction vs. the PyTorch order (f32-level
    # differences only).
    P_rows = jnp.concatenate(
        [table @ W_big[l * D:(l + 1) * D, :] for l in range(L)], axis=0)  # (L*Nc, C_PAD)
    P_flat = jnp.zeros((KROWS, C_PAD), jnp.float32)
    P_flat = P_flat.at[:L * Nc, :].set(P_rows)
    P_flat = P_flat.at[BIAS_ROW, :].set(bconv[0])
    P_flat = P_flat.astype(jnp.bfloat16)

    # fc1 weights at the pooled-feature lane offsets; b1 folded into row nK*Co
    # (the constant-1 lane block); all other rows zero (multiplied by the
    # stale/zero feature lanes).
    w1p = jnp.pad(params["w1"].astype(jnp.float32), ((0, 0), (0, H_PAD - hidden)))
    b1p = jnp.pad(params["b1"].astype(jnp.float32), ((0, 0), (0, H_PAD - hidden)))
    W1_big = jnp.zeros((F_PAD, H_PAD), jnp.float32)
    W1_big = W1_big.at[:nK * Co, :].set(w1p)
    W1_big = W1_big.at[nK * Co, :].set(b1p[0])
    W1_big = W1_big.astype(jnp.bfloat16)

    # fc2 stays f32 (computed on the VPU).
    w2_row = jnp.pad(params["w2"].astype(jnp.float32)[:, 0].reshape(1, hidden),
                     ((0, 0), (0, H_PAD - hidden)))             # (1, H_PAD)
    b2 = params["b2"].astype(jnp.float32).reshape(1, 1)          # (1, 1)

    # Combined ids: cid[n, l] = l*Nc + ids[n, l]; extra column selects the
    # conv-bias row. Pad rows (beyond N) use all-zero indices (finite output,
    # sliced off below).
    flat_ids = ids.reshape(N, L).astype(jnp.int32)
    cid = flat_ids + (jnp.arange(L, dtype=jnp.int32) * Nc)[None, :]
    cid = jnp.concatenate([cid, jnp.full((N, 1), BIAS_ROW, jnp.int32)], axis=1)
    cid_pad = jnp.pad(cid, ((0, N_pad - N), (0, 0)))             # (N_pad, L+1)

    flops = N_pad * (2 * KROWS * C_PAD + 2 * F_PAD * H_PAD + 2 * H_PAD)
    weight_bytes = 2 * int(P_flat.size + W1_big.size) + 4 * int(w2_row.size + b2.size)
    bytes_accessed = int(cid_pad.size) * 4 + N_pad * 4 + weight_bytes

    in_specs = [
        pl.BlockSpec((TN, L + 1), lambda i: (i, 0)),             # ids: streamed over N
        pl.BlockSpec((KROWS, C_PAD), lambda i: (0, 0)),          # fused gather+conv W (resident)
        pl.BlockSpec((F_PAD, H_PAD), lambda i: (0, 0)),          # fc1 W (+ b1 row)
        pl.BlockSpec((1, H_PAD), lambda i: (0, 0)),              # fc2 w row
        pl.BlockSpec((1, 1), lambda i: (0, 0)),                  # fc2 b
    ]

    out = pl.pallas_call(
        make_kernel(tuple(Ks), L, Co, KROWS, tuple(col_off), F_PAD),
        out_shape=jax.ShapeDtypeStruct((N_pad, 1), jnp.float32),
        grid=(G,),
        in_specs=in_specs,
        out_specs=pl.BlockSpec((TN, 1), lambda i: (i, 0)),
        compiler_params=pltpu.CompilerParams(dimension_semantics=("parallel",)),
        cost_estimate=pl.CostEstimate(flops=flops, transcendentals=0,
                                      bytes_accessed=bytes_accessed),
    )(cid_pad, P_flat, W1_big, w2_row, b2)

    return out[:N, 0].reshape(B, W)                              # x.view(B, W)


def init_params(key, Nc, D, Co, Ks, Out, hidden=1000):
    keys = jax.random.split(key, 6 + len(Ks))
    emb = jax.random.normal(keys[0], (Nc, D), jnp.float32)
    emb = emb.at[0].set(0.0)                                     # padding_idx=0
    conv_w, conv_b = [], []
    for i, K in enumerate(Ks):
        fan = float(K * D)
        conv_w.append(jax.random.normal(keys[1 + i], (K * D, Co), jnp.float32)
                      / jnp.sqrt(fan))
        conv_b.append(jnp.zeros((1, Co), jnp.float32))
    fin = float(len(Ks) * Co)
    w1 = jax.random.normal(keys[len(Ks) + 1], (len(Ks) * Co, hidden), jnp.float32) / jnp.sqrt(fin)
    b1 = jax.random.normal(keys[len(Ks) + 2], (1, hidden), jnp.float32) * 0.01
    w2 = jax.random.normal(keys[len(Ks) + 3], (hidden, Out), jnp.float32) / jnp.sqrt(float(hidden))
    b2 = jax.random.normal(keys[len(Ks) + 4], (1, Out), jnp.float32) * 0.01
    return dict(embedding=emb, conv_w=conv_w, conv_b=conv_b, w1=w1, b1=b1, w2=w2, b2=b2)


def reference(ids, params, Ks, L, D, Co):
    """Pure-JAX f32 reference replicating the PyTorch forward (eval mode)."""
    B, W, _ = ids.shape
    N = B * W
    emb = params["embedding"][ids.reshape(N, L)]                 # (N, L, D)
    pooled = []
    for i, K in enumerate(Ks):
        Wk = params["conv_w"][i].reshape(K, D, Co)
        T = L - K + 1
        outs = []
        for t in range(T):
            win = emb[:, t:t + K, :]
            outs.append(jnp.einsum("nkd,kdc->nc", win, Wk) + params["conv_b"][i])
        c = jnp.maximum(jnp.stack(outs, axis=1), 0.0)            # relu(conv)
        pooled.append(c.max(axis=1))                             # max_pool1d over time
    feat = jnp.concatenate(pooled, axis=1)
    h = jnp.maximum(feat @ params["w1"] + params["b1"], 0.0)
    y = h @ params["w2"] + params["b2"]
    return y.reshape(B, W)


if __name__ == "__main__":
    B, W, L = 2, 96, 8         # batch, words per sample, chars per word
    Nc, D, Co = 20, 16, 8      # n_chars, embed_dim, channel_out (channel_in = 1)
    Ks = (3, 4, 5)             # kernel_sizes
    Out = 1                    # output_dim (must be 1 for the final .view(B, W))
    hidden = 1000

    key = jax.random.PRNGKey(0)
    kid, kp = jax.random.split(key)
    ids = jax.random.randint(kid, (B, W, L), 0, Nc, dtype=jnp.int32)
    params = init_params(kp, Nc, D, Co, Ks, Out, hidden)

    # N=192 with TN=128 -> N_pad=256, G=2 grid steps (row padding exercised,
    # both v7x TensorCores get work). Use block_n=512 in production.
    y = cnn_forward(ids, params, Ks=Ks, L=L, D=D, Co=Co, Out=Out, hidden=hidden,
                    block_n=128)
    y = jax.block_until_ready(y)

    y_ref = reference(ids, params, Ks, L, D, Co)
    assert y.shape == (B, W), y.shape
    # Tolerance reflects bf16 MXU operands (f32 accumulation) + the embedding
    # fold reassociation; expected error ~1e-2 on O(1) outputs.
    assert jnp.allclose(y, y_ref, atol=3e-2, rtol=3e-2), (y, y_ref)
    print("KERNEL_OK")
</pallas_src>

<mosaic_0001>
module attributes {stable_mosaic.version = 11 : i64} {
  func.func @kernel(%arg0: i32, %arg1: memref<128x9xi32, #tpu.memory_space<vmem>>, %arg2: memref<256x128xbf16, #tpu.memory_space<vmem>>, %arg3: memref<128x1024xbf16, #tpu.memory_space<vmem>>, %arg4: memref<1x1024xf32, #tpu.memory_space<vmem>>, %arg5: memref<1x1xf32, #tpu.memory_space<vmem>>, %arg6: memref<128x1xf32, #tpu.memory_space<vmem>>) attributes {dimension_semantics = [#tpu.dimension_semantics<parallel>], iteration_bounds = array<i64: 2>, scalar_prefetch = 0 : i64, scratch_operands = 0 : i64, tpu.core_type = #tpu.core_type<tc>, window_params = [{transform_indices = @transform_0, window_bounds = array<i64: 128, 9>}, {pipeline_mode = #tpu.pipeline_mode<synchronous>, transform_indices = @transform_1, window_bounds = array<i64: 256, 128>}, {pipeline_mode = #tpu.pipeline_mode<synchronous>, transform_indices = @transform_2, window_bounds = array<i64: 128, 1024>}, {pipeline_mode = #tpu.pipeline_mode<synchronous>, transform_indices = @transform_3, window_bounds = array<i64: 1, 1024>}, {pipeline_mode = #tpu.pipeline_mode<synchronous>, transform_indices = @transform_4, window_bounds = array<i64: 1, 1>}, {transform_indices = @transform_5, window_bounds = array<i64: 128, 1>}]} {
    %c0 = arith.constant 0 : index
    %c0_0 = arith.constant 0 : index
    %0 = vector.load %arg1[%c0, %c0_0] : memref<128x9xi32, #tpu.memory_space<vmem>>, vector<128x9xi32>
    %1 = tpu.iota {dimensions = array<i32: 1>} : vector<128x256xi32>
    %2 = vector.extract_strided_slice %0 {offsets = [0, 0], sizes = [128, 1], strides = [1, 1]} : vector<128x9xi32> to vector<128x1xi32>
    %3 = vector.broadcast %2 : vector<128x1xi32> to vector<128x256xi32>
    %4 = arith.cmpi eq, %3, %1 : vector<128x256xi32>
    %5 = vector.extract_strided_slice %0 {offsets = [0, 1], sizes = [128, 1], strides = [1, 1]} : vector<128x9xi32> to vector<128x1xi32>
    %6 = vector.broadcast %5 : vector<128x1xi32> to vector<128x256xi32>
    %7 = arith.cmpi eq, %6, %1 : vector<128x256xi32>
    %8 = arith.ori %4, %7 : vector<128x256xi1>
    %9 = vector.extract_strided_slice %0 {offsets = [0, 2], sizes = [128, 1], strides = [1, 1]} : vector<128x9xi32> to vector<128x1xi32>
    %10 = vector.broadcast %9 : vector<128x1xi32> to vector<128x256xi32>
    %11 = arith.cmpi eq, %10, %1 : vector<128x256xi32>
    %12 = arith.ori %8, %11 : vector<128x256xi1>
    %13 = vector.extract_strided_slice %0 {offsets = [0, 3], sizes = [128, 1], strides = [1, 1]} : vector<128x9xi32> to vector<128x1xi32>
    %14 = vector.broadcast %13 : vector<128x1xi32> to vector<128x256xi32>
    %15 = arith.cmpi eq, %14, %1 : vector<128x256xi32>
    %16 = arith.ori %12, %15 : vector<128x256xi1>
    %17 = vector.extract_strided_slice %0 {offsets = [0, 4], sizes = [128, 1], strides = [1, 1]} : vector<128x9xi32> to vector<128x1xi32>
    %18 = vector.broadcast %17 : vector<128x1xi32> to vector<128x256xi32>
    %19 = arith.cmpi eq, %18, %1 : vector<128x256xi32>
    %20 = arith.ori %16, %19 : vector<128x256xi1>
    %21 = vector.extract_strided_slice %0 {offsets = [0, 5], sizes = [128, 1], strides = [1, 1]} : vector<128x9xi32> to vector<128x1xi32>
    %22 = vector.broadcast %21 : vector<128x1xi32> to vector<128x256xi32>
    %23 = arith.cmpi eq, %22, %1 : vector<128x256xi32>
    %24 = arith.ori %20, %23 : vector<128x256xi1>
    %25 = vector.extract_strided_slice %0 {offsets = [0, 6], sizes = [128, 1], strides = [1, 1]} : vector<128x9xi32> to vector<128x1xi32>
    %26 = vector.broadcast %25 : vector<128x1xi32> to vector<128x256xi32>
    %27 = arith.cmpi eq, %26, %1 : vector<128x256xi32>
    %28 = arith.ori %24, %27 : vector<128x256xi1>
    %29 = vector.extract_strided_slice %0 {offsets = [0, 7], sizes = [128, 1], strides = [1, 1]} : vector<128x9xi32> to vector<128x1xi32>
    %30 = vector.broadcast %29 : vector<128x1xi32> to vector<128x256xi32>
    %31 = arith.cmpi eq, %30, %1 : vector<128x256xi32>
    %32 = arith.ori %28, %31 : vector<128x256xi1>
    %33 = vector.extract_strided_slice %0 {offsets = [0, 8], sizes = [128, 1], strides = [1, 1]} : vector<128x9xi32> to vector<128x1xi32>
    %34 = vector.broadcast %33 : vector<128x1xi32> to vector<128x256xi32>
    %35 = arith.cmpi eq, %34, %1 : vector<128x256xi32>
    %36 = arith.ori %32, %35 : vector<128x256xi1>
    %37 = arith.extui %36 : vector<128x256xi1> to vector<128x256xi32>
    %38 = arith.sitofp %37 : vector<128x256xi32> to vector<128x256xf32>
    %39 = arith.truncf %38 : vector<128x256xf32> to vector<128x256xbf16>
    %c0_1 = arith.constant 0 : index
    %c0_2 = arith.constant 0 : index
    %40 = vector.load %arg2[%c0_1, %c0_2] : memref<256x128xbf16, #tpu.memory_space<vmem>>, vector<256x128xbf16>
    %cst = arith.constant dense<0.000000e+00> : vector<128x128xf32>
    %41 = tpu.matmul %39, %40, %cst {dimension_numbers = #tpu.dot_dimension_numbers<[1], [0], [0], [1], [0, 0, 1, 1], [], []>} : vector<128x256xbf16>, vector<256x128xbf16>, vector<128x128xf32> -> vector<128x128xf32>
    %42 = vector.extract_strided_slice %41 {offsets = [0, 0], sizes = [128, 8], strides = [1, 1]} : vector<128x128xf32> to vector<128x8xf32>
    %43 = vector.extract_strided_slice %41 {offsets = [0, 8], sizes = [128, 8], strides = [1, 1]} : vector<128x128xf32> to vector<128x8xf32>
    %44 = arith.maximumf %42, %43 : vector<128x8xf32>
    %45 = vector.extract_strided_slice %41 {offsets = [0, 16], sizes = [128, 8], strides = [1, 1]} : vector<128x128xf32> to vector<128x8xf32>
    %46 = arith.maximumf %44, %45 : vector<128x8xf32>
    %47 = vector.extract_strided_slice %41 {offsets = [0, 24], sizes = [128, 8], strides = [1, 1]} : vector<128x128xf32> to vector<128x8xf32>
    %48 = arith.maximumf %46, %47 : vector<128x8xf32>
    %49 = vector.extract_strided_slice %41 {offsets = [0, 32], sizes = [128, 8], strides = [1, 1]} : vector<128x128xf32> to vector<128x8xf32>
    %50 = arith.maximumf %48, %49 : vector<128x8xf32>
    %51 = vector.extract_strided_slice %41 {offsets = [0, 40], sizes = [128, 8], strides = [1, 1]} : vector<128x128xf32> to vector<128x8xf32>
    %52 = arith.maximumf %50, %51 : vector<128x8xf32>
    %cst_3 = arith.constant 0.000000e+00 : f32
    %53 = vector.broadcast %cst_3 : f32 to vector<128x8xf32>
    %54 = arith.maximumf %52, %53 : vector<128x8xf32>
    %55 = vector.extract_strided_slice %41 {offsets = [0, 48], sizes = [128, 8], strides = [1, 1]} : vector<128x128xf32> to vector<128x8xf32>
    %56 = vector.extract_strided_slice %41 {offsets = [0, 56], sizes = [128, 8], strides = [1, 1]} : vector<128x128xf32> to vector<128x8xf32>
    %57 = arith.maximumf %55, %56 : vector<128x8xf32>
    %58 = vector.extract_strided_slice %41 {offsets = [0, 64], sizes = [128, 8], strides = [1, 1]} : vector<128x128xf32> to vector<128x8xf32>
    %59 = arith.maximumf %57, %58 : vector<128x8xf32>
    %60 = vector.extract_strided_slice %41 {offsets = [0, 72], sizes = [128, 8], strides = [1, 1]} : vector<128x128xf32> to vector<128x8xf32>
    %61 = arith.maximumf %59, %60 : vector<128x8xf32>
    %62 = vector.extract_strided_slice %41 {offsets = [0, 80], sizes = [128, 8], strides = [1, 1]} : vector<128x128xf32> to vector<128x8xf32>
    %63 = arith.maximumf %61, %62 : vector<128x8xf32>
    %cst_4 = arith.constant 0.000000e+00 : f32
    %64 = vector.broadcast %cst_4 : f32 to vector<128x8xf32>
    %65 = arith.maximumf %63, %64 : vector<128x8xf32>
    %66 = vector.extract_strided_slice %41 {offsets = [0, 88], sizes = [128, 8], strides = [1, 1]} : vector<128x128xf32> to vector<128x8xf32>
    %67 = vector.extract_strided_slice %41 {offsets = [0, 96], sizes = [128, 8], strides = [1, 1]} : vector<128x128xf32> to vector<128x8xf32>
    %68 = arith.maximumf %66, %67 : vector<128x8xf32>
    %69 = vector.extract_strided_slice %41 {offsets = [0, 104], sizes = [128, 8], strides = [1, 1]} : vector<128x128xf32> to vector<128x8xf32>
    %70 = arith.maximumf %68, %69 : vector<128x8xf32>
    %71 = vector.extract_strided_slice %41 {offsets = [0, 112], sizes = [128, 8], strides = [1, 1]} : vector<128x128xf32> to vector<128x8xf32>
    %72 = arith.maximumf %70, %71 : vector<128x8xf32>
    %cst_5 = arith.constant 0.000000e+00 : f32
    %73 = vector.broadcast %cst_5 : f32 to vector<128x8xf32>
    %74 = arith.maximumf %72, %73 : vector<128x8xf32>
    %cst_6 = arith.constant 1.000000e+00 : f32
    %75 = vector.broadcast %cst_6 : f32 to vector<128x8xf32>
    %cst_7 = arith.constant 0.000000e+00 : f32
    %76 = vector.broadcast %cst_7 : f32 to vector<128x96xf32>
    %77 = tpu.concatenate %54, %65, %74, %75, %76 in 1 : vector<128x8xf32>, vector<128x8xf32>, vector<128x8xf32>, vector<128x8xf32>, vector<128x96xf32> -> vector<128x128xf32>
    %78 = arith.truncf %77 : vector<128x128xf32> to vector<128x128xbf16>
    %c0_8 = arith.constant 0 : index
    %c0_9 = arith.constant 0 : index
    %79 = vector.load %arg3[%c0_8, %c0_9] : memref<128x1024xbf16, #tpu.memory_space<vmem>>, vector<128x1024xbf16>
    %cst_10 = arith.constant dense<0.000000e+00> : vector<128x1024xf32>
    %80 = tpu.matmul %78, %79, %cst_10 {dimension_numbers = #tpu.dot_dimension_numbers<[1], [0], [0], [1], [0, 0, 1, 1], [], []>} : vector<128x128xbf16>, vector<128x1024xbf16>, vector<128x1024xf32> -> vector<128x1024xf32>
    %cst_11 = arith.constant 0.000000e+00 : f32
    %81 = vector.broadcast %cst_11 : f32 to vector<128x1024xf32>
    %82 = arith.maximumf %80, %81 : vector<128x1024xf32>
    %c0_12 = arith.constant 0 : index
    %c0_13 = arith.constant 0 : index
    %83 = vector.load %arg4[%c0_12, %c0_13] : memref<1x1024xf32, #tpu.memory_space<vmem>>, vector<1x1024xf32>
    %84 = vector.broadcast %83 : vector<1x1024xf32> to vector<128x1024xf32>
    %85 = arith.mulf %82, %84 : vector<128x1024xf32>
    %cst_14 = arith.constant dense<0.000000e+00> : vector<128xf32>
    %86 = vector.multi_reduction <add>, %85, %cst_14 [1] : vector<128x1024xf32> to vector<128xf32>
    %87 = vector.shape_cast %86 : vector<128xf32> to vector<128x1xf32>
    %c0_15 = arith.constant 0 : index
    %c0_16 = arith.constant 0 : index
    %88 = vector.load %arg5[%c0_15, %c0_16] : memref<1x1xf32, #tpu.memory_space<vmem>>, vector<1x1xf32>
    %89 = vector.broadcast %88 : vector<1x1xf32> to vector<128x1xf32>
    %90 = arith.addf %87, %89 : vector<128x1xf32>
    %c0_17 = arith.constant 0 : index
    %c0_18 = arith.constant 0 : index
    %91 = vector.load %arg6[%c0_17, %c0_18] : memref<128x1xf32, #tpu.memory_space<vmem>>, vector<128x1xf32>
    tpu.vector_store %arg6[%c0_17, %c0_18], %90 {strides = array<i32>} : memref<128x1xf32, #tpu.memory_space<vmem>>, vector<128x1xf32>,
    return
  }
  func.func @transform_0(%arg0: i32) -> (i32, i32) {
    %c0_i32 = arith.constant 0 : i32
    %c0_i32_0 = arith.constant 0 : i32
    return %arg0, %c0_i32 : i32, i32
  }
  func.func @transform_1(%arg0: i32) -> (i32, i32) {
    %c0_i32 = arith.constant 0 : i32
    %c0_i32_0 = arith.constant 0 : i32
    %c0_i32_1 = arith.constant 0 : i32
    return %c0_i32, %c0_i32_0 : i32, i32
  }
  func.func @transform_2(%arg0: i32) -> (i32, i32) {
    %c0_i32 = arith.constant 0 : i32
    %c0_i32_0 = arith.constant 0 : i32
    %c0_i32_1 = arith.constant 0 : i32
    return %c0_i32, %c0_i32_0 : i32, i32
  }
  func.func @transform_3(%arg0: i32) -> (i32, i32) {
    %c0_i32 = arith.constant 0 : i32
    %c0_i32_0 = arith.constant 0 : i32
    %c0_i32_1 = arith.constant 0 : i32
    return %c0_i32, %c0_i32_0 : i32, i32
  }
  func.func @transform_4(%arg0: i32) -> (i32, i32) {
    %c0_i32 = arith.constant 0 : i32
    %c0_i32_0 = arith.constant 0 : i32
    %c0_i32_1 = arith.constant 0 : i32
    return %c0_i32, %c0_i32_0 : i32, i32
  }
  func.func @transform_5(%arg0: i32) -> (i32, i32) {
    %c0_i32 = arith.constant 0 : i32
    %c0_i32_0 = arith.constant 0 : i32
    return %arg0, %c0_i32 : i32, i32
  }
}

</mosaic_0001>

<bundles_post_ra>
// kernel: tpu_custom_call.1
= control target key start
LH: loop header
LB: loop body
LE: loop exit
PB: predicated region body
PF: predicated region fallthrough
CT: control target
= control target key end

     0   :  { %s7265_s0 = inlined_call_operand.vmem [shape: s32[256,9], index: 0, kind: input, shape index: {}]   ;;  %s7266_s1 = inlined_call_operand.vmem [shape: bf16[256,128], index: 1, kind: input, shape index: {}]   ;;  %s7267_s2 = inlined_call_operand.hbm [shape: bf16[128,1024], index: 2, kind: input, shape index: {}]   ;;  %s7268_s3 = inlined_call_operand.vmem [shape: f32[1,1024], index: 3, kind: input, shape index: {}]   ;;  %s7269_s4 = inlined_call_operand.<no memory space> [shape: f32[1,1], index: 4, kind: input, shape index: {}]   ;;  %s7270_s5 = inlined_call_operand.vmem [shape: f32[256,1], index: 5, kind: output, shape index: {}]  }
   0x1   :  { %v10_v0 = vstv %s7269_s4 }
   0x2   :  { %11 = vst [vmem:[#allocation2] sm:$0x1] %v10_v0 }
   0x3   :  { %12 = vsyncpa [#allocation4], 0  ;;  %s4570_s20 = smov 0  }
   0x4 LB: > { %s173_s23 = sshll.u32 %s7267_s2, 4  ;;  %s3435_s24 = sadd.s32 4294967295, %s4516_s20   ;;  %s4516_s20 = sphi %s4570_s20, %s18_s20   ;;  %s174_s23 = int_to_ptr.hbm [resolvable:$true] %s173_s23 }
   0x5   : > { %p3437_p0 = scmp.ge.s32.totalorder %s4516_s20, 1  ;;  %p159_p1 = scmp.lt.s32.totalorder %s4516_s20, 3 }
   0x6   : > { %p4096_p2 = scmp.eq.s32.totalorder %s3435_s24, 0  ;;  %s4518_s4 = smov [#allocation3]  }
   0x7   : > { %p160_p3 = pnand %p3437_p0, %p159_p1  ;;  %s175_s25 = sshll.u32 %s4518_s4, 4  ;;  %s176_s25 = int_to_ptr.vmem [resolvable:$true] %s175_s25 }
   0x8   : > { %s4519_s26 = smov 512   ;;  %s4520_s27 = smov 32  }
   0x9   : > { %p4092_p4 = pneg %p160_p3  ;;  %206 = sbr.rel (%p160_p3) target bundleno = 1521 (0x5f1), region = 40 }
   0xb   : > { %p4093_p5 = pnand %p4096_p2, %p4092_p4 }
   0xd   : > { %4095 = dma.hbm_to_vmem [thread:$0]  (!%p4093_p5), %s174_s23, 8192, %s176_s25, [#allocation4], %s4519_s26, %s4519_s26, %s4520_s27  }
   0xe   : > { %4511 = dma.done.wait (%p4096_p2), [#allocation4], 8192  }
   0xf   : > { %4513 = vsyncadd (%p4096_p2), [#allocation4], 4294959104  ;;  %s3442_s28 = sshll.u32 %s3435_s24, 4  ;;  %v4521_v1 = vmov 0   ;;  %v4522_v18 = vmov 1   ;;  %v4523_v19 = vmov 2  }
  0x10   : > { %4127 = vset.pattern.permute.xlu2 %v4521_v1  ;;  %4126 = vset.pattern.permute.xlu1 %v4521_v1  ;;  %p236_p6 = scmp.lt.s32.totalorder %s3442_s28, 31  ;;  %v4524_v28 = vmov 3   ;;  %v4525_v44 = vmov 4   ;;  %v7276_v58 = vmov 5   ;;  %s4532_s18 = smov 120  }
  0x11   : > { %4125 = vset.pattern.permute.xlu0 %v4521_v1  ;;  %v7271_v1 = vmov 7   ;;  %s4533_s19 = smov 96   ;;  %s4534_s21 = smov 104  }
  0x12   : > { %s7675_s28 = smov (!%p236_p6, %s3442_s28), 31  ;;  %s4535_s22 = smov 88  }
  0x13   : > { %s3443_s29 = sshll.u32 %s7675_s28, 3  ;;  %s4536_s23 = smov 56  }
  0x14   : > { %s4589_s7 = scalar_lea.vmem %s7265_s0, %s3443_s29  ;;  %s7227_s6 = scalar_lea.vmem %s7270_s5, %s3443_s29 }
  0x15   : > { %v4592_v2 = vld [vmem:[%s4589_s7 + $0x20] sm:$0xff]  ;;  %v4595_v3 = vld [vmem:[%s4589_s7 + $0x10] sm:$0xff]  ;;  %v4604_v5 = vld [vmem:[%s4589_s7 + $0x28] sm:$0xff] }
  0x16   : > { %v4598_v4 = vld [vmem:[%s4589_s7] sm:$0xff]  ;;  %279 = vperm.xlu2 %4127, %v4592_v2   ;;  %273 = vperm.xlu1 %4126, %v4595_v3   ;;  %v4607_v6 = vld [vmem:[%s4589_s7 + $0x18] sm:$0xff]  ;;  %v4610_v7 = vld [vmem:[%s4589_s7 + $0x8] sm:$0xff] }
  0x17   : > { %267 = vperm.xlu0 %4125, %v4598_v4   ;;  %v4616_v8 = vld [vmem:[%s4589_s7 + $0x40] sm:$0xff]  ;;  %v4619_v9 = vld [vmem:[%s4589_s7 + $0x38] sm:$0xff]  ;;  %v4622_v10 = vld [vmem:[%s4589_s7 + $0x30] sm:$0xff] }
  0x18   : > { %v4628_v11 = vld [vmem:[%s4589_s7 + $0x58] sm:$0xff]  ;;  %v4631_v12 = vld [vmem:[%s4589_s7 + $0x50] sm:$0xff]  ;;  %v4634_v13 = vld [vmem:[%s4589_s7 + $0x48] sm:$0xff] }
  0x19   : > { %v4640_v14 = vld [vmem:[%s4589_s7 + $0x70] sm:$0xff]  ;;  %v4643_v15 = vld [vmem:[%s4589_s7 + $0x68] sm:$0xff]  ;;  %v4646_v16 = vld [vmem:[%s4589_s7 + $0x60] sm:$0xff] }
  0x1a   : > { %v4652_v17 = vld [vmem:[%s4589_s7 + $0x78] sm:$0xff] }
  0x1e   : > { %282 = vperm.xlu2 %4127, %v4604_v5   ;;  %276 = vperm.xlu1 %4126, %v4607_v6  }
  0x1f   : > { %270 = vperm.xlu0 %4125, %v4610_v7  }
  0x26   : > { %291 = vperm.xlu2 %4127, %v4616_v8   ;;  %288 = vperm.xlu1 %4126, %v4619_v9  }
  0x27   : > { %285 = vperm.xlu0 %4125, %v4622_v10  }
  0x2e   : > { %300 = vperm.xlu2 %4127, %v4628_v11   ;;  %297 = vperm.xlu1 %4126, %v4631_v12  }
  0x2f   : > { %294 = vperm.xlu0 %4125, %v4634_v13  }
  0x36   : > { %309 = vperm.xlu2 %4127, %v4640_v14   ;;  %306 = vperm.xlu1 %4126, %v4643_v15  }
  0x37   : > { %303 = vperm.xlu0 %4125, %v4646_v16  }
  0x3e   : > { %4129 = vset.pattern.permute.xlu2 %v4522_v18  ;;  %4128 = vset.pattern.permute.xlu1 %v4522_v18 }
  0x3f   : > { %312 = vperm.xlu0 %4125, %v4652_v17   ;;  %350 = vperm.xlu2 %4129, %v4610_v7  }
  0x40   : > { %347 = vperm.xlu1 %4128, %v4598_v4  }
  0x47   : > { %4130 = vset.pattern.permute.xlu0 %v4522_v18  ;;  %359 = vperm.xlu2 %4129, %v4592_v2  }
  0x48   : > { %356 = vperm.xlu1 %4128, %v4607_v6   ;;  %353 = vperm.xlu0 %4130, %v4595_v3  }
  0x4f   : > { %365 = vperm.xlu2 %4129, %v4622_v10  }
  0x50   : > { %362 = vperm.xlu1 %4128, %v4604_v5   ;;  %368 = vperm.xlu0 %4130, %v4619_v9  }
  0x57   : > { %374 = vperm.xlu2 %4129, %v4634_v13  }
  0x58   : > { %371 = vperm.xlu1 %4128, %v4616_v8   ;;  %377 = vperm.xlu0 %4130, %v4631_v12  }
  0x5f   : > { %383 = vperm.xlu2 %4129, %v4646_v16  }
  0x60   : > { %380 = vperm.xlu1 %4128, %v4628_v11   ;;  %386 = vperm.xlu0 %4130, %v4643_v15  }
  0x67   : > { %392 = vperm.xlu2 %4129, %v4652_v17  }
  0x68   : > { %389 = vperm.xlu1 %4128, %v4640_v14   ;;  %4131 = vset.pattern.permute.xlu0 %v4523_v19 }
  0x69   : > { %459 = vperm.xlu0 %4131, %v4598_v4  }
  0x6f   : > { %4133 = vset.pattern.permute.xlu2 %v4523_v19 }
  0x70   : > { %4132 = vset.pattern.permute.xlu1 %v4523_v19  ;;  %465 = vperm.xlu2 %4133, %v4595_v3   ;;  %v4673_v20 = vpop.permute.xlu2 %279 }
  0x71   : > { %462 = vperm.xlu1 %4132, %v4610_v7   ;;  %474 = vperm.xlu0 %4131, %v4604_v5  }
  0x78   : > { %471 = vperm.xlu2 %4133, %v4592_v2   ;;  %v4678_v21 = vpop.permute.xlu2 %282 }
  0x79   : > { %468 = vperm.xlu1 %4132, %v4607_v6   ;;  %483 = vperm.xlu0 %4131, %v4616_v8  }
  0x80   : > { %480 = vperm.xlu2 %4133, %v4619_v9   ;;  %v4683_v22 = vpop.permute.xlu2 %291 }
  0x81   : > { %7308 = vst [vmem:[#allocation6_spill] sm:$0xff] %v4683_v22  ;;  %477 = vperm.xlu1 %4132, %v4622_v10   ;;  %492 = vperm.xlu0 %4131, %v4628_v11   ;;  %v7331_v22 = vmov 7  }
  0x88   : > { %v4687_v23 = vpop.permute.xlu1 %273  ;;  %489 = vperm.xlu2 %4133, %v4631_v12   ;;  %v4690_v24 = vpop.permute.xlu2 %300 }
  0x89   : > { %7309 = vst [vmem:[#allocation7_spill] sm:$0xff] %v4690_v24  ;;  %486 = vperm.xlu1 %4132, %v4634_v13   ;;  %501 = vperm.xlu0 %4131, %v4640_v14   ;;  %v4694_v25 = vpop.permute.xlu0 %267 }
  0x90   : > { %v4696_v26 = vpop.permute.xlu1 %276  ;;  %498 = vperm.xlu2 %4133, %v4643_v15   ;;  %v4699_v27 = vpop.permute.xlu2 %309 }
  0x91   : > { %495 = vperm.xlu1 %4132, %v4646_v16   ;;  %4135 = vset.pattern.permute.xlu0 %v4524_v28  ;;  %v4702_v29 = vpop.permute.xlu0 %270 }
  0x92   : > { %574 = vperm.xlu0 %4135, %v4610_v7  }
  0x98   : > { %v4705_v30 = vpop.permute.xlu1 %288  ;;  %4134 = vset.pattern.permute.xlu2 %v4524_v28 }
  0x99   : > { %504 = vperm.xlu1 %4132, %v4652_v17   ;;  %v4708_v31 = vpop.permute.xlu2 %350  ;;  %571 = vperm.xlu2 %4134, %v4598_v4   ;;  %v4711_v32 = vpop.permute.xlu0 %285 }
  0x9a   : > { %589 = vperm.xlu0 %4135, %v4622_v10  }
  0xa0   : > { %v4714_v33 = vpop.permute.xlu1 %297 }
  0xa1   : > { %4136 = vset.pattern.permute.xlu1 %v4524_v28  ;;  %v4716_v34 = vpop.permute.xlu2 %359  ;;  %580 = vperm.xlu2 %4134, %v4607_v6   ;;  %v4719_v35 = vpop.permute.xlu0 %294 }
  0xa2   : > { %577 = vperm.xlu1 %4136, %v4595_v3   ;;  %598 = vperm.xlu0 %4135, %v4634_v13  }
  0xa8   : > { %v4723_v36 = vpop.permute.xlu1 %306 }
  0xa9   : > { %7310 = vst [vmem:[#allocation8_spill] sm:$0xff] %v4723_v36  ;;  %v4725_v37 = vpop.permute.xlu2 %365  ;;  %586 = vperm.xlu2 %4134, %v4604_v5   ;;  %v4728_v38 = vpop.permute.xlu0 %303 }
  0xaa   : > { %7311 = vst [vmem:[#allocation9_spill] sm:$0xff] %v4728_v38  ;;  %583 = vperm.xlu1 %4136, %v4592_v2   ;;  %607 = vperm.xlu0 %4135, %v4646_v16  }
  0xb1   : > { %v4732_v39 = vpop.permute.xlu2 %374  ;;  %595 = vperm.xlu2 %4134, %v4616_v8   ;;  %v4735_v40 = vpop.permute.xlu0 %312 }
  0xb2   : > { %7312 = vst [vmem:[#allocation10_spill] sm:$0xff] %v4735_v40  ;;  %592 = vperm.xlu1 %4136, %v4619_v9   ;;  %v4738_v41 = vpop.permute.xlu1 %347  ;;  %616 = vperm.xlu0 %4135, %v4652_v17  }
  0xb9   : > { %v4741_v42 = vpop.permute.xlu2 %383  ;;  %604 = vperm.xlu2 %4134, %v4628_v11  }
  0xba   : > { %7313 = vst [vmem:[#allocation11_spill] sm:$0xff] %v4741_v42  ;;  %601 = vperm.xlu1 %4136, %v4631_v12   ;;  %v4745_v43 = vpop.permute.xlu1 %356  ;;  %4139 = vset.pattern.permute.xlu0 %v4525_v44  ;;  %v4747_v45 = vpop.permute.xlu0 %353 }
  0xbb   : > { %689 = vperm.xlu0 %4139, %v4595_v3  }
  0xc1   : > { %v4750_v46 = vpop.permute.xlu2 %392  ;;  %613 = vperm.xlu2 %4134, %v4640_v14  }
  0xc2   : > { %7314 = vst [vmem:[#allocation12_spill] sm:$0xff] %v4750_v46  ;;  %610 = vperm.xlu1 %4136, %v4643_v15   ;;  %v4754_v47 = vpop.permute.xlu1 %362  ;;  %v4756_v48 = vpop.permute.xlu0 %368 }
  0xc3   : > { %704 = vperm.xlu0 %4139, %v4619_v9  }
  0xc9   : > { %4138 = vset.pattern.permute.xlu2 %v4525_v44 }
  0xca   : > { %4137 = vset.pattern.permute.xlu1 %v4525_v44  ;;  %v4759_v49 = vpop.permute.xlu1 %371  ;;  %v4761_v50 = vpop.permute.xlu0 %377  ;;  %686 = vperm.xlu2 %4138, %v4610_v7  }
  0xcb   : > { %7315 = vst [vmem:[#allocation13_spill] sm:$0xff] %v4759_v49  ;;  %v4764_v51 = vpop.permute.xlu2 %465  ;;  %683 = vperm.xlu1 %4137, %v4598_v4   ;;  %713 = vperm.xlu0 %4139, %v4631_v12  }
  0xd2   : > { %v4768_v52 = vpop.permute.xlu1 %380  ;;  %v4770_v53 = vpop.permute.xlu0 %386  ;;  %695 = vperm.xlu2 %4138, %v4592_v2  }
  0xd3   : > { %7316 = vst [vmem:[#allocation14_spill] sm:$0xff] %v4768_v52  ;;  %v4773_v54 = vpop.permute.xlu2 %471  ;;  %692 = vperm.xlu1 %4137, %v4607_v6   ;;  %722 = vperm.xlu0 %4139, %v4643_v15   ;;  %v7330_v52 = vmov 8  }
  0xd4   : > { %7317 = vst [vmem:[#allocation15_spill] sm:$0xff] %v4770_v53 }
  0xd5   : > { %7318 = vst [vmem:[#allocation16_spill] sm:$0xff] %v4773_v54  ;;  %v7335_v54 = vmov 5  }
  0xda   : > { %v4777_v55 = vpop.permute.xlu1 %389  ;;  %701 = vperm.xlu2 %4138, %v4622_v10  }
  0xdb   : > { %v4780_v56 = vpop.permute.xlu2 %480  ;;  %698 = vperm.xlu1 %4137, %v4604_v5   ;;  %v4783_v57 = vpop.permute.xlu0 %459  ;;  %4140 = vset.pattern.permute.xlu0 %v7276_v58 }
  0xdc   : > { %795 = vperm.xlu0 %4140, %v4598_v4  }
  0xe2   : > { %710 = vperm.xlu2 %4138, %v4634_v13  }
  0xe3   : > { %v4788_v59 = vpop.permute.xlu2 %489  ;;  %707 = vperm.xlu1 %4137, %v4616_v8   ;;  %v4791_v60 = vpop.permute.xlu1 %462 }
  0xe4   : > { %v4793_v61 = vpop.permute.xlu0 %474  ;;  %810 = vperm.xlu0 %4140, %v4604_v5  }
  0xe5   : > { %7319 = vst [vmem:[#allocation17_spill] sm:$0xff] %v4793_v61 }
  0xea   : > { %719 = vperm.xlu2 %4138, %v4646_v16  }
  0xeb   : > { %v4797_v62 = vpop.permute.xlu2 %498  ;;  %716 = vperm.xlu1 %4137, %v4628_v11   ;;  %v4800_v63 = vpop.permute.xlu1 %468 }
  0xec   : > { %7320 = vst [vmem:[#allocation18_spill] sm:$0xff] %v4797_v62  ;;  %v4802_v0 = vpop.permute.xlu0 %483  ;;  %4145 = vset.pattern.permute.xlu0 %v7271_v1 }
  0xed   : > { %7321 = vst [vmem:[#allocation19_spill] sm:$0xff] %v4802_v0  ;;  %1019 = vperm.xlu0 %4145, %v4598_v4  }
  0xf2   : > { %728 = vperm.xlu2 %4138, %v4652_v17  }
  0xf3   : > { %725 = vperm.xlu1 %4137, %v4640_v14   ;;  %v4808_v18 = vpop.permute.xlu1 %477  ;;  %v4810_v19 = vpop.permute.xlu2 %571 }
  0xf4   : > { %v4812_v28 = vpop.permute.xlu0 %492 }
  0xf5   : > { %7322 = vst [vmem:[#allocation20_spill] sm:$0xff] %v4812_v28  ;;  %1034 = vperm.xlu0 %4145, %v4604_v5   ;;  %v7293_v28 = vmov 6  }
  0xfa   : > { %4142 = vset.pattern.permute.xlu2 %v7276_v58 }
  0xfb   : > { %4141 = vset.pattern.permute.xlu1 %v7276_v58  ;;  %v4817_v44 = vpop.permute.xlu1 %486  ;;  %801 = vperm.xlu2 %4142, %v4595_v3   ;;  %v4820_v1 = vpop.permute.xlu2 %580  ;;  %v7283_v58 = vmov 8  }
  0xfc   : > { %7323 = vst [vmem:[#allocation21_spill] sm:$0xff] %v4820_v1  ;;  %798 = vperm.xlu1 %4141, %v4610_v7   ;;  %v4824_v46 = vpop.permute.xlu0 %501 }
  0xfd   : > { %1037 = vperm.xlu0 %4145, %v4622_v10  }
 0x103   : > { %v4826_v40 = vpop.permute.xlu1 %495  ;;  %807 = vperm.xlu2 %4142, %v4592_v2   ;;  %v4829_v62 = vpop.permute.xlu2 %586 }
 0x104   : > { %7324 = vst [vmem:[#allocation22_spill] sm:$0xff] %v4826_v40  ;;  %804 = vperm.xlu1 %4141, %v4607_v6   ;;  %v4834_v42 = vpop.permute.xlu0 %574 }
 0x105   : > { %7325 = vst [vmem:[#allocation23_spill] sm:$0xff] %v4829_v62  ;;  %4162 = vset.pattern.permute.xlu0 %v7283_v58  ;;  %v7334_v62 = vmov 6  }
 0x106   : > { %1152 = vperm.xlu0 %4162, %v4619_v9  }
 0x10b   : > { %v4836_v38 = vpop.permute.xlu1 %504  ;;  %816 = vperm.xlu2 %4142, %v4619_v9   ;;  %v4839_v36 = vpop.permute.xlu2 %595 }
 0x10c   : > { %7326 = vst [vmem:[#allocation24_spill] sm:$0xff] %v4836_v38  ;;  %813 = vperm.xlu1 %4141, %v4622_v10   ;;  %v4846_v53 = vpop.permute.xlu0 %589 }
 0x10d   : > { %7327 = vst [vmem:[#allocation25_spill] sm:$0xff] %v4839_v36 }
 0x10e   : > { %1155 = vperm.xlu0 %4162, %v4616_v8  }
 0x113   : > { %825 = vperm.xlu2 %4142, %v4631_v12   ;;  %v4844_v40 = vpop.permute.xlu2 %604 }
 0x114   : > { %7328 = vst [vmem:[#allocation26_spill] sm:$0xff] %v4844_v40  ;;  %822 = vperm.xlu1 %4141, %v4634_v13   ;;  %v4849_v58 = vpop.permute.xlu1 %577  ;;  %v4861_v40 = vpop.permute.xlu0 %598 }
 0x116   : > { %4167 = vset.pattern.permute.xlu0 %v7293_v28 }
 0x117   : > { %916 = vperm.xlu0 %4167, %v4607_v6  }
 0x11b   : > { %4144 = vset.pattern.permute.xlu2 %v7293_v28  ;;  %v4854_v38 = vpop.permute.xlu2 %613 }
 0x11c   : > { %4143 = vset.pattern.permute.xlu1 %v7293_v28  ;;  %v4857_v24 = vpop.permute.xlu1 %583  ;;  %910 = vperm.xlu2 %4144, %v4610_v7   ;;  %v4872_v28 = vpop.permute.xlu0 %607 }
 0x11d   : > { %7329 = vst [vmem:[#allocation27_spill] sm:$0xff] %v4857_v24  ;;  %907 = vperm.xlu1 %4143, %v4598_v4  }
 0x11e   : > { %7332 = vst [vmem:[#allocation28_spill] sm:$0xff] %v4872_v28 }
 0x11f   : > { %919 = vperm.xlu0 %4167, %v4592_v2  }
 0x124   : > { %v4864_v36 = vpop.permute.xlu1 %592  ;;  %4147 = vset.pattern.permute.xlu2 %v7330_v52  ;;  %v4867_v0 = vpop.permute.xlu2 %686 }
 0x125   : > { %4146 = vset.pattern.permute.xlu1 %v7331_v22  ;;  %1131 = vperm.xlu2 %4147, %v4598_v4   ;;  %v4885_v4 = vpop.permute.xlu0 %616 }
 0x126   : > { %1022 = vperm.xlu1 %4146, %v4610_v7   ;;  %7336 = vst [vmem:[#allocation30_spill] sm:$0xff] %v4885_v4 }
 0x127   : > { %940 = vperm.xlu0 %4167, %v4628_v11  }
 0x12c   : > { %v4875_v49 = vpop.permute.xlu1 %601  ;;  %v4877_v24 = vpop.permute.xlu2 %695 }
 0x12d   : > { %7333 = vst [vmem:[#allocation29_spill] sm:$0xff] %v4877_v24  ;;  %4149 = vset.pattern.permute.xlu2 %v7334_v62 }
 0x12e   : > { %4148 = vset.pattern.permute.xlu1 %v7330_v52  ;;  %913 = vperm.xlu2 %4149, %v4595_v3  }
 0x12f   : > { %1134 = vperm.xlu1 %4148, %v4610_v7   ;;  %4170 = vset.pattern.permute.xlu0 %v7335_v54  ;;  %v4896_v7 = vpop.permute.xlu0 %689 }
 0x130   : > { %819 = vperm.xlu0 %4170, %v4616_v8   ;;  %7338 = vst [vmem:[#allocation32_spill] sm:$0xff] %v4896_v7  ;;  %v263_v7 = vlaneseq }
 0x134   : > { %v4887_v28 = vpop.permute.xlu1 %610  ;;  %v4889_v61 = vpop.permute.xlu2 %701 }
 0x135   : > { %7337 = vst [vmem:[#allocation31_spill] sm:$0xff] %v4887_v28 }
 0x136   : > { %4151 = vset.pattern.permute.xlu2 %v7331_v22 }
 0x137   : > { %4150 = vset.pattern.permute.xlu1 %v7331_v22  ;;  %1028 = vperm.xlu2 %4151, %v4607_v6   ;;  %v4911_v1 = vpop.permute.xlu0 %704 }
 0x138   : > { %1025 = vperm.xlu1 %4150, %v4595_v3   ;;  %828 = vperm.xlu0 %4170, %v4628_v11  }
 0x13c   : > { %v4898_v24 = vpop.permute.xlu2 %710 }
 0x13d   : > { %v4900_v54 = vpop.permute.xlu1 %683 }
 0x13f   : > { %4153 = vset.pattern.permute.xlu2 %v7330_v52 }
 0x140   : > { %4152 = vset.pattern.permute.xlu1 %v7330_v52  ;;  %831 = vperm.xlu0 %4170, %v4646_v16   ;;  %v4923_v16 = vand.u32 127, %v263_v7 }
 0x141   : > { %1140 = vperm.xlu2 %4153, %v4607_v6   ;;  %1137 = vperm.xlu1 %4152, %v4595_v3  }
 0x142   : > { %vm408_vm0 = vcmp.eq.s32.totalorder %v4756_v48, %v4923_v16  ;;  %vm328_vm2 = vcmp.eq.s32.totalorder %v4705_v30, %v4923_v16  ;;  %vm414_vm3 = vcmp.eq.s32.totalorder %v4761_v50, %v4923_v16  ;;  %vm334_vm7 = vcmp.eq.s32.totalorder %v4714_v33, %v4923_v16 }
 0x143   : > { %vm440_vm5 = vmor %vm328_vm2, %vm408_vm0  ;;  %vm422_vm9 = vcmp.eq.s32.totalorder %v4777_v55, %v4923_v16  ;;  %vm520_vm12 = vcmp.eq.s32.totalorder %v4780_v56, %v4923_v16  ;;  %vm342_vm13 = vcmp.eq.s32.totalorder %v4699_v27, %v4923_v16 }
 0x144   : > { %v4907_v4 = vpop.permute.xlu2 %719  ;;  %vm4962_vm11 = vmor %vm334_vm7, %vm414_vm3  ;;  %vm534_vm3 = vcmp.eq.s32.totalorder %v4824_v46, %v4923_v16 }
 0x145   : > { %7339 = vst [vmem:[#allocation33_spill] sm:$0xff] %v4907_v4  ;;  %v4909_v28 = vpop.permute.xlu1 %692  ;;  %v4925_v4 = vpop.permute.xlu0 %713  ;;  %vm4984_vm2 = vmor %vm440_vm5, %vm520_vm12 }
 0x146   : > { %7340 = vst [vmem:[#allocation34_spill] sm:$0xff] %v4909_v28  ;;  %v4928_v28 = vadd.s32 128, %v4923_v16 }
 0x148   : > { %4179 = vset.pattern.permute.xlu0 %v7331_v22  ;;  %vm409_vm1 = vcmp.eq.s32.totalorder %v4756_v48, %v4928_v28  ;;  %vm329_vm4 = vcmp.eq.s32.totalorder %v4705_v30, %v4928_v28  ;;  %vm415_vm6 = vcmp.eq.s32.totalorder %v4761_v50, %v4928_v28  ;;  %vm335_vm10 = vcmp.eq.s32.totalorder %v4714_v33, %v4928_v28  ;;  %v3999_v33 = vld [vmem:[%s7266_s1 + $0x38] sm:$0xff] }
 0x149   : > { %4155 = vset.pattern.permute.xlu2 %v7331_v22  ;;  %4154 = vset.pattern.permute.xlu1 %v7334_v62  ;;  %vm4954_vm8 = vmor %vm329_vm4, %vm409_vm1  ;;  %vm521_vm15 = vcmp.eq.s32.totalorder %v4780_v56, %v4928_v28  ;;  %vm423_vm0 = vcmp.eq.s32.totalorder %v4777_v55, %v4928_v28  ;;  %vm343_vm4 = vcmp.eq.s32.totalorder %v4699_v27, %v4928_v28  ;;  %v7351_v50 = vmov 0  ;;  %v4007_v48 = vld [vmem:[%s7266_s1 + $0x78] sm:$0xff] }
 0x14a   : > { %1031 = vperm.xlu2 %4155, %v4592_v2   ;;  %922 = vperm.xlu1 %4154, %v4604_v5   ;;  %vm4970_vm14 = vmor %vm335_vm10, %vm415_vm6  ;;  %vm535_vm5 = vcmp.eq.s32.totalorder %v4824_v46, %v4928_v28  ;;  %vm647_vm12 = vcmp.eq.s32.totalorder %v4854_v38, %v4928_v28 }
 0x14b   : > { %1058 = vperm.xlu0 %4179, %v4643_v15   ;;  %vm4980_vm1 = vmor %vm342_vm13, %vm422_vm9  ;;  %vm646_vm9 = vcmp.eq.s32.totalorder %v4854_v38, %v4923_v16  ;;  %vm527_vm13 = vcmp.eq.s32.totalorder %v4788_v59, %v4928_v28  ;;  %1450 = vmatpush.bf16.msra.mxu0 %v3999_v33  ;;  %v4006_v38 = vld [vmem:[%s7266_s1 + $0x70] sm:$0xff] }
 0x14c   : > { %v4919_v3 = vpop.permute.xlu2 %728  ;;  %vm4996_vm6 = vmor %vm4954_vm8, %vm521_vm15  ;;  %vm526_vm8 = vcmp.eq.s32.totalorder %v4788_v59, %v4923_v16  ;;  %1499 = vmatpush.bf16.msra.mxu1 %v4007_v48  ;;  %4072 = vmatpush.bf16.msra.mxu2 %v3999_v33  ;;  %v7376_v59 = vmov 0  ;;  %v7448_v33 = vmov 0 }
 0x14d   : > { %v4921_v6 = vpop.permute.xlu1 %698  ;;  %v4976_v30 = vpop.permute.xlu0 %722  ;;  %v7352_v50 = vsel %vm4996_vm6, 4294967295, %v7351_v50  ;;  %vm455_vm7 = vmor %vm343_vm4, %vm423_vm0  ;;  %vm632_vm0 = vcmp.eq.s32.totalorder %v4864_v36, %v4923_v16  ;;  %vm633_vm4 = vcmp.eq.s32.totalorder %v4864_v36, %v4928_v28  ;;  %4080 = vmatpush.bf16.msra.mxu3 %v4007_v48  ;;  %v7374_v36 = vmov 0 }
 0x14e   : > { %vm566_vm10 = vmor %vm4980_vm1, %vm534_vm3  ;;  %vm744_vm3 = vcmp.eq.s32.totalorder %v4911_v1, %v4923_v16 }
 0x14f   : > { %vm567_vm15 = vmor %vm455_vm7, %vm535_vm5 }
 0x150   : > { %vm5024_vm6 = vmor %vm566_vm10, %vm646_vm9  ;;  %1500 = vmatpush.bf16.msra.mxu1 %v4006_v38 }
 0x151   : > { %vm5030_vm1 = vmor %vm4962_vm11, %vm526_vm8  ;;  %vm745_vm11 = vcmp.eq.s32.totalorder %v4911_v1, %v4928_v28  ;;  %vm7361_vm8 = vnez %v7352_v50  ;;  %v7366_v1 = vmov 0  ;;  %4081 = vmatpush.bf16.msra.mxu3 %v4006_v38 }
 0x152   : > { %4157 = vset.pattern.permute.xlu2 %v7330_v52  ;;  %4156 = vset.pattern.permute.xlu1 %v7330_v52  ;;  %vm5036_vm5 = vmor %vm567_vm15, %vm647_vm12 }
 0x153   : > { %1146 = vperm.xlu2 %4157, %v4604_v5   ;;  %1143 = vperm.xlu1 %4156, %v4592_v2   ;;  %vm5042_vm7 = vmor %vm4970_vm14, %vm527_vm13 }
 0x154   : > { %4184 = vset.pattern.permute.xlu0 %v7334_v62  ;;  %vm664_vm9 = vmor %vm4984_vm2, %vm632_vm0 }
 0x155   : > { %v4938_v15 = vpop.permute.xlu1 %707  ;;  %v4940_v7 = vpop.permute.xlu2 %801  ;;  %949 = vperm.xlu0 %4184, %v4640_v14   ;;  %vm665_vm10 = vmor %vm7361_vm8, %vm633_vm4 }
 0x156   : > { %v5052_v46 = vpop.permute.xlu0 %795  ;;  %vm5054_vm12 = vmor %vm664_vm9, %vm744_vm3  ;;  %vm638_vm3 = vcmp.eq.s32.totalorder %v4875_v49, %v4923_v16 }
 0x157   : > { %vm5060_vm14 = vmor %vm665_vm10, %vm745_vm11  ;;  %vm639_vm11 = vcmp.eq.s32.totalorder %v4875_v49, %v4928_v28  ;;  %v7372_v49 = vmov 0 }
 0x158   : > { %vm670_vm10 = vmor %vm5030_vm1, %vm638_vm3  ;;  %vm326_vm3 = vcmp.eq.s32.totalorder %v4711_v32, %v4923_v16 }
 0x15b   : > { %4159 = vset.pattern.permute.xlu2 %v7334_v62  ;;  %4158 = vset.pattern.permute.xlu1 %v7334_v62 }
 0x15c   : > { %928 = vperm.xlu2 %4159, %v4619_v9   ;;  %925 = vperm.xlu1 %4158, %v4622_v10  }
 0x15d   : > { %v5004_v55 = vpop.permute.xlu1 %716  ;;  %v5006_v56 = vpop.permute.xlu2 %807  ;;  %4189 = vset.pattern.permute.xlu0 %v7330_v52 }
 0x15e   : > { %1176 = vperm.xlu0 %4189, %v4652_v17   ;;  %v5124_v17 = vpop.permute.xlu0 %810 }
 0x164   : > { %4161 = vset.pattern.permute.xlu2 %v7330_v52  ;;  %4160 = vset.pattern.permute.xlu1 %v7331_v22 }
 0x165   : > { %v726_v2 = vpop.permute.xlu1 %725  ;;  %v817_v5 = vpop.permute.xlu2 %816  ;;  %1149 = vperm.xlu2 %4161, %v4622_v10   ;;  %1040 = vperm.xlu1 %4160, %v4619_v9   ;;  %v7368_v9 = vmov 0  ;;  %v7370_v10 = vmov 0 }
 0x166   : > { %vm758_vm2 = vcmp.eq.s32.totalorder %v726_v2, %v4923_v16  ;;  %vm759_vm13 = vcmp.eq.s32.totalorder %v726_v2, %v4928_v28  ;;  %vm856_vm15 = vcmp.eq.s32.totalorder %v817_v5, %v4923_v16  ;;  %vm857_vm4 = vcmp.eq.s32.totalorder %v817_v5, %v4928_v28  ;;  %v3997_v2 = vld [vmem:[%s7266_s1 + $0x28] sm:$0xff]  ;;  %v5166_v48 = vpop.permute.xlu0 %1019 }
 0x167   : > { %vm5071_vm0 = vmor %vm5024_vm6, %vm758_vm2  ;;  %v4005_v5 = vld [vmem:[%s7266_s1 + $0x68] sm:$0xff] }
 0x168   : > { %v7367_v1 = vsel %vm5071_vm0, 4294967295, %v7366_v1  ;;  %vm5080_vm9 = vmor %vm5036_vm5, %vm759_vm13  ;;  %vm750_vm5 = vcmp.eq.s32.totalorder %v4925_v4, %v4923_v16  ;;  %1501 = vmatpush.bf16.msra.mxu1 %v4005_v5  ;;  %4082 = vmatpush.bf16.msra.mxu3 %v4005_v5  ;;  %v7389_v5 = vmov 0 }
 0x169   : > { %v7369_v9 = vsel %vm5080_vm9, 4294967295, %v7368_v9  ;;  %vm5088_vm6 = vmor %vm5054_vm12, %vm856_vm15  ;;  %vm751_vm12 = vcmp.eq.s32.totalorder %v4925_v4, %v4928_v28  ;;  %v3998_v4 = vld [vmem:[%s7266_s1 + $0x30] sm:$0xff]  ;;  %vm631_vm9 = vcmp.eq.s32.totalorder %v4846_v53, %v4928_v28 }
 0x16a   : > { %v7371_v10 = vsel %vm5088_vm6, 4294967295, %v7370_v10  ;;  %vm5102_vm8 = vmor %vm5060_vm14, %vm857_vm4  ;;  %1451 = vmatpush.bf16.msra.mxu0 %v3998_v4  ;;  %4073 = vmatpush.bf16.msra.mxu2 %v3998_v4  ;;  %v4004_v4 = vld [vmem:[%s7266_s1 + $0x60] sm:$0xff]  ;;  %vm7405_vm6 = vcmp.eq.s32.totalorder %v4747_v45, %v4923_v16 }
 0x16b   : > { %v7373_v49 = vsel %vm5102_vm8, 4294967295, %v7372_v49  ;;  %vm671_vm2 = vmor %vm5042_vm7, %vm639_vm11  ;;  %vm406_vm11 = vcmp.eq.s32.totalorder %v4725_v37, %v4923_v16  ;;  %vm394_vm8 = vcmp.eq.s32.totalorder %v4738_v41, %v4923_v16 }
 0x16c   : > { %vm782_vm13 = vmor %vm670_vm10, %vm750_vm5  ;;  %vm327_vm5 = vcmp.eq.s32.totalorder %v4711_v32, %v4928_v28  ;;  %vm407_vm10 = vcmp.eq.s32.totalorder %v4725_v37, %v4928_v28  ;;  %1502 = vmatpush.bf16.msra.mxu1 %v4004_v4  ;;  %v3995_v32 = vld [vmem:[%s7266_s1 + $0x18] sm:$0xff]  ;;  %4083 = vmatpush.bf16.msra.mxu3 %v4004_v4  ;;  %v7393_v4 = vmov 0  ;;  %v7402_v37 = vmov 0 }
 0x16d   : > { %v826_v50 = vpop.permute.xlu2 %825  ;;  %vm783_vm15 = vmor %vm671_vm2, %vm751_vm12  ;;  %4164 = vset.pattern.permute.xlu2 %v7334_v62  ;;  %4163 = vset.pattern.permute.xlu1 %v7334_v62  ;;  %vm332_vm12 = vcmp.eq.s32.totalorder %v4719_v35, %v4923_v16  ;;  %vm412_vm2 = vcmp.eq.s32.totalorder %v4732_v39, %v4923_v16 }
 0x16e   : > { %vm862_vm14 = vcmp.eq.s32.totalorder %v826_v50, %v4923_v16  ;;  %vm863_vm1 = vcmp.eq.s32.totalorder %v826_v50, %v4928_v28  ;;  %v5116_v27 = vpop.permute.xlu1 %798  ;;  %934 = vperm.xlu2 %4164, %v4634_v13   ;;  %931 = vperm.xlu1 %4163, %v4616_v8   ;;  %v3996_v50 = vld [vmem:[%s7266_s1 + $0x20] sm:$0xff] }
 0x16f   : > { %vm5127_vm7 = vmor %vm782_vm13, %vm862_vm14  ;;  %1452 = vmatpush.bf16.msra.mxu0 %v3997_v2  ;;  %4074 = vmatpush.bf16.msra.mxu2 %v3997_v2  ;;  %vm333_vm13 = vcmp.eq.s32.totalorder %v4719_v35, %v4928_v28  ;;  %vm413_vm14 = vcmp.eq.s32.totalorder %v4732_v39, %v4928_v28  ;;  %v7476_v2 = vmov 0 }
 0x170   : > { %v7375_v36 = vsel %vm5127_vm7, 4294967295, %v7374_v36  ;;  %vm5132_vm4 = vmor %vm783_vm15, %vm863_vm1 }
 0x171   : > { %v7377_v59 = vsel %vm5132_vm4, 4294967295, %v7376_v59  ;;  %vm5158_vm15 = vmor %vm326_vm3, %vm406_vm11  ;;  %vm519_vm11 = vcmp.eq.s32.totalorder %v4808_v18, %v4928_v28  ;;  %vm743_vm4 = vcmp.eq.s32.totalorder %v4889_v61, %v4928_v28 }
 0x172   : > { %vm5182_vm3 = vmor %vm327_vm5, %vm407_vm10  ;;  %vm630_vm5 = vcmp.eq.s32.totalorder %v4846_v53, %v4923_v16  ;;  %v3994_v53 = vld [vmem:[%s7266_s1 + $0x10] sm:$0xff] }
 0x173   : > { %vm5196_vm1 = vmor %vm332_vm12, %vm412_vm2  ;;  %1453 = vmatpush.bf16.msra.mxu0 %v3996_v50  ;;  %vm7386_vm12 = vcmp.eq.s32.totalorder %v4808_v18, %v4923_v16  ;;  %4075 = vmatpush.bf16.msra.mxu2 %v3996_v50  ;;  %v5283_v50 = vpop.permute.xlu0 %1034 }
 0x174   : > { %vm5214_vm10 = vmor %vm333_vm13, %vm413_vm14  ;;  %vm742_vm13 = vcmp.eq.s32.totalorder %v4889_v61, %v4923_v16  ;;  %v4002_v61 = vld [vmem:[%s7266_s1 + $0x50] sm:$0xff] }
 0x175   : > { %vm550_vm2 = vmor %vm5158_vm15, %vm7386_vm12  ;;  %vm314_vm15 = vcmp.eq.s32.totalorder %v4694_v25, %v4923_v16  ;;  %vm315_vm12 = vcmp.eq.s32.totalorder %v4694_v25, %v4928_v28  ;;  %v4001_v25 = vld [vmem:[%s7266_s1 + $0x48] sm:$0xff] }
 0x176   : > { %v5154_v14 = vpop.permute.xlu1 %804  ;;  %4166 = vset.pattern.permute.xlu2 %v7331_v22  ;;  %4165 = vset.pattern.permute.xlu1 %v7331_v22  ;;  %vm551_vm0 = vmor %vm5182_vm3, %vm519_vm11  ;;  %vm395_vm11 = vcmp.eq.s32.totalorder %v4738_v41, %v4928_v28  ;;  %v5259_v18 = vpop.permute.xlu2 %910  ;;  %v7399_v41 = vmov 0 }
 0x177   : > { %1046 = vperm.xlu2 %4166, %v4634_v13   ;;  %1043 = vperm.xlu1 %4165, %v4616_v8   ;;  %v4003_v8 = vld [vmem:[%s7266_s1 + $0x58] sm:$0xff]  ;;  %vm662_vm14 = vmor %vm550_vm2, %vm630_vm5 }
 0x178   : > { %vm663_vm7 = vmor %vm551_vm0, %vm631_vm9  ;;  %1454 = vmatpush.bf16.msra.mxu0 %v3995_v32  ;;  %1503 = vmatpush.bf16.msra.mxu1 %v4003_v8 }
 0x179   : > { %vm774_vm3 = vmor %vm662_vm14, %vm742_vm13  ;;  %4076 = vmatpush.bf16.msra.mxu2 %v3995_v32  ;;  %4084 = vmatpush.bf16.msra.mxu3 %v4003_v8  ;;  %vm397_vm13 = vcmp.eq.s32.totalorder %v4708_v31, %v4928_v28  ;;  %v7409_v32 = vmov 0  ;;  %v7411_v8 = vmov 0 }
 0x17a   : > { %vm5241_vm9 = vmor %vm663_vm7, %vm743_vm4  ;;  %vm396_vm7 = vcmp.eq.s32.totalorder %v4708_v31, %v4923_v16  ;;  %vm525_vm4 = vcmp.eq.s32.totalorder %v4817_v44, %v4928_v28  ;;  %v4000_v31 = vld [vmem:[%s7266_s1 + $0x40] sm:$0xff] }
 0x17c   : > { %1455 = vmatpush.bf16.msra.mxu0 %v3994_v53  ;;  %1504 = vmatpush.bf16.msra.mxu1 %v4002_v61 }
 0x17d   : > { %4077 = vmatpush.bf16.msra.mxu2 %v3994_v53  ;;  %4085 = vmatpush.bf16.msra.mxu3 %v4002_v61  ;;  %v7442_v61 = vmov 0 }
 0x17e   : > { %v814_v35 = vpop.permute.xlu1 %813 }
 0x17f   : > { %vm854_vm5 = vcmp.eq.s32.totalorder %v814_v35, %v4923_v16  ;;  %vm855_vm2 = vcmp.eq.s32.totalorder %v814_v35, %v4928_v28  ;;  %4169 = vset.pattern.permute.xlu2 %v7334_v62  ;;  %4168 = vset.pattern.permute.xlu1 %v7330_v52  ;;  %v7482_v35 = vmov 0 }
 0x180   : > { %vm5261_vm14 = vmor %vm774_vm3, %vm854_vm5  ;;  %937 = vperm.xlu2 %4169, %v4631_v12   ;;  %1158 = vperm.xlu1 %4168, %v4634_v13   ;;  %v3993_v13 = vld [vmem:[%s7266_s1 + $0x8] sm:$0xff]  ;;  %vm318_vm5 = vcmp.eq.s32.totalorder %v4687_v23, %v4923_v16 }
 0x181   : > { %v7390_v5 = vsel %vm5261_vm14, 4294967295, %v7389_v5  ;;  %vm5277_vm3 = vmor %vm314_vm15, %vm394_vm8  ;;  %vm749_vm15 = vcmp.eq.s32.totalorder %v4898_v24, %v4928_v28  ;;  %1456 = vmatpush.bf16.msra.mxu0 %v3993_v13  ;;  %1505 = vmatpush.bf16.msra.mxu1 %v4001_v25 }
 0x182   : > { %vm5289_vm0 = vmor %vm5241_vm9, %vm855_vm2  ;;  %vm7397_vm9 = vcmp.eq.s32.totalorder %v4817_v44, %v4923_v16  ;;  %4078 = vmatpush.bf16.msra.mxu2 %v3993_v13  ;;  %4086 = vmatpush.bf16.msra.mxu3 %v4001_v25  ;;  %v7460_v13 = vmov 0  ;;  %v7467_v25 = vld [vmem:[#allocation21_spill] sm:$0xff]  ;;  %v7530_v44 = vmov 0 }
 0x183   : > { %v7394_v4 = vsel %vm5289_vm0, 4294967295, %v7393_v4  ;;  %vm5301_vm8 = vmor %vm315_vm12, %vm395_vm11  ;;  %vm7398_vm12 = vcmp.eq.s32.totalorder %v4702_v29, %v4923_v16 }
 0x184   : > { %vm556_vm2 = vmor %vm5196_vm1, %vm7397_vm9  ;;  %vm748_vm9 = vcmp.eq.s32.totalorder %v4898_v24, %v4923_v16  ;;  %v3992_v24 = vld [vmem:[%s7266_s1] sm:$0xff] }
 0x185   : > { %vm5326_vm1 = vmor %vm7398_vm12, %vm396_vm7  ;;  %vm7401_vm7 = vcmp.eq.s32.totalorder %v4702_v29, %v4928_v28  ;;  %1457 = vmatpush.bf16.msra.mxu0 %v3992_v24  ;;  %1506 = vmatpush.bf16.msra.mxu1 %v4000_v31 }
 0x186   : > { %v7400_v41 = vsel %vm5326_vm1, 4294967295, %v7399_v41  ;;  %vm557_vm11 = vmor %vm5214_vm10, %vm525_vm4  ;;  %vm7404_vm10 = vcmp.eq.s32.totalorder %v4861_v40, %v4923_v16  ;;  %v823_v29 = vpop.permute.xlu1 %822  ;;  %4079 = vmatpush.bf16.msra.mxu2 %v3992_v24  ;;  %4087 = vmatpush.bf16.msra.mxu3 %v4000_v31  ;;  %v7473_v24 = vmov 5   ;;  %v5661_v31 = vld [vmem:[%s4589_s7 + $0x60] sm:$0xff] }
 0x187   : > { %vm5345_vm12 = vmor %vm7401_vm7, %vm397_vm13  ;;  %vm7408_vm13 = vcmp.eq.s32.totalorder %v4861_v40, %v4928_v28  ;;  %vm861_vm1 = vcmp.eq.s32.totalorder %v823_v29, %v4928_v28  ;;  %v5378_v40 = vpop.permute.xlu2 %1131 }
 0x188   : > { %v7403_v37 = vsel %vm5345_vm12, 4294967295, %v7402_v37  ;;  %vm668_vm4 = vmor %vm556_vm2, %vm7404_vm10  ;;  %vm506_vm2 = vcmp.eq.s32.totalorder %v4783_v57, %v4923_v16  ;;  %vm860_vm12 = vcmp.eq.s32.totalorder %v823_v29, %v4923_v16  ;;  %4172 = vset.pattern.permute.xlu2 %v7331_v22  ;;  %4171 = vset.pattern.permute.xlu1 %v7331_v22 }
 0x189   : > { %vm5357_vm14 = vmor %vm318_vm5, %vm7405_vm6  ;;  %vm399_vm6 = vcmp.eq.s32.totalorder %v4747_v45, %v4928_v28  ;;  %vm507_vm5 = vcmp.eq.s32.totalorder %v4783_v57, %v4928_v28  ;;  %1052 = vperm.xlu2 %4172, %v4628_v11   ;;  %1049 = vperm.xlu1 %4171, %v4631_v12   ;;  %v5433_v45 = vpop.permute.xlu0 %1037  ;;  %v7419_v57 = vmov 0 }
 0x18a   : > { %vm669_vm7 = vmor %vm557_vm11, %vm7408_vm13  ;;  %vm400_vm11 = vcmp.eq.s32.totalorder %v4745_v43, %v4923_v16 }
 0x18b   : > { %vm780_vm0 = vmor %vm668_vm4, %vm748_vm9  ;;  %vm508_vm9 = vcmp.eq.s32.totalorder %v4791_v60, %v4923_v16 }
 0x18c   : > { %vm781_vm10 = vmor %vm669_vm7, %vm749_vm15  ;;  %vm320_vm7 = vcmp.eq.s32.totalorder %v4696_v26, %v4923_v16 }
 0x18d   : > { %vm5380_vm15 = vmor %vm780_vm0, %vm860_vm12  ;;  %vm319_vm0 = vcmp.eq.s32.totalorder %v4687_v23, %v4928_v28  ;;  %vm401_vm12 = vcmp.eq.s32.totalorder %v4745_v43, %v4928_v28  ;;  %v7427_v43 = vmov 0  ;;  %v7478_v23 = vld [vmem:[#allocation32_spill] sm:$0xff] }
 0x18e   : > { %v7410_v32 = vsel %vm5380_vm15, 4294967295, %v7409_v32  ;;  %vm5388_vm4 = vmor %vm781_vm10, %vm861_vm1  ;;  %vm618_vm1 = vcmp.eq.s32.totalorder %v4810_v19, %v4923_v16 }
 0x18f   : > { %v7412_v8 = vsel %vm5388_vm4, 4294967295, %v7411_v8  ;;  %vm5403_vm13 = vmor %vm5277_vm3, %vm506_vm2  ;;  %v908_v39 = vpop.permute.xlu1 %907  ;;  %v5504_v53 = vpop.permute.xlu2 %913 }
 0x190   : > { %vm5416_vm10 = vmor %vm319_vm0, %vm399_vm6  ;;  %vm321_vm6 = vcmp.eq.s32.totalorder %v4696_v26, %v4928_v28  ;;  %v7422_v26 = vmov 0 }
 0x191   : > { %vm5427_vm2 = vmor %vm5301_vm8, %vm507_vm5  ;;  %vm619_vm8 = vcmp.eq.s32.totalorder %v4810_v19, %v4928_v28  ;;  %vm7421_vm5 = vnez %v7400_v41  ;;  %4174 = vset.pattern.permute.xlu2 %v7330_v52  ;;  %4173 = vset.pattern.permute.xlu1 %v7330_v52  ;;  %v7468_v41 = vmov 0  ;;  %v7499_v19 = vmov 0 }
 0x192   : > { %vm5440_vm0 = vmor %vm320_vm7, %vm400_vm11  ;;  %vm7424_vm11 = vcmp.eq.s32.totalorder %v4791_v60, %v4928_v28  ;;  %vm7425_vm7 = vnez %v7403_v37  ;;  %1164 = vperm.xlu2 %4174, %v4628_v11   ;;  %1161 = vperm.xlu1 %4173, %v4631_v12   ;;  %v7440_v11 = vmov 0  ;;  %v5552_v12 = vpop.permute.xlu0 %1152  ;;  %v7470_v37 = vld [vmem:[#allocation17_spill] sm:$0xff] }
 0x193   : > { %v7420_v57 = vsel %vm5440_vm0, 4294967295, %v7419_v57  ;;  %vm540_vm3 = vmor %vm7421_vm5, %vm508_vm9  ;;  %vm620_vm0 = vcmp.eq.s32.totalorder %v4834_v42, %v4923_v16  ;;  %vm7426_vm9 = vcmp.eq.s32.totalorder %v4764_v51, %v4923_v16 }
 0x194   : > { %vm5454_vm4 = vmor %vm321_vm6, %vm401_vm12  ;;  %vm621_vm6 = vcmp.eq.s32.totalorder %v4834_v42, %v4928_v28 }
 0x195   : > { %v7423_v26 = vsel %vm5454_vm4, 4294967295, %v7422_v26  ;;  %vm541_vm15 = vmor %vm7425_vm7, %vm7424_vm11 }
 0x196   : > { %vm5470_vm5 = vmor %vm5357_vm14, %vm7426_vm9  ;;  %vm732_vm14 = vcmp.eq.s32.totalorder %v4867_v0, %v4923_v16 }
 0x197   : > { %v7428_v43 = vsel %vm5470_vm5, 4294967295, %v7427_v43  ;;  %vm5476_vm12 = vmor %vm5403_vm13, %vm618_vm1  ;;  %vm733_vm13 = vcmp.eq.s32.totalorder %v4867_v0, %v4928_v28  ;;  %vm511_vm1 = vcmp.eq.s32.totalorder %v4764_v51, %v4928_v28  ;;  %vm730_vm5 = vcmp.eq.s32.totalorder %v4900_v54, %v4923_v16  ;;  %v5657_v29 = vpop.permute.xlu2 %1028  ;;  %v7512_v51 = vld [vmem:[#allocation34_spill] sm:$0xff] }
 0x198   : > { %vm5484_vm11 = vmor %vm5427_vm2, %vm619_vm8  ;;  %vm512_vm2 = vcmp.eq.s32.totalorder %v4800_v63, %v4923_v16  ;;  %vm731_vm8 = vcmp.eq.s32.totalorder %v4900_v54, %v4928_v28  ;;  %v7437_v0 = vmov 0  ;;  %v7446_v54 = vmov 0 }
 0x199   : > { %vm652_vm7 = vmor %vm540_vm3, %vm620_vm0  ;;  %vm842_vm0 = vcmp.eq.s32.totalorder %v5052_v46, %v4923_v16 }
 0x19a   : > { %vm653_vm9 = vmor %vm541_vm15, %vm621_vm6  ;;  %vm404_vm15 = vcmp.eq.s32.totalorder %v4754_v47, %v4923_v16  ;;  %4176 = vset.pattern.permute.xlu2 %v7334_v62  ;;  %4175 = vset.pattern.permute.xlu1 %v7473_v24 }
 0x19b   : > { %vm5500_vm4 = vmor %vm652_vm7, %vm732_vm14  ;;  %943 = vperm.xlu2 %4176, %v5661_v31  }
 0x19c   : > { %vm5514_vm6 = vmor %vm653_vm9, %vm733_vm13  ;;  %vm324_vm9 = vcmp.eq.s32.totalorder %v4678_v21, %v4923_v16 }
 0x19d   : > { %vm5521_vm14 = vmor %vm5416_vm10, %vm511_vm1  ;;  %vm7439_vm1 = vnez %v7420_v57  ;;  %vm403_vm10 = vcmp.eq.s32.totalorder %v4716_v34, %v4928_v28  ;;  %v7484_v57 = vld [vmem:[#allocation16_spill] sm:$0xff] }
 0x19e   : > { %v7438_v0 = vsel %vm5521_vm14, 4294967295, %v7437_v0  ;;  %vm762_vm3 = vmor %vm5476_vm12, %vm730_vm5  ;;  %vm844_vm12 = vcmp.eq.s32.totalorder %v5116_v27, %v4923_v16  ;;  %vm7457_vm14 = vcmp.eq.s32.totalorder %v4716_v34, %v4923_v16 }
 0x19f   : > { %vm5541_vm7 = vmor %vm7439_vm1, %vm512_vm2  ;;  %vm7444_vm1 = vcmp.eq.s32.totalorder %v4800_v63, %v4928_v28  ;;  %v1141_v63 = vpop.permute.xlu2 %1140 }
 0x1a0   : > { %v7441_v11 = vsel %vm5541_vm7, 4294967295, %v7440_v11  ;;  %vm763_vm5 = vmor %vm5484_vm11, %vm731_vm8  ;;  %vm7445_vm11 = vnez %v7423_v26  ;;  %vm323_vm7 = vcmp.eq.s32.totalorder %v4673_v20, %v4928_v28  ;;  %v7487_v26 = vmov 0 }
 0x1a1   : > { %vm5559_vm2 = vmor %vm324_vm9, %vm404_vm15  ;;  %vm845_vm15 = vcmp.eq.s32.totalorder %v5116_v27, %v4928_v28  ;;  %vm322_vm9 = vcmp.eq.s32.totalorder %v4673_v20, %v4923_v16  ;;  %v7521_v20 = vld [vmem:[#allocation27_spill] sm:$0xff] }
 0x1a2   : > { %v7443_v61 = vsel %vm5559_vm2, 4294967295, %v7442_v61  ;;  %vm5568_vm8 = vmor %vm7445_vm11, %vm7444_vm1  ;;  %vm7450_vm2 = vcmp.eq.s32.totalorder %v4849_v58, %v4923_v16  ;;  %vm7451_vm1 = vnez %v7428_v43  ;;  %v5736_v43 = vpop.permute.xlu0 %1155 }
 0x1a3   : > { %v7447_v54 = vsel %vm5568_vm8, 4294967295, %v7446_v54  ;;  %vm5575_vm13 = vmor %vm762_vm3, %vm842_vm0  ;;  %vm7454_vm3 = vcmp.eq.s32.totalorder %v5052_v46, %v4928_v28  ;;  %vm954_vm8 = vcmp.eq.s32.totalorder %v908_v39, %v4923_v16  ;;  %v1023_v46 = vpop.permute.xlu1 %1022  ;;  %4178 = vset.pattern.permute.xlu2 %v7331_v22 }
 0x1a4   : > { %v7449_v33 = vsel %vm5575_vm13, 4294967295, %v7448_v33  ;;  %vm5588_vm11 = vmor %vm7451_vm1, %vm7450_vm2  ;;  %1055 = vperm.xlu2 %4178, %v5661_v31  }
 0x1a5   : > { %vm5595_vm0 = vmor %vm763_vm5, %vm7454_vm3  ;;  %vm956_vm5 = vcmp.eq.s32.totalorder %v5259_v18, %v4923_v16 }
 0x1a6   : > { %vm5605_vm13 = vmor %vm322_vm9, %vm7457_vm14  ;;  %vm955_vm14 = vcmp.eq.s32.totalorder %v908_v39, %v4928_v28  ;;  %vm957_vm9 = vcmp.eq.s32.totalorder %v5259_v18, %v4928_v28  ;;  %v7495_v18 = vmov 0  ;;  %v4474_v39 = vld [vmem:[%s4589_s7 + $0x70] sm:$0xff] }
 0x1a7   : > { %vm876_vm2 = vmor %vm5500_vm4, %vm844_vm12  ;;  %vm1066_vm12 = vcmp.eq.s32.totalorder %v5166_v48, %v4923_v16 }
 0x1a8   : > { %vm5613_vm1 = vmor %vm323_vm7, %vm403_vm10  ;;  %vm7464_vm7 = vnez %v7449_v33 }
 0x1a9   : > { %v7461_v13 = vsel %vm5613_vm1, 4294967295, %v7460_v13  ;;  %vm5619_vm3 = vmor %vm5514_vm6, %vm845_vm15  ;;  %vm7475_vm6 = vnez %v7438_v0  ;;  %vm7490_vm1 = vnez %v7443_v61  ;;  %v7513_v0 = vld [vmem:[#allocation23_spill] sm:$0xff] }
 0x1aa   : > { %vm5630_vm10 = vmor %vm7464_vm7, %vm954_vm8  ;;  %vm514_vm7 = vcmp.eq.s32.totalorder %v7484_v57, %v4923_v16 }
 0x1ab   : > { %vm5640_vm4 = vmor %vm876_vm2, %vm956_vm5  ;;  %vm325_vm2 = vcmp.eq.s32.totalorder %v4678_v21, %v4928_v28  ;;  %vm7474_vm5 = vcmp.eq.s32.totalorder %v4849_v58, %v4928_v28  ;;  %v5689_v58 = vld [vmem:[%s4589_s7 + $0x68] sm:$0xff]  ;;  %v7541_v21 = vmov 0 }
 0x1ac   : > { %v7469_v41 = vsel %vm5640_vm4, 4294967295, %v7468_v41  ;;  %vm5653_vm15 = vmor %vm5595_vm0, %vm955_vm14  ;;  %834 = vperm.xlu1 %4175, %v5689_v58   ;;  %4181 = vset.pattern.permute.xlu2 %v7330_v52 }
 0x1ad   : > { %vm5671_vm0 = vmor %vm7475_vm6, %vm7474_vm5  ;;  %vm7481_vm6 = vcmp.eq.s32.totalorder %v4754_v47, %v4928_v28  ;;  %v7491_v47 = vmov 0  ;;  %1170 = vperm.xlu2 %4181, %v5689_v58  }
 0x1ae   : > { %v7477_v2 = vsel %vm5671_vm0, 4294967295, %v7476_v2  ;;  %vm5684_vm8 = vmor %vm5630_vm10, %vm1066_vm12  ;;  %vm7485_vm12 = vcmp.eq.s32.totalorder %v7467_v25, %v4923_v16  ;;  %vm7486_vm10 = vnez %v7441_v11  ;;  %vm7489_vm0 = vcmp.eq.s32.totalorder %v7470_v37, %v4923_v16 }
 0x1af   : > { %vm5695_vm5 = vmor %vm325_vm2, %vm7481_vm6  ;;  %vm1068_vm6 = vcmp.eq.s32.totalorder %v1023_v46, %v4923_v16  ;;  %v4530_v11 = vmov 0.0  }
 0x1b0   : > { %v7483_v35 = vsel %vm5695_vm5, 4294967295, %v7482_v35  ;;  %vm5706_vm14 = vmor %vm7486_vm10, %vm7485_vm12  ;;  %vm515_vm5 = vcmp.eq.s32.totalorder %v7484_v57, %v4928_v28  ;;  %vm7493_vm10 = vcmp.eq.s32.totalorder %v7467_v25, %v4928_v28 }
 0x1b1   : > { %v7488_v26 = vsel %vm5706_vm14, 4294967295, %v7487_v26  ;;  %vm989_vm2 = vmor %vm5619_vm3, %vm957_vm9  ;;  %vm7494_vm14 = vnez %v7447_v54  ;;  %vm7497_vm9 = vcmp.eq.s32.totalorder %v5166_v48, %v4928_v28  ;;  %v7502_v48 = vmov 0 }
 0x1b2   : > { %vm5723_vm12 = vmor %vm7490_vm1, %vm7489_vm0  ;;  %vm1069_vm0 = vcmp.eq.s32.totalorder %v1023_v46, %v4928_v28 }
 0x1b3   : > { %v7492_v47 = vsel %vm5723_vm12, 4294967295, %v7491_v47  ;;  %vm5732_vm3 = vmor %vm7494_vm14, %vm7493_vm10  ;;  %vm7498_vm12 = vcmp.eq.s32.totalorder %v7478_v23, %v4923_v16  ;;  %vm1179_vm14 = vcmp.eq.s32.totalorder %v5378_v40, %v4928_v28  ;;  %vm7501_vm10 = vcmp.eq.s32.totalorder %v5378_v40, %v4923_v16  ;;  %v1135_v40 = vpop.permute.xlu1 %1134 }
 0x1b4   : > { %v7496_v18 = vsel %vm5732_vm3, 4294967295, %v7495_v18  ;;  %vm1099_vm1 = vmor %vm5653_vm15, %vm7497_vm9  ;;  %4177 = vset.pattern.permute.xlu1 %v7334_v62 }
 0x1b5   : > { %vm5749_vm4 = vmor %vm5588_vm11, %vm7498_vm12  ;;  %vm7506_vm11 = vnez %v7469_v41  ;;  %946 = vperm.xlu1 %4177, %v5689_v58   ;;  %v7526_v41 = vmov 0  ;;  %v5921_v58 = vpop.permute.xlu2 %1031  ;;  %4183 = vset.pattern.permute.xlu2 %v7473_v24 }
 0x1b6   : > { %v7500_v19 = vsel %vm5749_vm4, 4294967295, %v7499_v19  ;;  %vm5760_vm15 = vmor %vm5684_vm8, %vm7501_vm10  ;;  %vm7507_vm4 = vnez %v7461_v13  ;;  %vm735_vm10 = vcmp.eq.s32.totalorder %v7478_v23, %v4928_v28  ;;  %v7519_v13 = vmov 0 }
 0x1b7   : > { %v7503_v48 = vsel %vm5760_vm15, 4294967295, %v7502_v48  ;;  %vm5766_vm9 = vmor %vm5605_vm13, %vm514_vm7  ;;  %vm1180_vm15 = vcmp.eq.s32.totalorder %v1135_v40, %v4923_v16  ;;  %vm1181_vm13 = vcmp.eq.s32.totalorder %v1135_v40, %v4928_v28  ;;  %v7536_v23 = vmov 0 }
 0x1b8   : > { %vm1100_vm12 = vmor %vm7506_vm11, %vm1068_vm6  ;;  %vm517_vm6 = vcmp.eq.s32.totalorder %v7470_v37, %v4928_v28  ;;  %v917_v37 = vpop.permute.xlu0 %916 }
 0x1b9   : > { %vm5774_vm3 = vmor %vm7507_vm4, %vm515_vm5  ;;  %vm736_vm4 = vcmp.eq.s32.totalorder %v7512_v51, %v4923_v16 }
 0x1ba   : > { %vm1101_vm8 = vmor %vm989_vm2, %vm1069_vm0  ;;  %vm628_vm2 = vcmp.eq.s32.totalorder %v7513_v0, %v4923_v16  ;;  %vm737_vm0 = vcmp.eq.s32.totalorder %v7512_v51, %v4928_v28 }
 0x1bb   : > { %vm5782_vm7 = vmor %vm1099_vm1, %vm1179_vm14  ;;  %vm7514_vm1 = vnez %v7503_v48  ;;  %vm7515_vm14 = vnez %v7477_v2 }
 0x1bc   : > { %vm1212_vm5 = vmor %vm1100_vm12, %vm1180_vm15  ;;  %v3446_v61 = vsel %vm7514_vm1, 1.0, %v4530_v11  ;;  %vm846_vm12 = vcmp.eq.s32.totalorder %v4940_v7, %v4923_v16  ;;  %v3447_v27 = vsel %vm5782_vm7, 1.0, %v4530_v11  ;;  %vm7522_vm7 = vnez %v7488_v26  ;;  %v7585_v26 = vld [vmem:[#allocation20_spill] sm:$0xff] }
 0x1bd   : > { %vm1213_vm11 = vmor %vm1101_vm8, %vm1181_vm13  ;;  %v3448_v54 = vsel %vm1212_vm5, 1.0, %v4530_v11  ;;  %vm7518_vm8 = vnez %v7483_v35  ;;  %vm626_vm13 = vcmp.eq.s32.totalorder %v7521_v20, %v4923_v16  ;;  %vm847_vm5 = vcmp.eq.s32.totalorder %v4940_v7, %v4928_v28  ;;  %4180 = vset.pattern.permute.xlu1 %v7330_v52  ;;  %v7543_v35 = vld [vmem:[#allocation29_spill] sm:$0xff]  ;;  %v1147_v60 = vpop.permute.xlu2 %1146 }
 0x1be   : > { %vm5806_vm15 = vmor %vm7515_vm14, %vm735_vm10  ;;  %v1306_v38 = vpack.c.bf16 %v3448_v54, %v3446_v61  ;;  %v3449_v46 = vsel %vm1213_vm11, 1.0, %v4530_v11  ;;  %vm627_vm14 = vcmp.eq.s32.totalorder %v7521_v20, %v4928_v28  ;;  %v7532_v7 = vmov 0  ;;  %1167 = vperm.xlu1 %4180, %v5661_v31  }
 0x1bf   : > { %vm5822_vm10 = vmor %vm7518_vm8, %vm517_vm6  ;;  %v1307_v25 = vpack.c.bf16 %v3449_v46, %v3447_v27  ;;  %vm7525_vm6 = vnez %v7492_v47  ;;  %v7588_v47 = vmov 0  ;;  %v7603_v54 = vmov 0 }
 0x1c0   : > { %v7520_v13 = vsel %vm5822_vm10, 4294967295, %v7519_v13  ;;  %vm5835_vm11 = vmor %vm7522_vm7, %vm736_vm4  ;;  %vm7528_vm4 = vnez %v7496_v18  ;;  %vm848_vm7 = vcmp.eq.s32.totalorder %v5154_v14, %v4923_v16  ;;  %1458 = vmatmul.bf16.vlgmr.msra.gmra.mxu0 %v1306_v38  ;;  %v920_v48 = vpop.permute.xlu0 %919 }
 0x1c1   : > { %vm5844_vm1 = vmor %vm7525_vm6, %vm628_vm2  ;;  %vm7529_vm2 = vnez %v7500_v19  ;;  %1507 = vmatmul.bf16.vlgmr.msra.gmra.mxu1 %v1307_v25  ;;  %v4473_v19 = vld [vmem:[%s4589_s7 + $0x78] sm:$0xff]  ;;  %s4531_s7 = smov 112  }
 0x1c2   : > { %v7527_v41 = vsel %vm5844_vm1, 4294967295, %v7526_v41  ;;  %vm769_vm8 = vmor %vm7528_vm4, %vm737_vm0  ;;  %vm849_vm1 = vcmp.eq.s32.totalorder %v5154_v14, %v4928_v28  ;;  %vm958_vm4 = vcmp.eq.s32.totalorder %v5504_v53, %v4923_v16  ;;  %v1026_v14 = vpop.permute.xlu1 %1025  ;;  %840 = vperm.xlu2 %4183, %v4473_v19  }
 0x1c3   : > { %vm878_vm6 = vmor %vm7529_vm2, %vm846_vm12 }
 0x1c4   : > { %vm5866_vm10 = vmor %vm5766_vm9, %vm626_vm13  ;;  %vm959_vm9 = vcmp.eq.s32.totalorder %v5504_v53, %v4928_v28  ;;  %v7538_v53 = vmov 0 }
 0x1c5   : > { %v7531_v44 = vsel %vm5866_vm10, 4294967295, %v7530_v44  ;;  %vm879_vm0 = vmor %vm5806_vm15, %vm847_vm5  ;;  %vm960_vm15 = vcmp.eq.s32.totalorder %v917_v37, %v4923_v16  ;;  %vm629_vm5 = vcmp.eq.s32.totalorder %v7513_v0, %v4928_v28  ;;  %vm1070_vm10 = vcmp.eq.s32.totalorder %v1026_v14, %v4923_v16  ;;  %v929_v33 = vpop.permute.xlu2 %928 }
 0x1c6   : > { %vm5876_vm12 = vmor %vm5774_vm3, %vm627_vm14  ;;  %vm961_vm14 = vcmp.eq.s32.totalorder %v917_v37, %v4928_v28  ;;  %4182 = vset.pattern.permute.xlu1 %v7473_v24  ;;  %v7574_v37 = vld [vmem:[#allocation6_spill] sm:$0xff] }
 0x1c7   : > { %v7533_v7 = vsel %vm5876_vm12, 4294967295, %v7532_v7  ;;  %vm880_vm2 = vmor %vm5835_vm11, %vm848_vm7  ;;  %vm740_vm11 = vcmp.eq.s32.totalorder %v4921_v6, %v4923_v16  ;;  %837 = vperm.xlu1 %4182, %v4474_v39  }
 0x1c8   : > { %vm5884_vm13 = vmor %vm769_vm8, %vm849_vm1  ;;  %vm1072_vm8 = vcmp.eq.s32.totalorder %v5657_v29, %v4923_v16 }
 0x1c9   : > { %vm5891_vm3 = vmor %vm878_vm6, %vm958_vm4  ;;  %vm1073_vm6 = vcmp.eq.s32.totalorder %v5657_v29, %v4928_v28  ;;  %vm7540_vm4 = vnez %v7520_v13  ;;  %v7581_v29 = vmov 0 }
 0x1ca   : > { %v7537_v23 = vsel %vm5891_vm3, 4294967295, %v7536_v23  ;;  %vm5899_vm1 = vmor %vm879_vm0, %vm959_vm9  ;;  %vm738_vm0 = vcmp.eq.s32.totalorder %v7543_v35, %v4923_v16  ;;  %v1138_v18 = vpop.permute.xlu1 %1137  ;;  %4186 = vset.pattern.permute.xlu2 %v7331_v22 }
 0x1cb   : > { %v7539_v53 = vsel %vm5899_vm1, 4294967295, %v7538_v53  ;;  %vm992_vm7 = vmor %vm880_vm2, %vm960_vm15  ;;  %vm1184_vm1 = vcmp.eq.s32.totalorder %v1141_v63, %v4923_v16  ;;  %vm739_vm2 = vcmp.eq.s32.totalorder %v7543_v35, %v4928_v28  ;;  %vm7544_vm15 = vnez %v7527_v41  ;;  %1061 = vperm.xlu2 %4186, %v4474_v39   ;;  %v7578_v35 = vld [vmem:[#allocation7_spill] sm:$0xff] }
 0x1cc   : > { %vm5912_vm3 = vmor %vm7540_vm4, %vm629_vm5  ;;  %vm1185_vm4 = vcmp.eq.s32.totalorder %v1141_v63, %v4928_v28 }
 0x1cd   : > { %v7542_v21 = vsel %vm5912_vm3, 4294967295, %v7541_v21  ;;  %vm993_vm9 = vmor %vm5884_vm13, %vm961_vm14  ;;  %vm7547_vm13 = vnez %v7531_v44  ;;  %v1150_v38 = vpop.permute.xlu2 %1149  ;;  %v7575_v44 = vld [vmem:[#allocation19_spill] sm:$0xff] }
 0x1ce   : > { %vm5927_vm12 = vmor %vm7544_vm15, %vm740_vm11  ;;  %vm1071_vm15 = vcmp.eq.s32.totalorder %v1026_v14, %v4928_v28 }
 0x1cf   : > { %vm1104_vm5 = vmor %vm992_vm7, %vm1072_vm8  ;;  %vm7552_vm8 = vnez %v7533_v7  ;;  %4185 = vset.pattern.permute.xlu1 %v7334_v62 }
 0x1d0   : > { %vm1105_vm3 = vmor %vm993_vm9, %vm1073_vm6  ;;  %vm1182_vm9 = vcmp.eq.s32.totalorder %v1138_v18, %v4923_v16  ;;  %952 = vperm.xlu1 %4185, %v4473_v19  }
 0x1d1   : > { %vm5935_vm14 = vmor %vm7547_vm13, %vm738_vm0  ;;  %vm7557_vm0 = vnez %v7537_v23  ;;  %vm741_vm13 = vcmp.eq.s32.totalorder %v4921_v6, %v4928_v28  ;;  %v7576_v23 = vld [vmem:[#allocation14_spill] sm:$0xff] }
 0x1d2   : > { %vm5939_vm11 = vmor %vm1104_vm5, %vm1184_vm1  ;;  %vm1183_vm5 = vcmp.eq.s32.totalorder %v1138_v18, %v4928_v28 }
 0x1d3   : > { %vm5946_vm7 = vmor %vm7552_vm8, %vm739_vm2  ;;  %vm7558_vm2 = vnez %v7539_v53  ;;  %v3452_v42 = vsel %vm5939_vm11, 1.0, %v4530_v11  ;;  %4188 = vset.pattern.permute.xlu2 %v7330_v52  ;;  %v7568_v52 = vmov 0  ;;  %v7577_v53 = vld [vmem:[#allocation25_spill] sm:$0xff] }
 0x1d4   : > { %vm5950_vm6 = vmor %vm1105_vm3, %vm1185_vm4  ;;  %vm852_vm3 = vcmp.eq.s32.totalorder %v5124_v17, %v4923_v16  ;;  %1173 = vperm.xlu2 %4188, %v4474_v39  }
 0x1d5   : > { %vm1102_vm1 = vmor %vm7557_vm0, %vm1070_vm10  ;;  %vm853_vm10 = vcmp.eq.s32.totalorder %v5124_v17, %v4928_v28  ;;  %v3453_v0 = vsel %vm5950_vm6, 1.0, %v4530_v11  ;;  %vm962_vm6 = vcmp.eq.s32.totalorder %v920_v48, %v4923_v16  ;;  %v7606_v17 = vld [vmem:[#allocation11_spill] sm:$0xff] }
 0x1d6   : > { %vm1103_vm8 = vmor %vm7558_vm2, %vm1071_vm15  ;;  %vm7559_vm15 = vnez %v7542_v21  ;;  %vm963_vm2 = vcmp.eq.s32.totalorder %v920_v48, %v4928_v28  ;;  %v7597_v48 = vld [vmem:[#allocation26_spill] sm:$0xff] }
 0x1d7   : > { %vm1214_vm4 = vmor %vm1102_vm1, %vm1182_vm9  ;;  %vm850_vm9 = vcmp.eq.s32.totalorder %v5006_v56, %v4923_v16 }
 0x1d8   : > { %vm1215_vm0 = vmor %vm1103_vm8, %vm1183_vm5  ;;  %v3450_v40 = vsel %vm1214_vm4, 1.0, %v4530_v11  ;;  %vm851_vm5 = vcmp.eq.s32.totalorder %v5006_v56, %v4928_v28  ;;  %v923_v56 = vpop.permute.xlu1 %922  ;;  %4187 = vset.pattern.permute.xlu1 %v7331_v22  ;;  %v6050_v22 = vpop.permute.xlu2 %934 }
 0x1d9   : > { %vm773_vm1 = vmor %vm7559_vm15, %vm741_vm13  ;;  %v1308_v24 = vpack.c.bf16 %v3452_v42, %v3450_v40  ;;  %v3451_v51 = vsel %vm1215_vm0, 1.0, %v4530_v11  ;;  %vm964_vm4 = vcmp.eq.s32.totalorder %v923_v56, %v4923_v16  ;;  %vm1074_vm15 = vcmp.eq.s32.totalorder %v5921_v58, %v4923_v16  ;;  %1064 = vperm.xlu1 %4187, %v4473_v19  }
 0x1da   : > { %vm5990_vm11 = vmor %vm5927_vm12, %vm852_vm3  ;;  %v1309_v61 = vpack.c.bf16 %v3453_v0, %v3451_v51  ;;  %v7601_v0 = vld [vmem:[#allocation15_spill] sm:$0xff] }
 0x1db   : > { %vm5999_vm13 = vmor %vm773_vm1, %vm853_vm10  ;;  %1463 = vmatmul.bf16.gmra.mxu0 %v1308_v24  ;;  %vm965_vm10 = vcmp.eq.s32.totalorder %v923_v56, %v4928_v28  ;;  %vm1076_vm1 = vcmp.eq.s32.totalorder %v5283_v50, %v4923_v16  ;;  %v7605_v56 = vld [vmem:[#allocation9_spill] sm:$0xff] }
 0x1dc   : > { %vm882_vm12 = vmor %vm5935_vm14, %vm850_vm9  ;;  %1512 = vmatmul.bf16.gmra.mxu1 %v1309_v61  ;;  %vm1075_vm9 = vcmp.eq.s32.totalorder %v5921_v58, %v4928_v28  ;;  %v7579_v58 = vmov 0 }
 0x1dd   : > { %vm883_vm8 = vmor %vm5946_vm7, %vm851_vm5 }
 0x1de   : > { %vm994_vm3 = vmor %vm882_vm12, %vm962_vm6  ;;  %vm1077_vm6 = vcmp.eq.s32.totalorder %v5283_v50, %v4928_v28 }
 0x1df   : > { %vm6011_vm0 = vmor %vm883_vm8, %vm963_vm2  ;;  %vm1189_vm2 = vcmp.eq.s32.totalorder %v1147_v60, %v4928_v28 }
 0x1e0   : > { %vm996_vm14 = vmor %vm5990_vm11, %vm964_vm4  ;;  %vm1188_vm11 = vcmp.eq.s32.totalorder %v1147_v60, %v4923_v16  ;;  %v1144_v62 = vpop.permute.xlu1 %1143  ;;  %v1047_v25 = vpop.permute.xlu2 %1046 }
 0x1e1   : > { %vm997_vm7 = vmor %vm5999_vm13, %vm965_vm10  ;;  %vm1186_vm10 = vcmp.eq.s32.totalorder %v1144_v62, %v4923_v16 }
 0x1e2   : > { %vm1106_vm5 = vmor %vm994_vm3, %vm1074_vm15  ;;  %vm1187_vm3 = vcmp.eq.s32.totalorder %v1144_v62, %v4928_v28  ;;  %v7610_v62 = vmov 0 }
 0x1e3   : > { %vm1108_vm12 = vmor %vm996_vm14, %vm1076_vm1 }
 0x1e4   : > { %vm1109_vm8 = vmor %vm997_vm7, %vm1077_vm6  ;;  %vm1079_vm6 = vcmp.eq.s32.totalorder %v5433_v45, %v4928_v28 }
 0x1e5   : > { %vm1107_vm13 = vmor %vm6011_vm0, %vm1075_vm9  ;;  %vm7566_vm9 = vnez %v7394_v4  ;;  %v6064_v4 = vpop.permute.xlu0 %940 }
 0x1e6   : > { %vm1220_vm4 = vmor %vm1108_vm12, %vm1188_vm11  ;;  %vm7567_vm11 = vnez %v7390_v5 }
 0x1e7   : > { %vm1221_vm15 = vmor %vm1109_vm8, %vm1189_vm2  ;;  %v3456_v63 = vsel %vm1220_vm4, 1.0, %v4530_v11  ;;  %vm968_vm2 = vcmp.eq.s32.totalorder %v929_v33, %v4923_v16  ;;  %vm969_vm4 = vcmp.eq.s32.totalorder %v929_v33, %v4928_v28  ;;  %v7607_v33 = vmov 0 }
 0x1e8   : > { %vm1218_vm1 = vmor %vm1106_vm5, %vm1186_vm10  ;;  %v3457_v13 = vsel %vm1221_vm15, 1.0, %v4530_v11  ;;  %v926_v34 = vpop.permute.xlu1 %925  ;;  %vm1190_vm10 = vcmp.eq.s32.totalorder %v1150_v38, %v4923_v16  ;;  %vm7570_vm15 = vnez %v7371_v10  ;;  %v6119_v31 = vpop.permute.xlu2 %937 }
 0x1e9   : > { %vm1219_vm14 = vmor %vm1107_vm13, %vm1187_vm3  ;;  %v3454_v50 = vsel %vm1218_vm1, 1.0, %v4530_v11  ;;  %vm966_vm0 = vcmp.eq.s32.totalorder %v926_v34, %v4923_v16  ;;  %vm967_vm7 = vcmp.eq.s32.totalorder %v926_v34, %v4928_v28  ;;  %vm1078_vm13 = vcmp.eq.s32.totalorder %v5433_v45, %v4923_v16  ;;  %v7573_v45 = vld [vmem:[#allocation13_spill] sm:$0xff] }
 0x1ea   : > { %v1310_v27 = vpack.c.bf16 %v3456_v63, %v3454_v50  ;;  %v3455_v46 = vsel %vm1219_vm14, 1.0, %v4530_v11  ;;  %vm999_vm5 = vmor %vm7566_vm9, %vm967_vm7  ;;  %vm7571_vm14 = vnez %v7373_v49  ;;  %v7612_v50 = vmov 0 }
 0x1eb   : > { %v1311_v20 = vpack.c.bf16 %v3457_v13, %v3455_v46  ;;  %vm998_vm12 = vmor %vm7567_vm11, %vm966_vm0  ;;  %v7615_v63 = vmov 0  ;;  %v7628_v13 = vmov 0 }
 0x1ec   : > { %1468 = vmatmul.bf16.gmra.mxu0 %v1310_v27  ;;  %vm6052_vm8 = vmor %vm999_vm5, %vm1079_vm6  ;;  %vm1191_vm6 = vcmp.eq.s32.totalorder %v1150_v38, %v4928_v28  ;;  %v7619_v38 = vmov 0  ;;  %v7621_v27 = vld [vmem:[#allocation18_spill] sm:$0xff] }
 0x1ed   : > { %1517 = vmatmul.bf16.gmra.mxu1 %v1311_v20  ;;  %v7569_v52 = vsel %vm6052_vm8, 4294967295, %v7568_v52  ;;  %vm1110_vm3 = vmor %vm998_vm12, %vm1078_vm13  ;;  %vm1192_vm12 = vcmp.eq.s32.totalorder %v5552_v12, %v4923_v16  ;;  %v820_v21 = vpop.permute.xlu0 %819 }
 0x1ee   : > { %vm1000_vm1 = vmor %vm7570_vm15, %vm968_vm2  ;;  %vm7572_vm2 = vnez %v7569_v52  ;;  %vm410_vm15 = vcmp.eq.s32.totalorder %v7573_v45, %v4923_v16 }
 0x1ef   : > { %vm1001_vm0 = vmor %vm7571_vm14, %vm969_vm4  ;;  %vm330_vm14 = vcmp.eq.s32.totalorder %v7574_v37, %v4923_v16 }
 0x1f0   : > { %v1041_v5 = vpop.permute.xlu1 %1040  ;;  %vm1222_vm5 = vmor %vm1110_vm3, %vm1190_vm10  ;;  %vm1193_vm10 = vcmp.eq.s32.totalorder %v5552_v12, %v4928_v28  ;;  %vm411_vm3 = vcmp.eq.s32.totalorder %v7573_v45, %v4928_v28  ;;  %v1053_v18 = vpop.permute.xlu2 %1052 }
 0x1f1   : > { %vm1080_vm7 = vcmp.eq.s32.totalorder %v1041_v5, %v4923_v16  ;;  %vm1081_vm9 = vcmp.eq.s32.totalorder %v1041_v5, %v4928_v28  ;;  %v3458_v10 = vsel %vm1222_vm5, 1.0, %v4530_v11  ;;  %vm1223_vm4 = vmor %vm7572_vm2, %vm1191_vm6  ;;  %vm416_vm6 = vcmp.eq.s32.totalorder %v7576_v23, %v4923_v16 }
 0x1f2   : > { %vm1112_vm11 = vmor %vm1000_vm1, %vm1080_vm7  ;;  %v3459_v7 = vsel %vm1223_vm4, 1.0, %v4530_v11  ;;  %vm635_vm2 = vcmp.eq.s32.totalorder %v7577_v53, %v4928_v28  ;;  %vm336_vm4 = vcmp.eq.s32.totalorder %v7578_v35, %v4923_v16 }
 0x1f3   : > { %vm1113_vm13 = vmor %vm1001_vm0, %vm1081_vm9  ;;  %vm331_vm0 = vcmp.eq.s32.totalorder %v7574_v37, %v4928_v28  ;;  %vm523_vm9 = vcmp.eq.s32.totalorder %v7575_v44, %v4928_v28  ;;  %v7638_v37 = vld [vmem:[#allocation31_spill] sm:$0xff] }
 0x1f4   : > { %vm1224_vm8 = vmor %vm1112_vm11, %vm1192_vm12  ;;  %vm634_vm11 = vcmp.eq.s32.totalorder %v7577_v53, %v4923_v16  ;;  %vm417_vm12 = vcmp.eq.s32.totalorder %v7576_v23, %v4928_v28 }
 0x1f5   : > { %v3460_v49 = vsel %vm1224_vm8, 1.0, %v4530_v11  ;;  %vm1225_vm1 = vmor %vm1113_vm13, %vm1193_vm10  ;;  %vm522_vm8 = vcmp.eq.s32.totalorder %v7575_v44, %v4923_v16  ;;  %vm746_vm10 = vcmp.eq.s32.totalorder %v4938_v15, %v4923_v16  ;;  %v829_v60 = vpop.permute.xlu0 %828 }
 0x1f6   : > { %v1312_v41 = vpack.c.bf16 %v3460_v49, %v3458_v10  ;;  %v3461_v14 = vsel %vm1225_vm1, 1.0, %v4530_v11  ;;  %vm442_vm7 = vmor %vm330_vm14, %vm410_vm15  ;;  %v7636_v10 = vld [vmem:[#allocation28_spill] sm:$0xff] }
 0x1f7   : > { %v1313_v12 = vpack.c.bf16 %v3461_v14, %v3459_v7  ;;  %vm443_vm5 = vmor %vm331_vm0, %vm411_vm3  ;;  %vm337_vm3 = vcmp.eq.s32.totalorder %v7578_v35, %v4928_v28 }
 0x1f8   : > { %v932_v2 = vpop.permute.xlu1 %931  ;;  %vm554_vm13 = vmor %vm442_vm7, %vm522_vm8  ;;  %vm747_vm8 = vcmp.eq.s32.totalorder %v4938_v15, %v4928_v28  ;;  %v7583_v15 = vmov 0  ;;  %v1165_v6 = vpop.permute.xlu2 %1164 }
 0x1f9   : > { %vm555_vm15 = vmor %vm443_vm5, %vm523_vm9  ;;  %vm858_vm9 = vcmp.eq.s32.totalorder %v820_v21, %v4923_v16 }
 0x1fa   : > { %vm6105_vm1 = vmor %vm336_vm4, %vm416_vm6  ;;  %vm859_vm4 = vcmp.eq.s32.totalorder %v820_v21, %v4928_v28  ;;  %v7647_v21 = vmov 0 }
 0x1fb   : > { %v7580_v58 = vsel %vm6105_vm1, 4294967295, %v7579_v58  ;;  %vm666_vm14 = vmor %vm554_vm13, %vm634_vm11  ;;  %vm972_vm1 = vcmp.eq.s32.totalorder %v6050_v22, %v4923_v16  ;;  %vm973_vm13 = vcmp.eq.s32.totalorder %v6050_v22, %v4928_v28  ;;  %v7632_v22 = vld [vmem:[#allocation22_spill] sm:$0xff] }
 0x1fc   : > { %1473 = vmatmul.bf16.gmra.mxu0 %v1312_v41  ;;  %vm6111_vm0 = vmor %vm337_vm3, %vm417_vm12 }
 0x1fd   : > { %1522 = vmatmul.bf16.gmra.mxu1 %v1313_v12  ;;  %v7582_v29 = vsel %vm6111_vm0, 4294967295, %v7581_v29  ;;  %vm667_vm7 = vmor %vm555_vm15, %vm635_vm2  ;;  %vm1084_vm2 = vcmp.eq.s32.totalorder %v1047_v25, %v4923_v16  ;;  %vm528_vm15 = vcmp.eq.s32.totalorder %v7585_v26, %v4923_v16  ;;  %v832_v14 = vpop.permute.xlu0 %831 }
 0x1fe   : > { %vm778_vm5 = vmor %vm666_vm14, %vm746_vm10  ;;  %vm7586_vm10 = vnez %v7410_v32  ;;  %vm970_vm14 = vcmp.eq.s32.totalorder %v932_v2, %v4923_v16  ;;  %v7591_v32 = vmov 0 }
 0x1ff   : > { %vm779_vm6 = vmor %vm667_vm7, %vm747_vm8  ;;  %vm529_vm8 = vcmp.eq.s32.totalorder %v7585_v26, %v4928_v28  ;;  %vm7587_vm7 = vnez %v7412_v8  ;;  %v7594_v8 = vmov 0 }
 0x200   : > { %vm890_vm11 = vmor %vm778_vm5, %vm858_vm9  ;;  %v1044_v57 = vpop.permute.xlu1 %1043  ;;  %vm971_vm5 = vcmp.eq.s32.totalorder %v932_v2, %v4928_v28  ;;  %v944_v20 = vpop.permute.xlu2 %943  ;;  %v7644_v2 = vld [vmem:[#allocation33_spill] sm:$0xff] }
 0x201   : > { %vm6123_vm12 = vmor %vm779_vm6, %vm859_vm4  ;;  %vm1082_vm6 = vcmp.eq.s32.totalorder %v1044_v57, %v4923_v16 }
 0x202   : > { %v7584_v15 = vsel %vm6123_vm12, 4294967295, %v7583_v15  ;;  %vm1004_vm3 = vmor %vm7586_vm10, %vm972_vm1  ;;  %vm7590_vm12 = vnez %v7580_v58  ;;  %vm1083_vm10 = vcmp.eq.s32.totalorder %v1044_v57, %v4928_v28  ;;  %v7651_v58 = vmov 0 }
 0x203   : > { %vm1005_vm9 = vmor %vm7587_vm7, %vm973_vm13  ;;  %vm7593_vm7 = vnez %v7582_v29 }
 0x204   : > { %vm6138_vm4 = vmor %vm1004_vm3, %vm1084_vm2  ;;  %vm1085_vm2 = vcmp.eq.s32.totalorder %v1047_v25, %v4928_v28  ;;  %vm7596_vm3 = vnez %v7584_v15 }
 0x205   : > { %v7589_v47 = vsel %vm6138_vm4, 4294967295, %v7588_v47  ;;  %vm6145_vm0 = vmor %vm7590_vm12, %vm528_vm15  ;;  %v1059_v35 = vpop.permute.xlu0 %1058 }
 0x206   : > { %v7592_v32 = vsel %vm6145_vm0, 4294967295, %v7591_v32  ;;  %vm1002_vm1 = vmor %vm890_vm11, %vm970_vm14  ;;  %vm1194_vm0 = vcmp.eq.s32.totalorder %v5736_v43, %v4923_v16  ;;  %vm1195_vm14 = vcmp.eq.s32.totalorder %v5736_v43, %v4928_v28 }
 0x207   : > { %vm6152_vm13 = vmor %vm7593_vm7, %vm529_vm8  ;;  %vm640_vm7 = vcmp.eq.s32.totalorder %v7597_v48, %v4923_v16 }
 0x208   : > { %v7595_v8 = vsel %vm6152_vm13, 4294967295, %v7594_v8  ;;  %vm1003_vm4 = vmor %vm7596_vm3, %vm971_vm5  ;;  %v1159_v19 = vpop.permute.xlu1 %1158  ;;  %v1056_v23 = vpop.permute.xlu2 %1055 }
 0x209   : > { %vm1114_vm12 = vmor %vm1002_vm1, %vm1082_vm6  ;;  %vm1196_vm13 = vcmp.eq.s32.totalorder %v1159_v19, %v4923_v16  ;;  %vm1197_vm3 = vcmp.eq.s32.totalorder %v1159_v19, %v4928_v28  ;;  %vm752_vm1 = vcmp.eq.s32.totalorder %v5004_v55, %v4923_v16 }
 0x20a   : > { %vm1115_vm15 = vmor %vm1003_vm4, %vm1083_vm10  ;;  %vm641_vm4 = vcmp.eq.s32.totalorder %v7597_v48, %v4928_v28 }
 0x20b   : > { %vm1117_vm11 = vmor %vm1005_vm9, %vm1085_vm2  ;;  %vm7598_vm9 = vnez %v7589_v47 }
 0x20c   : > { %vm1226_vm8 = vmor %vm1114_vm12, %vm1194_vm0  ;;  %vm7599_vm0 = vnez %v7592_v32  ;;  %vm753_vm12 = vcmp.eq.s32.totalorder %v5004_v55, %v4928_v28  ;;  %v7602_v55 = vld [vmem:[#allocation8_spill] sm:$0xff] }
 0x20d   : > { %vm1227_vm5 = vmor %vm1115_vm15, %vm1195_vm14  ;;  %v3462_v43 = vsel %vm1226_vm8, 1.0, %v4530_v11  ;;  %vm865_vm8 = vcmp.eq.s32.totalorder %v829_v60, %v4928_v28 }
 0x20e   : > { %vm1228_vm6 = vmor %vm7598_vm9, %vm1196_vm13  ;;  %v3463_v42 = vsel %vm1227_vm5, 1.0, %v4530_v11  ;;  %vm7600_vm13 = vnez %v7595_v8  ;;  %vm976_vm5 = vcmp.eq.s32.totalorder %v6064_v4, %v4923_v16 }
 0x20f   : > { %vm1229_vm10 = vmor %vm1117_vm11, %vm1197_vm3  ;;  %v3464_v39 = vsel %vm1228_vm6, 1.0, %v4530_v11  ;;  %vm864_vm11 = vcmp.eq.s32.totalorder %v829_v60, %v4923_v16  ;;  %vm340_vm6 = vcmp.eq.s32.totalorder %v7602_v55, %v4923_v16 }
 0x210   : > { %vm672_vm2 = vmor %vm7599_vm0, %vm640_vm7  ;;  %v1314_v40 = vpack.c.bf16 %v3464_v39, %v3462_v43  ;;  %v3465_v24 = vsel %vm1229_vm10, 1.0, %v4530_v11  ;;  %vm420_vm7 = vcmp.eq.s32.totalorder %v7601_v0, %v4923_v16  ;;  %v1050_v61 = vpop.permute.xlu1 %1049  ;;  %vm974_vm0 = vcmp.eq.s32.totalorder %v6119_v31, %v4923_v16  ;;  %v1171_v29 = vpop.permute.xlu2 %1170  ;;  %v7655_v43 = vld [vmem:[#allocation10_spill] sm:$0xff]  ;;  %v7656_v39 = vld [vmem:[#allocation12_spill] sm:$0xff] }
 0x211   : > { %vm673_vm15 = vmor %vm7600_vm13, %vm641_vm4  ;;  %v1315_v51 = vpack.c.bf16 %v3465_v24, %v3463_v42  ;;  %vm977_vm4 = vcmp.eq.s32.totalorder %v6064_v4, %v4928_v28 }
 0x212   : > { %vm784_vm14 = vmor %vm672_vm2, %vm752_vm1  ;;  %1478 = vmatmul.bf16.vlgmr.msra.gmra.mxu2 %v1314_v40  ;;  %vm421_vm2 = vcmp.eq.s32.totalorder %v7601_v0, %v4928_v28  ;;  %v7657_v40 = vld [vmem:[#allocation24_spill] sm:$0xff] }
 0x213   : > { %vm785_vm3 = vmor %vm673_vm15, %vm753_vm12  ;;  %1527 = vmatmul.bf16.vlgmr.msra.gmra.mxu3 %v1315_v51  ;;  %vm975_vm12 = vcmp.eq.s32.totalorder %v6119_v31, %v4928_v28  ;;  %vm338_vm15 = vcmp.eq.s32.totalorder %v7605_v56, %v4923_v16  ;;  %v7658_v51 = vld [vmem:[#allocation30_spill] sm:$0xff] }
 0x214   : > { %vm896_vm9 = vmor %vm784_vm14, %vm864_vm11  ;;  %vm418_vm11 = vcmp.eq.s32.totalorder %v7606_v17, %v4923_v16 }
 0x215   : > { %vm897_vm10 = vmor %vm785_vm3, %vm865_vm8  ;;  %vm1088_vm8 = vcmp.eq.s32.totalorder %v1053_v18, %v4923_v16  ;;  %vm339_vm3 = vcmp.eq.s32.totalorder %v7605_v56, %v4928_v28 }
 0x216   : > { %vm6193_vm1 = vmor %vm340_vm6, %vm420_vm7  ;;  %vm341_vm7 = vcmp.eq.s32.totalorder %v7602_v55, %v4928_v28  ;;  %v950_v55 = vpop.permute.xlu0 %949 }
 0x217   : > { %v7604_v54 = vsel %vm6193_vm1, 4294967295, %v7603_v54  ;;  %vm1008_vm13 = vmor %vm896_vm9, %vm976_vm5  ;;  %vm419_vm5 = vcmp.eq.s32.totalorder %v7606_v17, %v4928_v28  ;;  %vm7609_vm9 = vnez %v7375_v36  ;;  %vm7614_vm1 = vnez %v7377_v59 }
 0x218   : > { %vm6207_vm14 = vmor %vm897_vm10, %vm977_vm4  ;;  %vm1089_vm4 = vcmp.eq.s32.totalorder %v1053_v18, %v4928_v28  ;;  %v1162_v34 = vpop.permute.xlu1 %1161 }
 0x219   : > { %v7608_v33 = vsel %vm6207_vm14, 4294967295, %v7607_v33  ;;  %vm6220_vm6 = vmor %vm7609_vm9, %vm974_vm0  ;;  %vm1200_vm0 = vcmp.eq.s32.totalorder %v1165_v6, %v4923_v16 }
 0x21a   : > { %v7611_v62 = vsel %vm6220_vm6, 4294967295, %v7610_v62  ;;  %vm6225_vm10 = vmor %vm341_vm7, %vm421_vm2  ;;  %vm1201_vm2 = vcmp.eq.s32.totalorder %v1165_v6, %v4928_v28 }
 0x21b   : > { %v7613_v50 = vsel %vm6225_vm10, 4294967295, %v7612_v50  ;;  %vm6231_vm14 = vmor %vm7614_vm1, %vm975_vm12  ;;  %vm532_vm10 = vcmp.eq.s32.totalorder %v7621_v27, %v4923_v16  ;;  %vm7622_vm1 = vnez %v7608_v33 }
 0x21c   : > { %v7616_v63 = vsel %vm6231_vm14, 4294967295, %v7615_v63  ;;  %vm6236_vm9 = vmor %vm338_vm15, %vm418_vm11  ;;  %vm1086_vm14 = vcmp.eq.s32.totalorder %v1050_v61, %v4923_v16  ;;  %v6365_v57 = vpop.permute.xlu2 %840 }
 0x21d   : > { %vm1120_vm6 = vmor %vm1008_vm13, %vm1088_vm8  ;;  %vm1087_vm13 = vcmp.eq.s32.totalorder %v1050_v61, %v4928_v28  ;;  %vm7627_vm8 = vnez %v7604_v54 }
 0x21e   : > { %vm6241_vm7 = vmor %vm339_vm3, %vm419_vm5  ;;  %vm7630_vm5 = vnez %v7611_v62  ;;  %v1177_v36 = vpop.permute.xlu0 %1176 }
 0x21f   : > { %v7620_v38 = vsel %vm6241_vm7, 4294967295, %v7619_v38  ;;  %vm1121_vm12 = vmor %vm7622_vm1, %vm1089_vm4  ;;  %vm1198_vm1 = vcmp.eq.s32.totalorder %v1162_v34, %v4923_v16 }
 0x220   : > { %vm6250_vm11 = vmor %vm1120_vm6, %vm1200_vm0  ;;  %vm533_vm6 = vcmp.eq.s32.totalorder %v7621_v27, %v4928_v28  ;;  %vm7631_vm0 = vnez %v7616_v63  ;;  %v835_v12 = vpop.permute.xlu1 %834 }
 0x221   : > { %vm6255_vm15 = vmor %vm1121_vm12, %vm1201_vm2  ;;  %vm1199_vm12 = vcmp.eq.s32.totalorder %v1162_v34, %v4928_v28  ;;  %v3468_v5 = vsel %vm6250_vm11, 1.0, %v4530_v11  ;;  %vm643_vm11 = vcmp.eq.s32.totalorder %v7636_v10, %v4928_v28 }
 0x222   : > { %vm6261_vm3 = vmor %vm7627_vm8, %vm532_vm10  ;;  %vm530_vm10 = vcmp.eq.s32.totalorder %v7632_v22, %v4923_v16  ;;  %v3469_v25 = vsel %vm6255_vm15, 1.0, %v4530_v11  ;;  %vm756_vm15 = vcmp.eq.s32.totalorder %v4976_v30, %v4923_v16 }
 0x223   : > { %v7629_v13 = vsel %vm6261_vm3, 4294967295, %v7628_v13  ;;  %vm1118_vm4 = vmor %vm7630_vm5, %vm1086_vm14  ;;  %vm531_vm3 = vcmp.eq.s32.totalorder %v7632_v22, %v4928_v28  ;;  %vm7633_vm14 = vnez %v7613_v50  ;;  %vm642_vm5 = vcmp.eq.s32.totalorder %v7636_v10, %v4923_v16 }
 0x224   : > { %vm1119_vm2 = vmor %vm7631_vm0, %vm1087_vm13 }
 0x225   : > { %vm1230_vm8 = vmor %vm1118_vm4, %vm1198_vm1  ;;  %v1062_v42 = vpop.permute.xlu2 %1061 }
 0x226   : > { %vm1231_vm7 = vmor %vm1119_vm2, %vm1199_vm12  ;;  %v3466_v52 = vsel %vm1230_vm8, 1.0, %v4530_v11  ;;  %vm644_vm2 = vcmp.eq.s32.totalorder %v7638_v37, %v4923_v16  ;;  %vm754_vm8 = vcmp.eq.s32.totalorder %v7644_v2, %v4923_v16 }
 0x227   : > { %vm6283_vm13 = vmor %vm7633_vm14, %vm533_vm6  ;;  %v1316_v49 = vpack.c.bf16 %v3468_v5, %v3466_v52  ;;  %v3467_v45 = vsel %vm1231_vm7, 1.0, %v4530_v11  ;;  %vm7637_vm6 = vnez %v7620_v38  ;;  %vm645_vm7 = vcmp.eq.s32.totalorder %v7638_v37, %v4928_v28 }
 0x228   : > { %vm562_vm4 = vmor %vm6236_vm9, %vm530_vm10  ;;  %v1317_v41 = vpack.c.bf16 %v3469_v25, %v3467_v45  ;;  %vm757_vm10 = vcmp.eq.s32.totalorder %v4976_v30, %v4928_v28  ;;  %v947_v31 = vpop.permute.xlu1 %946 }
 0x229   : > { %vm563_vm0 = vmor %vm7637_vm6, %vm531_vm3  ;;  %1483 = vmatmul.bf16.gmra.mxu2 %v1316_v49  ;;  %vm7643_vm3 = vnez %v7629_v13  ;;  %vm866_vm6 = vcmp.eq.s32.totalorder %v832_v14, %v4923_v16 }
 0x22a   : > { %vm6301_vm1 = vmor %vm562_vm4, %vm642_vm5  ;;  %1532 = vmatmul.bf16.gmra.mxu3 %v1317_v41  ;;  %vm755_vm5 = vcmp.eq.s32.totalorder %v7644_v2, %v4928_v28 }
 0x22b   : > { %vm6307_vm9 = vmor %vm563_vm0, %vm643_vm11 }
 0x22c   : > { %vm676_vm12 = vmor %vm7643_vm3, %vm644_vm2  ;;  %vm867_vm2 = vcmp.eq.s32.totalorder %v832_v14, %v4928_v28  ;;  %vm979_vm3 = vcmp.eq.s32.totalorder %v944_v20, %v4928_v28 }
 0x22d   : > { %vm677_vm14 = vmor %vm6283_vm13, %vm645_vm7  ;;  %vm978_vm7 = vcmp.eq.s32.totalorder %v944_v20, %v4923_v16 }
 0x22e   : > { %vm6323_vm4 = vmor %vm676_vm12, %vm756_vm15 }
 0x22f   : > { %vm6327_vm11 = vmor %vm677_vm14, %vm757_vm10  ;;  %vm868_vm10 = vcmp.eq.s32.totalorder %v835_v12, %v4923_v16 }
 0x230   : > { %v7648_v21 = vsel %vm6327_vm11, 4294967295, %v7647_v21  ;;  %vm786_vm0 = vmor %vm6301_vm1, %vm754_vm8  ;;  %vm869_vm11 = vcmp.eq.s32.totalorder %v835_v12, %v4928_v28  ;;  %vm980_vm8 = vcmp.eq.s32.totalorder %v947_v31, %v4923_v16  ;;  %v1168_v15 = vpop.permute.xlu1 %1167 }
 0x231   : > { %vm787_vm13 = vmor %vm6307_vm9, %vm755_vm5  ;;  %vm981_vm5 = vcmp.eq.s32.totalorder %v947_v31, %v4928_v28 }
 0x232   : > { %vm898_vm15 = vmor %vm786_vm0, %vm866_vm6  ;;  %vm1090_vm6 = vcmp.eq.s32.totalorder %v1056_v23, %v4923_v16  ;;  %vm7653_vm0 = vnez %v7648_v21 }
 0x233   : > { %vm899_vm12 = vmor %vm787_vm13, %vm867_vm2 }
 0x234   : > { %vm6340_vm14 = vmor %vm898_vm15, %vm978_vm7  ;;  %vm1092_vm7 = vcmp.eq.s32.totalorder %v1059_v35, %v4923_v16 }
 0x235   : > { %vm6345_vm1 = vmor %vm899_vm12, %vm979_vm3  ;;  %vm1093_vm3 = vcmp.eq.s32.totalorder %v1059_v35, %v4928_v28  ;;  %vm1091_vm12 = vcmp.eq.s32.totalorder %v1056_v23, %v4928_v28 }
 0x236   : > { %v7652_v58 = vsel %vm6345_vm1, 4294967295, %v7651_v58  ;;  %vm900_vm9 = vmor %vm6323_vm4, %vm868_vm10  ;;  %vm1204_vm10 = vcmp.eq.s32.totalorder %v1171_v29, %v4923_v16 }
 0x237   : > { %vm901_vm2 = vmor %vm7653_vm0, %vm869_vm11  ;;  %vm1205_vm0 = vcmp.eq.s32.totalorder %v1171_v29, %v4928_v28 }
 0x238   : > { %vm1012_vm13 = vmor %vm900_vm9, %vm980_vm8  ;;  %vm7654_vm8 = vnez %v7652_v58 }
 0x239   : > { %vm1013_vm15 = vmor %vm901_vm2, %vm981_vm5  ;;  %vm1202_vm5 = vcmp.eq.s32.totalorder %v1168_v15, %v4923_v16  ;;  %v838_v24 = vpop.permute.xlu1 %837 }
 0x23a   : > { %vm1122_vm4 = vmor %vm6340_vm14, %vm1090_vm6  ;;  %vm1203_vm6 = vcmp.eq.s32.totalorder %v1168_v15, %v4928_v28 }
 0x23b   : > { %vm1124_vm1 = vmor %vm1012_vm13, %vm1092_vm7 }
 0x23c   : > { %vm1125_vm11 = vmor %vm1013_vm15, %vm1093_vm3  ;;  %vm424_vm15 = vcmp.eq.s32.totalorder %v7656_v39, %v4923_v16  ;;  %vm345_vm3 = vcmp.eq.s32.totalorder %v7655_v43, %v4928_v28 }
 0x23d   : > { %vm1123_vm9 = vmor %vm7654_vm8, %vm1091_vm12  ;;  %v1459_v32 = vpop.f32.mrf.mxu0  ;;  %vm425_vm12 = vcmp.eq.s32.totalorder %v7656_v39, %v4928_v28  ;;  %vm648_vm8 = vcmp.eq.s32.totalorder %v7658_v51, %v4923_v16 }
 0x23e   : > { %vm1236_vm2 = vmor %vm1124_vm1, %vm1204_vm10  ;;  %v1508_v48 = vpop.f32.mrf.mxu1  ;;  %vm344_vm1 = vcmp.eq.s32.totalorder %v7655_v43, %v4923_v16 }
 0x23f   : > { %vm1237_vm14 = vmor %vm1125_vm11, %vm1205_vm0  ;;  %v3472_v47 = vsel %vm1236_vm2, 1.0, %v4530_v11  ;;  %vm537_vm0 = vcmp.eq.s32.totalorder %v7657_v40, %v4928_v28  ;;  %vm649_vm2 = vcmp.eq.s32.totalorder %v7658_v51, %v4928_v28  ;;  %v6392_v61 = vadd.f32 %v1508_v48, %v1459_v32 }
 0x240   : > { %vm1234_vm7 = vmor %vm1122_vm4, %vm1202_vm5  ;;  %v3473_v19 = vsel %vm1237_vm14, 1.0, %v4530_v11  ;;  %vm536_vm4 = vcmp.eq.s32.totalorder %v7657_v40, %v4923_v16 }
 0x241   : > { %vm1235_vm13 = vmor %vm1123_vm9, %vm1203_vm6  ;;  %v3470_v26 = vsel %vm1234_vm7, 1.0, %v4530_v11  ;;  %vm760_vm6 = vcmp.eq.s32.totalorder %v4919_v3, %v4923_v16  ;;  %vm870_vm7 = vcmp.eq.s32.totalorder %v838_v24, %v4923_v16 }
 0x242   : > { %v1318_v8 = vpack.c.bf16 %v3472_v47, %v3470_v26  ;;  %v3471_v18 = vsel %vm1235_vm13, 1.0, %v4530_v11  ;;  %vm456_vm10 = vmor %vm344_vm1, %vm424_vm15  ;;  %vm871_vm1 = vcmp.eq.s32.totalorder %v838_v24, %v4928_v28  ;;  %vm761_vm15 = vcmp.eq.s32.totalorder %v4919_v3, %v4928_v28 }
 0x243   : > { %v1319_v60 = vpack.c.bf16 %v3473_v19, %v3471_v18  ;;  %vm457_vm11 = vmor %vm345_vm3, %vm425_vm12  ;;  %vm7661_vm12 = vnez %v7367_v1  ;;  %v7663_v3 = vmov 0  ;;  %v953_v1 = vpop.permute.xlu1 %952 }
 0x244   : > { %1488 = vmatmul.bf16.gmra.mxu2 %v1318_v8  ;;  %vm568_vm9 = vmor %vm456_vm10, %vm536_vm4  ;;  %vm982_vm10 = vcmp.eq.s32.totalorder %v950_v55, %v4923_v16 }
 0x245   : > { %1537 = vmatmul.bf16.gmra.mxu3 %v1319_v60  ;;  %vm569_vm5 = vmor %vm457_vm11, %vm537_vm0  ;;  %v1461_v0 = vpop.f32.mrf.mxu0  ;;  %vm7662_vm0 = vnez %v7369_v9  ;;  %v1174_v9 = vpop.permute.xlu2 %1173 }
 0x246   : > { %vm680_vm14 = vmor %vm568_vm9, %vm648_vm8  ;;  %v1510_v6 = vpop.f32.mrf.mxu1  ;;  %vm983_vm8 = vcmp.eq.s32.totalorder %v950_v55, %v4928_v28 }
 0x247   : > { %vm681_vm13 = vmor %vm569_vm5, %vm649_vm2  ;;  %v6395_v54 = vadd.f32 %v1510_v6, %v1461_v0  ;;  %vm872_vm2 = vcmp.eq.s32.totalorder %v6365_v57, %v4923_v16  ;;  %vm1094_vm5 = vcmp.eq.s32.totalorder %v1062_v42, %v4923_v16 }
 0x248   : > { %vm6399_vm3 = vmor %vm680_vm14, %vm760_vm6  ;;  %vm1095_vm14 = vcmp.eq.s32.totalorder %v1062_v42, %v4928_v28 }
 0x249   : > { %vm902_vm4 = vmor %vm7661_vm12, %vm870_vm7  ;;  %v6408_v17 = vpack.i.bf16 %v6395_v54, %v6392_v61  ;;  %vm1206_vm12 = vcmp.eq.s32.totalorder %v1174_v9, %v4923_v16 }
 0x24a   : > { %vm903_vm11 = vmor %vm7662_vm0, %vm871_vm1 }
 0x24b   : > { %vm6413_vm9 = vmor %vm681_vm13, %vm761_vm15  ;;  %4196 = vrot.lane.b32.xlu2 %v6408_v17, %s4531_s7  ;;  %4191 = vrot.lane.b32.xlu1 %v6408_v17, %s4532_s18  ;;  %vm873_vm13 = vcmp.eq.s32.totalorder %v6365_v57, %v4928_v28  ;;  %v1065_v27 = vpop.permute.xlu1 %1064 }
 0x24c   : > { %v7664_v3 = vsel %vm6413_vm9, 4294967295, %v7663_v3  ;;  %vm1014_vm6 = vmor %vm902_vm4, %vm982_vm10  ;;  %vm1207_vm9 = vcmp.eq.s32.totalorder %v1174_v9, %v4928_v28 }
 0x24d   : > { %vm1015_vm7 = vmor %vm903_vm11, %vm983_vm8  ;;  %vm7667_vm4 = vnez %v7664_v3  ;;  %vm984_vm11 = vcmp.eq.s32.totalorder %v953_v1, %v4923_v16 }
 0x24e   : > { %vm6429_vm1 = vmor %vm6399_vm3, %vm872_vm2  ;;  %vm985_vm3 = vcmp.eq.s32.totalorder %v953_v1, %v4928_v28 }
 0x24f   : > { %vm1126_vm15 = vmor %vm1014_vm6, %vm1094_vm5 }
 0x250   : > { %vm1127_vm0 = vmor %vm1015_vm7, %vm1095_vm14  ;;  %vm1096_vm14 = vcmp.eq.s32.totalorder %v1065_v27, %v4923_v16  ;;  %vm1208_vm7 = vcmp.eq.s32.totalorder %v1177_v36, %v4923_v16 }
 0x251   : > { %vm905_vm10 = vmor %vm7667_vm4, %vm873_vm13 }
 0x252   : > { %vm6438_vm8 = vmor %vm1126_vm15, %vm1206_vm12  ;;  %vm1209_vm15 = vcmp.eq.s32.totalorder %v1177_v36, %v4928_v28 }
 0x253   : > { %vm6443_vm2 = vmor %vm1127_vm0, %vm1207_vm9  ;;  %4206 = vrot.lane.b32.xlu2 %v6408_v17, %s4533_s19  ;;  %4201 = vrot.lane.b32.xlu1 %v6408_v17, %s4534_s21  ;;  %vm1097_vm9 = vcmp.eq.s32.totalorder %v1065_v27, %v4928_v28  ;;  %v3474_v13 = vsel %vm6438_vm8, 1.0, %v4530_v11  ;;  %vm2111_vm8 = vcmask 261120  }
 0x254   : > { %vm1016_vm5 = vmor %vm6429_vm1, %vm984_vm11  ;;  %v3475_v34 = vsel %vm6443_vm2, 1.0, %v4530_v11  ;;  %vm2060_vm1 = vcmask 64512   ;;  %vm2094_vm11 = vcmask 195584   ;;  %vm3350_vm2 = vcmask 7168  }
 0x255   : > { %vm1017_vm6 = vmor %vm905_vm10, %vm985_vm3  ;;  %vm2077_vm10 = vcmask 130048  }
 0x256   : > { %vm1128_vm13 = vmor %vm1016_vm5, %vm1096_vm14 }
 0x257   : > { %vm1129_vm12 = vmor %vm1017_vm6, %vm1097_vm9 }
 0x258   : > { %v1464_v62 = vpop.f32.mrf.mxu0  ;;  %vm1240_vm0 = vmor %vm1128_vm13, %vm1208_vm7 }
 0x259   : > { %v1513_v50 = vpop.f32.mrf.mxu1  ;;  %vm1241_vm4 = vmor %vm1129_vm12, %vm1209_vm15  ;;  %v3476_v20 = vsel %vm1240_vm0, 1.0, %v4530_v11 }
 0x25a   : > { %v6464_v22 = vadd.f32 %v1513_v50, %v1464_v62  ;;  %v1320_v28 = vpack.c.bf16 %v3476_v20, %v3474_v13  ;;  %v3477_v52 = vsel %vm1241_vm4, 1.0, %v4530_v11  ;;  %vm6615_vm3 = vmpackc.low %vm2111_vm8, %vm2111_vm8 }
 0x25b   : > { %v1321_v5 = vpack.c.bf16 %v3477_v52, %v3475_v34 }
 0x25c   : > { %1493 = vmatmul.bf16.gmra.mxu2 %v1320_v28 }
 0x25d   : > { %1542 = vmatmul.bf16.gmra.mxu3 %v1321_v5 }
 0x260   : > { %v1466_v59 = vpop.f32.mrf.mxu0 }
 0x261   : > { %v1515_v46 = vpop.f32.mrf.mxu1 }
 0x262   : > { %v6466_v16 = vadd.f32 %v1515_v46, %v1466_v59 }
 0x264   : > { %v6471_v4 = vpack.i.bf16 %v6466_v16, %v6464_v22 }
 0x266   : > { %4221 = vrot.lane.b32.xlu2 %v6471_v4, %s4534_s21  ;;  %4216 = vrot.lane.b32.xlu1 %v6471_v4, %s4531_s7 }
 0x267   : > { %4211 = vrot.lane.b32.xlu0 %v6471_v4, %s4532_s18 }
 0x269   : > { %v1469_v10 = vpop.f32.mrf.mxu0 }
 0x26a   : > { %v1518_v49 = vpop.f32.mrf.mxu1 }
 0x26b   : > { %v6481_v25 = vadd.f32 %v1518_v49, %v1469_v10 }
 0x26f   : > { %4226 = vrot.lane.b32.xlu0 %v6471_v4, %s4533_s19 }
 0x271   : > { %v1471_v11 = vpop.f32.mrf.mxu0 }
 0x272   : > { %v1520_v45 = vpop.f32.mrf.mxu1 }
 0x273   : > { %v6483_v41 = vadd.f32 %v1520_v45, %v1471_v11 }
 0x275   : > { %v6487_v37 = vpack.i.bf16 %v6483_v41, %v6481_v25 }
 0x277   : > { %4241 = vrot.lane.b32.xlu0 %v6487_v37, %s4534_s21  ;;  %4236 = vrot.lane.b32.xlu2 %v6487_v37, %s4531_s7 }
 0x278   : > { %4231 = vrot.lane.b32.xlu1 %v6487_v37, %s4532_s18 }
 0x279   : > { %v1474_v44 = vpop.f32.mrf.mxu0 }
 0x27a   : > { %v1523_v7 = vpop.f32.mrf.mxu1 }
 0x27b   : > { %v6499_v2 = vadd.f32 %v1523_v7, %v1474_v44 }
 0x27f   : > { %4251 = vrot.lane.b32.xlu2 %v6408_v17, %s4535_s22 }
 0x280   : > { %4246 = vrot.lane.b32.xlu1 %v6487_v37, %s4533_s19 }
 0x281   : > { %v1476_v14 = vpop.f32.mrf.mxu0 }
 0x282   : > { %v1525_v12 = vpop.f32.mrf.mxu1 }
 0x283   : > { %v6501_v23 = vadd.f32 %v1525_v12, %v1476_v14 }
 0x285   : > { %v6505_v53 = vpack.i.bf16 %v6501_v23, %v6499_v2 }
 0x287   : > { %4266 = vrot.lane.b32.xlu2 %v6505_v53, %s4531_s7  ;;  %4256 = vrot.lane.b32.xlu0 %v6505_v53, %s4532_s18 }
 0x28f   : > { %4281 = vrot.lane.b32.xlu2 %v6505_v53, %s4533_s19 }
 0x295   : > { %v1479_v40 = vpop.f32.mrf.mxu2 }
 0x296   : > { %v1528_v55 = vpop.f32.mrf.mxu3 }
 0x297   : > { %v6531_v28 = vadd.f32 %v1528_v55, %v1479_v40 }
 0x29d   : > { %v1481_v33 = vpop.f32.mrf.mxu2 }
 0x29e   : > { %v1530_v38 = vpop.f32.mrf.mxu3 }
 0x29f   : > { %v6527_v13 = vadd.f32 %v1530_v38, %v1481_v33  ;;  %v4064_v38 = vld [vmem:[#allocation3 + $0x1c4] sm:$0xf] }
 0x2a5   : > { %v4197_v21 = vpop.permute.xlu2 %4196 }
 0x2a6   : > { %v4199_v15 = vunpack.i.h.bf16 %v4197_v21  ;;  %v4198_v57 = vunpack.i.l.bf16 %v4197_v21 }
 0x2ac   : > { %v1484_v45 = vpop.f32.mrf.mxu2 }
 0x2ad   : > { %v4207_v26 = vpop.permute.xlu2 %4206  ;;  %v1533_v44 = vpop.f32.mrf.mxu3 }
 0x2ae   : > { %v4209_v48 = vunpack.i.h.bf16 %v4207_v26  ;;  %v4208_v60 = vunpack.i.l.bf16 %v4207_v26 }
 0x2bd   : > { %v4192_v30 = vpop.permute.xlu1 %4191 }
 0x2be   : > { %v4194_v35 = vunpack.i.h.bf16 %v4192_v30  ;;  %v4193_v58 = vunpack.i.l.bf16 %v4192_v30 }
 0x2c0   : > { %v1613_v29 = vmax.f32 %v6395_v54, %v4194_v35  ;;  %v1612_v31 = vmax.f32 %v6392_v61, %v4193_v58  ;;  %v4222_v27 = vpop.permute.xlu2 %4221 }
 0x2c1   : > { %v4224_v20 = vunpack.i.h.bf16 %v4222_v27  ;;  %v4223_v34 = vunpack.i.l.bf16 %v4222_v27 }
 0x2c2   : > { %v1676_v18 = vmax.f32 %v1612_v31, %v4198_v57  ;;  %v1677_v19 = vmax.f32 %v1613_v29, %v4199_v15 }
 0x2c5   : > { %v4202_v47 = vpop.permute.xlu1 %4201 }
 0x2c6   : > { %v4204_v32 = vunpack.i.h.bf16 %v4202_v47  ;;  %v4203_v8 = vunpack.i.l.bf16 %v4202_v47 }
 0x2c8   : > { %v1740_v43 = vmax.f32 %v1676_v18, %v4203_v8  ;;  %v1741_v39 = vmax.f32 %v1677_v19, %v4204_v32 }
 0x2ca   : > { %v6515_v42 = vmax.f32 %v1740_v43, %v4208_v60  ;;  %v6517_v24 = vmax.f32 %v1741_v39, %v4209_v48  ;;  %v1916_v51 = vmax.f32 %v1740_v43, 0.0  ;;  %v1917_v0 = vmax.f32 %v1741_v39, 0.0  ;;  %v1486_v48 = vpop.f32.mrf.mxu2  ;;  %v1535_v60 = vpop.f32.mrf.mxu3 }
 0x2cb   : > { %v6555_v55 = vadd.f32 %v1535_v60, %v1486_v48  ;;  %v3714_v48 = vld [vmem:[#allocation3 + $0x168] sm:$0xf0] }
 0x2cc   : > { %v1900_v6 = vmax.f32 %v6515_v42, 0.0  ;;  %v1901_v61 = vmax.f32 %v6517_v24, 0.0  ;;  %v4270_v54 = vpack.i.bf16 %v1917_v0, %v1916_v51 }
 0x2ce   : > { %4271 = vrot.lane.b32.xlu0 %v4270_v54, %s4536_s23  ;;  %v4260_v56 = vpack.i.bf16 %v1901_v61, %v1900_v6  ;;  %v6561_v54 = vadd.f32 %v1533_v44, %v1484_v45  ;;  %v4056_v45 = vld [vmem:[#allocation3 + $0x184] sm:$0xf] }
 0x2cf   : > { %v3738_v44 = vld [vmem:[#allocation3 + $0x1a0] sm:$0xf0] }
 0x2d0   : > { %4261 = vrot.lane.b32.xlu1 %v4260_v56, %s4535_s22 }
 0x2d1   : > { %v4237_v21 = vpop.permute.xlu2 %4236 }
 0x2d2   : > { %v4239_v15 = vunpack.i.h.bf16 %v4237_v21  ;;  %v4238_v57 = vunpack.i.l.bf16 %v4237_v21  ;;  %v4061_v21 = vld [vmem:[#allocation3 + $0x1a4] sm:$0xf0] }
 0x2d6   : > { %4286 = vrot.lane.b32.xlu0 %v6471_v4, %s4535_s22  ;;  %v6539_v4 = vpack.i.bf16 %v6527_v13, %v6531_v28 }
 0x2d8   : > { %v4217_v17 = vpop.permute.xlu1 %4216  ;;  %4276 = vrot.lane.b32.xlu1 %v6505_v53, %s4534_s21 }
 0x2d9   : > { %v4212_v3 = vpop.permute.xlu0 %4211  ;;  %v4219_v62 = vunpack.i.h.bf16 %v4217_v17  ;;  %v4218_v50 = vunpack.i.l.bf16 %v4217_v17 }
 0x2da   : > { %v4214_v1 = vunpack.i.h.bf16 %v4212_v3  ;;  %v4213_v9 = vunpack.i.l.bf16 %v4212_v3  ;;  %v6565_v3 = vpop.f32.mrf.mxu2 }
 0x2dc   : > { %v1615_v63 = vmax.f32 %v6466_v16, %v4214_v1  ;;  %v1614_v36 = vmax.f32 %v6464_v22, %v4213_v9  ;;  %v6567_v1 = vpop.f32.mrf.mxu3  ;;  %v6573_v9 = vpack.i.bf16 %v6555_v55, %v6561_v54 }
 0x2de   : > { %v1679_v59 = vmax.f32 %v1615_v63, %v4219_v62  ;;  %v1678_v46 = vmax.f32 %v1614_v36, %v4218_v50  ;;  %4301 = vrot.lane.b32.xlu0 %v6539_v4, %s4531_s7  ;;  %v3768_v63 = vld [vmem:[#allocation3 + $0x1c0] sm:$0xf] }
 0x2df   : > { %v4068_v36 = vld [vmem:[#allocation3 + $0x1dc] sm:$0xf0] }
 0x2e0   : > { %v1742_v22 = vmax.f32 %v1678_v46, %v4223_v34  ;;  %v1743_v10 = vmax.f32 %v1679_v59, %v4224_v20  ;;  %4291 = vrot.lane.b32.xlu1 %v6539_v4, %s4532_s18  ;;  %v3769_v27 = vor.u32 %v4068_v36, %v3768_v63  ;;  %v3770_v59 = vld [vmem:[#allocation3 + $0x1e0] sm:$0xf0]  ;;  %v3776_v46 = vld [vmem:[#allocation3 + $0x1c8] sm:$0xf]  ;;  %v4041_v63 = vld [vmem:[#allocation3 + $0x10c] sm:$0xf] }
 0x2e1   : > { %v4227_v52 = vpop.permute.xlu0 %4226  ;;  %v4069_v20 = vld [vmem:[#allocation3 + $0x1e4] sm:$0xf0]  ;;  %v3682_v36 = vld [vmem:[#allocation3 + $0x128] sm:$0xf0] }
 0x2e2   : > { %v4229_v16 = vunpack.i.h.bf16 %v4227_v52  ;;  %v4228_v5 = vunpack.i.l.bf16 %v4227_v52  ;;  %v1918_v30 = vmax.f32 %v1742_v22, 0.0  ;;  %v1919_v35 = vmax.f32 %v1743_v10, 0.0  ;;  %v4065_v52 = vld [vmem:[#allocation3 + $0x1cc] sm:$0xf]  ;;  %2520 = vmatpush.bf16.msrb.mxu2 %v3769_v27  ;;  %v1491_v60 = vpop.f32.mrf.mxu2 }
 0x2e3   : > { %v3777_v34 = vor.u32 %v4069_v20, %v3776_v46  ;;  %v6587_v27 = vadd.f32 %v6567_v1, %v6565_v3  ;;  %v3685_v46 = vor.u32 %v4041_v63, %v3682_v36  ;;  %v3640_v3 = vld [vmem:[#allocation3 + $0xc0] sm:$0xf]  ;;  %v3552_v63 = vld [vmem:[#allocation3 + $0x8] sm:$0xf] }
 0x2e4   : > { %v6533_v49 = vmax.f32 %v1742_v22, %v4228_v5  ;;  %v6535_v11 = vmax.f32 %v1743_v10, %v4229_v16  ;;  %v4305_v8 = vpack.i.bf16 %v1919_v35, %v1918_v30  ;;  %v3778_v16 = vld [vmem:[#allocation3 + $0x1e8] sm:$0xf0]  ;;  %v3736_v5 = vld [vmem:[#allocation3 + $0x180] sm:$0xf]  ;;  %v4013_v36 = vld [vmem:[#allocation3 + $0x24] sm:$0xf0] }
 0x2e5   : > { %v3781_v22 = vor.u32 %v4065_v52, %v3778_v16  ;;  %v4060_v10 = vld [vmem:[#allocation3 + $0x19c] sm:$0xf0]  ;;  %2618 = vmatpush.bf16.msrb.mxu0 %v3777_v34  ;;  %v4057_v30 = vld [vmem:[#allocation3 + $0x18c] sm:$0xf]  ;;  %v3642_v52 = vld [vmem:[#allocation3 + $0xe0] sm:$0xf0] }
 0x2e6   : > { %v1902_v7 = vmax.f32 %v6533_v49, 0.0  ;;  %v1903_v14 = vmax.f32 %v6535_v11, 0.0  ;;  %4316 = vrot.lane.b32.xlu0 %v6539_v4, %s4533_s19  ;;  %v4036_v1 = vld [vmem:[#allocation3 + $0xdc] sm:$0xf0]  ;;  %v3648_v16 = vld [vmem:[#allocation3 + $0xc8] sm:$0xf] }
 0x2e7   : > { %2667 = vmatpush.bf16.msrb.mxu1 %v3781_v22  ;;  %v3641_v34 = vor.u32 %v4036_v1, %v3640_v3  ;;  %v4252_v3 = vpop.permute.xlu2 %4251 }
 0x2e8   : > { %v4295_v12 = vpack.i.bf16 %v1903_v14, %v1902_v7  ;;  %4306 = vrot.lane.b32.xlu1 %v4305_v8, %s4536_s23  ;;  %v3737_v7 = vor.u32 %v4060_v10, %v3736_v5  ;;  %v3741_v14 = vor.u32 %v4056_v45, %v3738_v44  ;;  %v4037_v5 = vld [vmem:[#allocation3 + $0xe4] sm:$0xf0]  ;;  %v4033_v10 = vld [vmem:[#allocation3 + $0xcc] sm:$0xf]  ;;  %v3608_v44 = vld [vmem:[#allocation3 + $0x80] sm:$0xf] }
 0x2e9   : > { %v4242_v32 = vpop.permute.xlu0 %4241  ;;  %v3649_v22 = vor.u32 %v4037_v5, %v3648_v16  ;;  %v3650_v45 = vld [vmem:[#allocation3 + $0xe8] sm:$0xf0]  ;;  %v4253_v16 = vunpack.i.l.bf16 %v4252_v3 }
 0x2ea   : > { %4296 = vrot.lane.b32.xlu2 %v4295_v12, %s4535_s22  ;;  %v4232_v58 = vpop.permute.xlu1 %4231  ;;  %v4244_v43 = vunpack.i.h.bf16 %v4242_v32  ;;  %v4243_v39 = vunpack.i.l.bf16 %v4242_v32  ;;  %v3744_v12 = vld [vmem:[#allocation3 + $0x188] sm:$0xf]  ;;  %2521 = vmatpush.bf16.msrb.mxu2 %v3737_v7  ;;  %v3653_v7 = vor.u32 %v4033_v10, %v3650_v45 }
 0x2eb   : > { %v4234_v29 = vunpack.i.h.bf16 %v4232_v58  ;;  %v4233_v31 = vunpack.i.l.bf16 %v4232_v58  ;;  %v3745_v35 = vor.u32 %v4061_v21, %v3744_v12  ;;  %v3746_v58 = vld [vmem:[#allocation3 + $0x1a8] sm:$0xf0]  ;;  %v3712_v32 = vld [vmem:[#allocation3 + $0x148] sm:$0xf]  ;;  %v4024_v12 = vld [vmem:[#allocation3 + $0x84] sm:$0xf] }
 0x2ec   : > { %v3610_v21 = vld [vmem:[#allocation3 + $0xa0] sm:$0xf0] }
 0x2ed   : > { %v1617_v26 = vmax.f32 %v6483_v41, %v4234_v29  ;;  %v1616_v47 = vmax.f32 %v6481_v25, %v4233_v31  ;;  %v3704_v29 = vld [vmem:[#allocation3 + $0x140] sm:$0xf]  ;;  %2619 = vmatpush.bf16.msrb.mxu0 %v3745_v35  ;;  %v3613_v35 = vor.u32 %v4024_v12, %v3610_v21 }
 0x2ee   : > { %v4052_v31 = vld [vmem:[#allocation3 + $0x15c] sm:$0xf0] }
 0x2ef   : > { %v1680_v18 = vmax.f32 %v1616_v47, %v4238_v57  ;;  %v1681_v19 = vmax.f32 %v1617_v26, %v4239_v15  ;;  %v3749_v57 = vor.u32 %v4057_v30, %v3746_v58  ;;  %v4048_v26 = vld [vmem:[#allocation3 + $0x144] sm:$0xf]  ;;  %v3705_v8 = vor.u32 %v4052_v31, %v3704_v29  ;;  %v3616_v58 = vld [vmem:[#allocation3 + $0x88] sm:$0xf]  ;;  %v4025_v31 = vld [vmem:[#allocation3 + $0x8c] sm:$0xf] }
 0x2f0   : > { %4321 = vrot.lane.b32.xlu1 %v6487_v37, %s4535_s22  ;;  %v3773_v37 = vor.u32 %v4064_v38, %v3770_v59  ;;  %v3706_v47 = vld [vmem:[#allocation3 + $0x160] sm:$0xf0]  ;;  %v4029_v29 = vld [vmem:[#allocation3 + $0xa4] sm:$0xf0] }
 0x2f1   : > { %v1745_v41 = vmax.f32 %v1681_v19, %v4244_v43  ;;  %v1744_v51 = vmax.f32 %v1680_v18, %v4243_v39  ;;  %v4053_v18 = vld [vmem:[#allocation3 + $0x164] sm:$0xf0]  ;;  %v4049_v19 = vld [vmem:[#allocation3 + $0x14c] sm:$0xf]  ;;  %v1540_v43 = vpop.f32.mrf.mxu3  ;;  %v3709_v39 = vor.u32 %v4048_v26, %v3706_v47  ;;  %2668 = vmatpush.bf16.msrb.mxu1 %v3749_v57  ;;  %2522 = vmatpush.bf16.msrb.mxu2 %v3705_v8  ;;  %v3576_v47 = vld [vmem:[#allocation3 + $0x40] sm:$0xf] }
 0x2f2   : > { %4311 = vrot.lane.b32.xlu2 %v6539_v4, %s4534_s21  ;;  %v4247_v40 = vpop.permute.xlu1 %4246  ;;  %2569 = vmatpush.bf16.msrb.mxu3 %v3773_v37  ;;  %v4032_v37 = vld [vmem:[#allocation3 + $0xc4] sm:$0xf]  ;;  %v3618_v57 = vld [vmem:[#allocation3 + $0xa8] sm:$0xf0] }
 0x2f3   : > { %v4249_v25 = vunpack.i.h.bf16 %v4247_v40  ;;  %v4248_v0 = vunpack.i.l.bf16 %v4247_v40  ;;  %v1921_v33 = vmax.f32 %v1745_v41, 0.0  ;;  %v1920_v62 = vmax.f32 %v1744_v51, 0.0  ;;  %v3672_v40 = vld [vmem:[#allocation3 + $0x100] sm:$0xf]  ;;  %v4016_v8 = vld [vmem:[#allocation3 + $0x44] sm:$0xf] }
 0x2f4   : > { %v3621_v26 = vor.u32 %v4025_v31, %v3618_v57 }
 0x2f5   : > { %v6557_v6 = vmax.f32 %v1744_v51, %v4248_v0  ;;  %v6559_v61 = vmax.f32 %v1745_v41, %v4249_v25  ;;  %v4340_v15 = vpack.i.bf16 %v1921_v33, %v1920_v62  ;;  %v4044_v41 = vld [vmem:[#allocation3 + $0x11c] sm:$0xf0]  ;;  %v3713_v51 = vor.u32 %v4053_v18, %v3712_v32  ;;  %v4040_v25 = vld [vmem:[#allocation3 + $0x104] sm:$0xf]  ;;  %v4045_v33 = vld [vmem:[#allocation3 + $0x124] sm:$0xf0] }
 0x2f6   : > { %2570 = vmatpush.bf16.msrb.mxu3 %v3741_v14  ;;  %v3674_v0 = vld [vmem:[#allocation3 + $0x120] sm:$0xf0]  ;;  %v6583_v62 = vadd.f32 %v1540_v43, %v1491_v60  ;;  %v4028_v14 = vld [vmem:[#allocation3 + $0x9c] sm:$0xf0]  ;;  %v4021_v60 = vld [vmem:[#allocation3 + $0x64] sm:$0xf0] }
 0x2f7   : > { %v1904_v56 = vmax.f32 %v6557_v6, 0.0  ;;  %v1905_v17 = vmax.f32 %v6559_v61, 0.0  ;;  %v3677_v38 = vor.u32 %v4040_v25, %v3674_v0  ;;  %2620 = vmatpush.bf16.msrb.mxu0 %v3713_v51  ;;  %v3609_v30 = vor.u32 %v4028_v14, %v3608_v44  ;;  %v4020_v32 = vld [vmem:[#allocation3 + $0x5c] sm:$0xf0] }
 0x2f8   : > { %4336 = vrot.lane.b32.xlu1 %v6573_v9, %s4531_s7  ;;  %v6593_v20 = vpack.i.bf16 %v6583_v62, %v6587_v27  ;;  %v3577_v18 = vor.u32 %v4020_v32, %v3576_v47  ;;  %v3544_v51 = vld [vmem:[#allocation3] sm:$0xf] }
 0x2f9   : > { %v4330_v50 = vpack.i.bf16 %v1905_v17, %v1904_v56  ;;  %v3717_v56 = vor.u32 %v4049_v19, %v3714_v48  ;;  %v3680_v17 = vld [vmem:[#allocation3 + $0x108] sm:$0xf]  ;;  %v3578_v19 = vld [vmem:[#allocation3 + $0x60] sm:$0xf0]  ;;  %v4012_v0 = vld [vmem:[#allocation3 + $0x1c] sm:$0xf0] }
 0x2fa   : > { %4326 = vrot.lane.b32.xlu2 %v6573_v9, %s4532_s18  ;;  %2571 = vmatpush.bf16.msrb.mxu3 %v3709_v39  ;;  %v3681_v59 = vor.u32 %v4045_v33, %v3680_v17  ;;  %v3584_v48 = vld [vmem:[#allocation3 + $0x48] sm:$0xf]  ;;  %v3581_v43 = vor.u32 %v4016_v8, %v3578_v19  ;;  %v3546_v17 = vld [vmem:[#allocation3 + $0x20] sm:$0xf0]  ;;  %v3545_v33 = vor.u32 %v4012_v0, %v3544_v51 }
 0x2fb   : > { %4331 = vrot.lane.b32.xlu0 %v4330_v50, %s4535_s22  ;;  %v3673_v50 = vor.u32 %v4044_v41, %v3672_v40  ;;  %2669 = vmatpush.bf16.msrb.mxu1 %v3717_v56  ;;  %v3585_v39 = vor.u32 %v4021_v60, %v3584_v48  ;;  %v4017_v40 = vld [vmem:[#allocation3 + $0x4c] sm:$0xf]  ;;  %v4008_v56 = vld [vmem:[#allocation3 + $0x4] sm:$0xf] }
 0x2fc   : > { %2621 = vmatpush.bf16.msrb.mxu0 %v3681_v59  ;;  %v3586_v41 = vld [vmem:[#allocation3 + $0x68] sm:$0xf0]  ;;  %v3553_v59 = vor.u32 %v4013_v36, %v3552_v63  ;;  %v1494_v63 = vpop.f32.mrf.mxu2 }
 0x2fd   : > { %2523 = vmatpush.bf16.msrb.mxu2 %v3673_v50  ;;  %v3589_v25 = vor.u32 %v4017_v40, %v3586_v41  ;;  %v3549_v50 = vor.u32 %v4008_v56, %v3546_v17 }
 0x2fe   : > { %2572 = vmatpush.bf16.msrb.mxu3 %v3677_v38  ;;  %v4009_v38 = vld [vmem:[#allocation3 + $0xc] sm:$0xf] }
 0x2ff   : > { %2670 = vmatpush.bf16.msrb.mxu1 %v3685_v46  ;;  %v3554_v46 = vld [vmem:[#allocation3 + $0x28] sm:$0xf0] }
 0x300   : > { %4351 = vrot.lane.b32.xlu1 %v6573_v9, %s4533_s19  ;;  %2622 = vmatpush.bf16.msrb.mxu0 %v3649_v22  ;;  %v3557_v1 = vor.u32 %v4009_v38, %v3554_v46  ;;  %v1543_v46 = vpop.f32.mrf.mxu3 }
 0x301   : > { %2524 = vmatpush.bf16.msrb.mxu2 %v3641_v34  ;;  %v4257_v34 = vpop.permute.xlu0 %4256 }
 0x302   : > { %4341 = vrot.lane.b32.xlu2 %v4340_v15, %s4536_s23  ;;  %v3617_v15 = vor.u32 %v4029_v29, %v3616_v58  ;;  %v4258_v12 = vunpack.i.l.bf16 %v4257_v34 }
 0x303   : > { %4346 = vrot.lane.b32.xlu0 %v6573_v9, %s4534_s21  ;;  %2671 = vmatpush.bf16.msrb.mxu1 %v3653_v7  ;;  %v4259_v7 = vunpack.i.h.bf16 %v4257_v34 }
 0x304   : > { %2623 = vmatpush.bf16.msrb.mxu0 %v3617_v15  ;;  %v1618_v57 = vmax.f32 %v6499_v2, %v4258_v12 }
 0x305   : > { %2525 = vmatpush.bf16.msrb.mxu2 %v3609_v30  ;;  %v1619_v15 = vmax.f32 %v6501_v23, %v4259_v7 }
 0x307   : > { %2672 = vmatpush.bf16.msrb.mxu1 %v3621_v26 }
 0x308   : > { %2624 = vmatpush.bf16.msrb.mxu0 %v3585_v39 }
 0x309   : > { %2526 = vmatpush.bf16.msrb.mxu2 %v3577_v18 }
 0x30a   : > { %4356 = vrot.lane.b32.xlu2 %v6505_v53, %s4535_s22  ;;  %v3645_v53 = vor.u32 %v4032_v37, %v3642_v52  ;;  %v4267_v37 = vpop.permute.xlu2 %4266  ;;  %v4254_v52 = vunpack.i.h.bf16 %v4252_v3 }
 0x30b   : > { %4361 = vrot.lane.b32.xlu0 %v6593_v20, %s4532_s18  ;;  %2673 = vmatpush.bf16.msrb.mxu1 %v3589_v25  ;;  %v4269_v48 = vunpack.i.h.bf16 %v4267_v37  ;;  %v4268_v60 = vunpack.i.l.bf16 %v4267_v37 }
 0x30c   : > { %2573 = vmatpush.bf16.msrb.mxu3 %v3645_v53  ;;  %2625 = vmatpush.bf16.msrb.mxu0 %v3553_v59  ;;  %v1869_v5 = vmax.f32 %v6517_v24, %v4254_v52  ;;  %v1868_v53 = vmax.f32 %v6515_v42, %v4253_v16 }
 0x30d   : > { %2527 = vmatpush.bf16.msrb.mxu2 %v3545_v33  ;;  %v1682_v39 = vmax.f32 %v1618_v57, %v4268_v60  ;;  %v1683_v40 = vmax.f32 %v1619_v15, %v4269_v48  ;;  %v1496_v15 = vpop.f32.mrf.mxu2 }
 0x30e   : > { %v1885_v45 = vmax.f32 %v1869_v5, 0.0  ;;  %v1884_v44 = vmax.f32 %v1868_v53, 0.0 }
 0x30f   : > { %2674 = vmatpush.bf16.msrb.mxu1 %v3557_v1 }
 0x310   : > { %2574 = vmatpush.bf16.msrb.mxu3 %v3613_v35 }
 0x312   : > { %4371 = vrot.lane.b32.xlu2 %v6593_v20, %s4531_s7  ;;  %v4282_v22 = vpop.permute.xlu2 %4281 }
 0x313   : > { %v4284_v41 = vunpack.i.h.bf16 %v4282_v22  ;;  %v4283_v51 = vunpack.i.l.bf16 %v4282_v22 }
 0x314   : > { %2575 = vmatpush.bf16.msrb.mxu3 %v3581_v43 }
 0x318   : > { %2576 = vmatpush.bf16.msrb.mxu3 %v3549_v50 }
 0x31a   : > { %4386 = vrot.lane.b32.xlu2 %v6593_v20, %s4533_s19 }
 0x340   : > { %v4272_v10 = vpop.permute.xlu0 %4271 }
 0x341   : > { %v4274_v35 = vunpack.i.h.bf16 %v4272_v10  ;;  %v4273_v58 = vunpack.i.l.bf16 %v4272_v10 }
 0x342   : > { %v4262_v14 = vpop.permute.xlu1 %4261 }
 0x343   : > { %v4264_v21 = vunpack.i.h.bf16 %v4262_v14  ;;  %v4263_v30 = vunpack.i.l.bf16 %v4262_v14 }
 0x344   : > { %v6611_v26 = vpop.permute.xlu2 %4296 }
 0x345   : > { %v2062_v29 = vsel %vm2060_vm1, %v1885_v45, %v4264_v21  ;;  %v2061_v24 = vsel %vm2060_vm1, %v1884_v44, %v4263_v30 }
 0x346   : > { %v2078_v42 = vsel %vm2077_vm10, %v2061_v24, %v4273_v58  ;;  %v2079_v31 = vsel %vm2077_vm10, %v2062_v29, %v4274_v35 }
 0x347   : > { %v2095_v47 = vsel %vm2094_vm11, %v2078_v42, 1.0  ;;  %v2096_v32 = vsel %vm2094_vm11, %v2079_v31, 1.0 }
 0x348   : > { %v6619_v18 = vpack.c.bf16 %v2096_v32, %v2095_v47  ;;  %v4287_v19 = vpop.permute.xlu0 %4286  ;;  %v1545_v47 = vpop.f32.mrf.mxu3 }
 0x349   : > { %v4289_v36 = vunpack.i.h.bf16 %v4287_v19  ;;  %v4288_v38 = vunpack.i.l.bf16 %v4287_v19 }
 0x34a   : > { %v4277_v43 = vpop.permute.xlu1 %4276  ;;  %3800 = vmatmul.msk.bf16.vlgmr.msrb.gmra.mxu2 %vm6615_vm3, %v6619_v18  ;;  %3824 = vmatmul.msk.bf16.vlgmr.msrb.gmra.mxu3 %vm6615_vm3, %v6619_v18 }
 0x34b   : > { %v4279_v2 = vunpack.i.h.bf16 %v4277_v43  ;;  %v4278_v23 = vunpack.i.l.bf16 %v4277_v43  ;;  %3848 = vmatmul.msk.bf16.vlgmr.msrb.gmra.mxu0 %vm6615_vm3, %v6619_v18  ;;  %3872 = vmatmul.msk.bf16.vlgmr.msrb.gmra.mxu1 %vm6615_vm3, %v6619_v18  ;;  %v1870_v22 = vmax.f32 %v6533_v49, %v4288_v38  ;;  %v1871_v10 = vmax.f32 %v6535_v11, %v4289_v36 }
 0x34c   : > { %v4312_v3 = vpop.permute.xlu2 %4311 }
 0x34d   : > { %v1746_v25 = vmax.f32 %v1682_v39, %v4278_v23  ;;  %v1747_v0 = vmax.f32 %v1683_v40, %v4279_v2  ;;  %v4314_v12 = vunpack.i.h.bf16 %v4312_v3  ;;  %v4313_v21 = vunpack.i.l.bf16 %v4312_v3 }
 0x34e   : > { %v1886_v58 = vmax.f32 %v1870_v22, 0.0  ;;  %v1887_v29 = vmax.f32 %v1871_v10, 0.0 }
 0x34f   : > { %v6633_v56 = vmax.f32 %v1746_v25, %v4283_v51  ;;  %v6635_v17 = vmax.f32 %v1747_v0, %v4284_v41  ;;  %v1922_v33 = vmax.f32 %v1746_v25, 0.0  ;;  %v1923_v50 = vmax.f32 %v1747_v0, 0.0 }
 0x350   : > { %v4302_v59 = vpop.permute.xlu0 %4301  ;;  %v6665_v0 = vadd.f32 %v1543_v46, %v1494_v63 }
 0x351   : > { %v1906_v1 = vmax.f32 %v6633_v56, 0.0  ;;  %v1907_v37 = vmax.f32 %v6635_v17, 0.0  ;;  %v4375_v52 = vpack.i.bf16 %v1923_v50, %v1922_v33  ;;  %v4304_v45 = vunpack.i.h.bf16 %v4302_v59 }
 0x352   : > { %v4292_v34 = vpop.permute.xlu1 %4291  ;;  %v4303_v44 = vunpack.i.l.bf16 %v4302_v59 }
 0x353   : > { %v4294_v16 = vunpack.i.h.bf16 %v4292_v34  ;;  %v4293_v5 = vunpack.i.l.bf16 %v4292_v34  ;;  %v4365_v53 = vpack.i.bf16 %v1907_v37, %v1906_v1  ;;  %4376 = vrot.lane.b32.xlu0 %v4375_v52, %s4536_s23 }
 0x354   : > { %v4327_v32 = vpop.permute.xlu2 %4326 }
 0x355   : > { %v1621_v7 = vmax.f32 %v6527_v13, %v4294_v16  ;;  %v1620_v14 = vmax.f32 %v6531_v28, %v4293_v5  ;;  %4366 = vrot.lane.b32.xlu1 %v4365_v53, %s4535_s22  ;;  %v4299_v13 = vunpack.i.h.bf16 %v6611_v26  ;;  %v4298_v28 = vunpack.i.l.bf16 %v6611_v26 }
 0x356   : > { %v6659_v26 = vadd.f32 %v1545_v47, %v1496_v15  ;;  %v4329_v34 = vunpack.i.h.bf16 %v4327_v32  ;;  %v4328_v52 = vunpack.i.l.bf16 %v4327_v32 }
 0x357   : > { %v1684_v30 = vmax.f32 %v1620_v14, %v4303_v44  ;;  %v1685_v35 = vmax.f32 %v1621_v7, %v4304_v45  ;;  %v2063_v39 = vsel %vm2060_vm1, %v1886_v58, %v4298_v28  ;;  %v2064_v40 = vsel %vm2060_vm1, %v1887_v29, %v4299_v13 }
 0x358   : > { %v4317_v24 = vpop.permute.xlu0 %4316  ;;  %v6675_v38 = vpack.i.bf16 %v6659_v26, %v6665_v0 }
 0x359   : > { %v4319_v49 = vunpack.i.h.bf16 %v4317_v24  ;;  %v4318_v42 = vunpack.i.l.bf16 %v4317_v24  ;;  %v1748_v11 = vmax.f32 %v1684_v30, %v4313_v21  ;;  %v1749_v31 = vmax.f32 %v1685_v35, %v4314_v12 }
 0x35a   : > { %v4307_v57 = vpop.permute.xlu1 %4306  ;;  %v1622_v35 = vmax.f32 %v6561_v54, %v4328_v52 }
 0x35b   : > { %v6647_v19 = vmax.f32 %v1748_v11, %v4318_v42  ;;  %v6649_v48 = vmax.f32 %v1749_v31, %v4319_v49  ;;  %v4309_v60 = vunpack.i.h.bf16 %v4307_v57  ;;  %v4308_v43 = vunpack.i.l.bf16 %v4307_v57  ;;  %4391 = vrot.lane.b32.xlu0 %v6539_v4, %s4535_s22 }
 0x35c   : > { %v4342_v46 = vpop.permute.xlu2 %4341  ;;  %v1924_v16 = vmax.f32 %v1748_v11, 0.0  ;;  %v1925_v5 = vmax.f32 %v1749_v31, 0.0 }
 0x35d   : > { %v1908_v2 = vmax.f32 %v6647_v19, 0.0  ;;  %v1909_v23 = vmax.f32 %v6649_v48, 0.0  ;;  %4381 = vrot.lane.b32.xlu1 %v6593_v20, %s4534_s21  ;;  %v2080_v41 = vsel %vm2077_vm10, %v2063_v39, %v4308_v43  ;;  %v2081_v51 = vsel %vm2077_vm10, %v2064_v40, %v4309_v60 }
 0x35e   : > { %v2097_v25 = vsel %vm2094_vm11, %v2080_v41, 1.0  ;;  %v2098_v4 = vsel %vm2094_vm11, %v2081_v51, 1.0  ;;  %v4344_v44 = vunpack.i.h.bf16 %v4342_v46  ;;  %v4343_v7 = vunpack.i.l.bf16 %v4342_v46 }
 0x35f   : > { %v6667_v33 = vpack.c.bf16 %v2098_v4, %v2097_v25  ;;  %v4400_v50 = vpack.i.bf16 %v1909_v23, %v1908_v2  ;;  %v4410_v24 = vpack.i.bf16 %v1925_v5, %v1924_v16 }
 0x361   : > { %4401 = vrot.lane.b32.xlu2 %v4400_v50, %s4535_s22  ;;  %3803 = vmatmul.msk.bf16.gmra.mxu2 %vm6615_vm3, %v6667_v33 }
 0x362   : > { %v4322_v36 = vpop.permute.xlu1 %4321  ;;  %3827 = vmatmul.msk.bf16.gmra.mxu3 %vm6615_vm3, %v6667_v33  ;;  %3851 = vmatmul.msk.bf16.gmra.mxu0 %vm6615_vm3, %v6667_v33 }
 0x363   : > { %v4324_v63 = vunpack.i.h.bf16 %v4322_v36  ;;  %v4323_v59 = vunpack.i.l.bf16 %v4322_v36  ;;  %3875 = vmatmul.msk.bf16.gmra.mxu1 %vm6615_vm3, %v6667_v33  ;;  %4406 = vrot.lane.b32.xlu0 %v6675_v38, %s4531_s7 }
 0x364   : > { %v4357_v4 = vpop.permute.xlu2 %4356 }
 0x365   : > { %v1873_v3 = vmax.f32 %v6559_v61, %v4324_v63  ;;  %v1872_v1 = vmax.f32 %v6557_v6, %v4323_v59  ;;  %4396 = vrot.lane.b32.xlu1 %v6675_v38, %s4532_s18  ;;  %v1623_v6 = vmax.f32 %v6555_v55, %v4329_v34  ;;  %v4359_v63 = vunpack.i.h.bf16 %v4357_v4 }
 0x367   : > { %v1889_v53 = vmax.f32 %v1873_v3, 0.0  ;;  %v1888_v22 = vmax.f32 %v1872_v1, 0.0  ;;  %v1875_v59 = vmax.f32 %v6635_v17, %v4359_v63 }
 0x369   : > { %4416 = vrot.lane.b32.xlu2 %v6675_v38, %s4534_s21  ;;  %v1891_v16 = vmax.f32 %v1875_v59, 0.0 }
 0x36a   : > { %v4337_v30 = vpop.permute.xlu1 %4336 }
 0x36b   : > { %v4339_v58 = vunpack.i.h.bf16 %v4337_v30  ;;  %v4338_v29 = vunpack.i.l.bf16 %v4337_v30  ;;  %4421 = vrot.lane.b32.xlu0 %v6675_v38, %s4533_s19 }
 0x36c   : > { %v4372_v50 = vpop.permute.xlu2 %4371 }
 0x36d   : > { %v4332_v37 = vpop.permute.xlu0 %4331  ;;  %v1686_v42 = vmax.f32 %v1622_v35, %v4338_v29  ;;  %v1687_v11 = vmax.f32 %v1623_v6, %v4339_v58  ;;  %4411 = vrot.lane.b32.xlu1 %v4410_v24, %s4536_s23  ;;  %v4373_v30 = vunpack.i.l.bf16 %v4372_v50 }
 0x36e   : > { %v4334_v10 = vunpack.i.h.bf16 %v4332_v37  ;;  %v4333_v45 = vunpack.i.l.bf16 %v4332_v37 }
 0x370   : > { %v2065_v14 = vsel %vm2060_vm1, %v1888_v22, %v4333_v45  ;;  %v2066_v61 = vsel %vm2060_vm1, %v1889_v53, %v4334_v10 }
 0x371   : > { %v2082_v12 = vsel %vm2077_vm10, %v2065_v14, %v4343_v7  ;;  %v2083_v21 = vsel %vm2077_vm10, %v2066_v61, %v4344_v44  ;;  %v6742_v7 = vld [vmem:[%s7268_s3] sm:$0xff] }
 0x372   : > { %v2099_v49 = vsel %vm2094_vm11, %v2082_v12, 1.0  ;;  %v2100_v55 = vsel %vm2094_vm11, %v2083_v21, 1.0  ;;  %v4352_v60 = vpop.permute.xlu1 %4351  ;;  %v6749_v21 = vperm.slane %v6742_v7, 0 }
 0x373   : > { %v6705_v47 = vpack.c.bf16 %v2100_v55, %v2099_v49  ;;  %v4354_v43 = vunpack.i.h.bf16 %v4352_v60  ;;  %v4353_v2 = vunpack.i.l.bf16 %v4352_v60  ;;  %v6757_v49 = vperm.slane %v6742_v7, 2 }
 0x374   : > { %v4387_v1 = vpop.permute.xlu2 %4386 }
 0x375   : > { %v4347_v31 = vpop.permute.xlu0 %4346  ;;  %3806 = vmatmul.msk.bf16.gmra.mxu2 %vm6615_vm3, %v6705_v47  ;;  %3830 = vmatmul.msk.bf16.gmra.mxu3 %vm6615_vm3, %v6705_v47 }
 0x376   : > { %v4349_v15 = vunpack.i.h.bf16 %v4347_v31  ;;  %v4348_v57 = vunpack.i.l.bf16 %v4347_v31  ;;  %3854 = vmatmul.msk.bf16.gmra.mxu0 %vm6615_vm3, %v6705_v47  ;;  %3878 = vmatmul.msk.bf16.gmra.mxu1 %vm6615_vm3, %v6705_v47 }
 0x377   : > { %4426 = vrot.lane.b32.xlu1 %v6573_v9, %s4535_s22  ;;  %v4358_v9 = vunpack.i.l.bf16 %v4357_v4 }
 0x378   : > { %v1750_v54 = vmax.f32 %v1686_v42, %v4348_v57  ;;  %v1751_v13 = vmax.f32 %v1687_v11, %v4349_v15 }
 0x379   : > { %v1874_v46 = vmax.f32 %v6633_v56, %v4358_v9 }
 0x37a   : > { %v1926_v28 = vmax.f32 %v1750_v54, 0.0  ;;  %v1927_v32 = vmax.f32 %v1751_v13, 0.0  ;;  %v6719_v39 = vmax.f32 %v1750_v54, %v4353_v2  ;;  %v6721_v40 = vmax.f32 %v1751_v13, %v4354_v43 }
 0x37b   : > { %v1890_v5 = vmax.f32 %v1874_v46, 0.0  ;;  %v4389_v2 = vunpack.i.h.bf16 %v4387_v1 }
 0x37c   : > { %v4435_v23 = vpack.i.bf16 %v1927_v32, %v1926_v28  ;;  %v1910_v41 = vmax.f32 %v6719_v39, 0.0  ;;  %v1911_v51 = vmax.f32 %v6721_v40, 0.0 }
 0x37d   : > { %v4362_v36 = vpop.permute.xlu0 %4361 }
 0x37e   : > { %4436 = vrot.lane.b32.xlu0 %v4435_v23, %s4536_s23  ;;  %v4430_v25 = vpack.i.bf16 %v1911_v51, %v1910_v41  ;;  %v4364_v37 = vunpack.i.h.bf16 %v4362_v36  ;;  %v4363_v34 = vunpack.i.l.bf16 %v4362_v36  ;;  %v4388_v23 = vunpack.i.l.bf16 %v4387_v1 }
 0x37f   : > { %4441 = vrot.lane.b32.xlu1 %v6593_v20, %s4535_s22  ;;  %v6777_v36 = vperm.slane %v6742_v7, 3 }
 0x380   : > { %4431 = vrot.lane.b32.xlu2 %v4430_v25, %s4535_s22  ;;  %v1625_v44 = vmax.f32 %v6583_v62, %v4364_v37  ;;  %v1624_v17 = vmax.f32 %v6587_v27, %v4363_v34  ;;  %v6752_v62 = vperm.slane %v6742_v7, 1  ;;  %v4374_v27 = vunpack.i.h.bf16 %v4372_v50 }
 0x382   : > { %v1688_v57 = vmax.f32 %v1624_v17, %v4373_v30  ;;  %v1689_v54 = vmax.f32 %v1625_v44, %v4374_v27 }
 0x387   : > { %4456 = vrot.lane.b32.xlu1 %v6675_v38, %s4535_s22 }
 0x3bb   : > { %v6759_v31 = vpop.permute.xlu2 %4401 }
 0x3c5   : > { %v4377_v3 = vpop.permute.xlu0 %4376 }
 0x3c6   : > { %v4379_v22 = vunpack.i.h.bf16 %v4377_v3  ;;  %v4378_v38 = vunpack.i.l.bf16 %v4377_v3 }
 0x3c7   : > { %v4367_v52 = vpop.permute.xlu1 %4366 }
 0x3c8   : > { %v4369_v20 = vunpack.i.h.bf16 %v4367_v52  ;;  %v4368_v53 = vunpack.i.l.bf16 %v4367_v52  ;;  %v2627_v56 = vpop.f32.mrf.mxu0  ;;  %v2676_v13 = vpop.f32.mrf.mxu1  ;;  %v3784_v52 = vld [vmem:[#allocation3 + $0x1d0] sm:$0xf] }
 0x3c9   : > { %v2914_v24 = vmax.f32 %v2627_v56, 0.0  ;;  %v2915_v50 = vmax.f32 %v2676_v13, 0.0 }
 0x3ca   : > { %v2067_v10 = vsel %vm2060_vm1, %v1890_v5, %v4368_v53  ;;  %v2068_v45 = vsel %vm2060_vm1, %v1891_v16, %v4369_v20  ;;  %v4070_v20 = vld [vmem:[#allocation3 + $0x1ec] sm:$0xf0]  ;;  %v4066_v53 = vld [vmem:[#allocation3 + $0x1d4] sm:$0xf] }
 0x3cb   : > { %v2084_v14 = vsel %vm2077_vm10, %v2067_v10, %v4378_v38  ;;  %v2085_v61 = vsel %vm2077_vm10, %v2068_v45, %v4379_v22  ;;  %v3060_v41 = vmul.f32 %v6757_v49, %v2914_v24  ;;  %v3061_v22 = vmul.f32 %v6777_v36, %v2915_v50  ;;  %v3786_v45 = vld [vmem:[#allocation3 + $0x1f0] sm:$0xf0] }
 0x3cc   : > { %v2101_v6 = vsel %vm2094_vm11, %v2084_v14, 1.0  ;;  %v2102_v12 = vsel %vm2094_vm11, %v2085_v61, 1.0  ;;  %v3785_v30 = vor.u32 %v4070_v20, %v3784_v52 }
 0x3cd   : > { %v6754_v35 = vpack.c.bf16 %v2102_v12, %v2101_v6  ;;  %v2529_v58 = vpop.f32.mrf.mxu2  ;;  %v2578_v29 = vpop.f32.mrf.mxu3 }
 0x3ce   : > { %v2912_v55 = vmax.f32 %v2529_v58, 0.0  ;;  %v2913_v42 = vmax.f32 %v2578_v29, 0.0  ;;  %v4392_v11 = vpop.permute.xlu0 %4391  ;;  %v4417_v6 = vpop.permute.xlu2 %4416  ;;  %v3789_v58 = vor.u32 %v4066_v53, %v3786_v45  ;;  %2716 = vmatpush.bf16.msra.mxu2 %v3785_v30 }
 0x3cf   : > { %v4382_v15 = vpop.permute.xlu1 %4381  ;;  %3809 = vmatmul.msk.bf16.gmra.mxu2 %vm6615_vm3, %v6754_v35  ;;  %3833 = vmatmul.msk.bf16.gmra.mxu3 %vm6615_vm3, %v6754_v35  ;;  %v4393_v63 = vunpack.i.l.bf16 %v4392_v11  ;;  %v4394_v59 = vunpack.i.h.bf16 %v4392_v11  ;;  %v4418_v11 = vunpack.i.l.bf16 %v4417_v6 }
 0x3d0   : > { %v3058_v28 = vmul.f32 %v6749_v21, %v2912_v55  ;;  %v3059_v32 = vmul.f32 %v6752_v62, %v2913_v42  ;;  %v4384_v60 = vunpack.i.h.bf16 %v4382_v15  ;;  %v4383_v43 = vunpack.i.l.bf16 %v4382_v15  ;;  %3857 = vmatmul.msk.bf16.gmra.mxu0 %vm6615_vm3, %v6754_v35  ;;  %3881 = vmatmul.msk.bf16.gmra.mxu1 %vm6615_vm3, %v6754_v35  ;;  %v6788_v17 = vpop.f32.mrf.mxu0  ;;  %v6790_v29 = vpop.f32.mrf.mxu1 }
 0x3d1   : > { %v1876_v38 = vmax.f32 %v6647_v19, %v4393_v63  ;;  %v1877_v44 = vmax.f32 %v6649_v48, %v4394_v59  ;;  %v4419_v48 = vunpack.i.h.bf16 %v4417_v6  ;;  %2765 = vmatpush.bf16.msra.mxu3 %v3789_v58  ;;  %v4067_v6 = vld [vmem:[#allocation3 + $0x1dc] sm:$0xf] }
 0x3d2   : > { %v3186_v51 = vadd.f32 %v3059_v32, %v3058_v28  ;;  %v1752_v25 = vmax.f32 %v1688_v57, %v4383_v43  ;;  %v1753_v4 = vmax.f32 %v1689_v54, %v4384_v60  ;;  %v3792_v32 = vld [vmem:[#allocation3 + $0x1d8] sm:$0xf] }
 0x3d3   : > { %v1892_v54 = vmax.f32 %v1876_v38, 0.0  ;;  %v1893_v13 = vmax.f32 %v1877_v44, 0.0 }
 0x3d4   : > { %v3187_v9 = vadd.f32 %v3186_v51, %v3060_v41  ;;  %v6779_v46 = vmax.f32 %v1752_v25, %v4388_v23  ;;  %v6781_v3 = vmax.f32 %v1753_v4, %v4389_v2  ;;  %v1928_v37 = vmax.f32 %v1752_v25, 0.0 }
 0x3d5   : > { %v1929_v34 = vmax.f32 %v1753_v4, 0.0  ;;  %v6798_v28 = vpop.f32.mrf.mxu2  ;;  %v6800_v60 = vpop.f32.mrf.mxu3  ;;  %v4404_v41 = vunpack.i.h.bf16 %v6759_v31  ;;  %v4403_v51 = vunpack.i.l.bf16 %v6759_v31 }
 0x3d6   : > { %v1912_v1 = vmax.f32 %v6779_v46, 0.0  ;;  %v1913_v16 = vmax.f32 %v6781_v3, 0.0  ;;  %v4407_v5 = vpop.permute.xlu0 %4406  ;;  %v6794_v42 = vadd.f32 %v3187_v9, %v3061_v22 }
 0x3d7   : > { %v4397_v10 = vpop.permute.xlu1 %4396  ;;  %v4409_v56 = vunpack.i.h.bf16 %v4407_v5  ;;  %v4450_v12 = vpack.i.bf16 %v1929_v34, %v1928_v37  ;;  %v4408_v24 = vunpack.i.l.bf16 %v4407_v5  ;;  %v2070_v5 = vsel %vm2060_vm1, %v1893_v13, %v4404_v41  ;;  %v3754_v13 = vld [vmem:[#allocation3 + $0x1b0] sm:$0xf0]  ;;  %v4059_v41 = vld [vmem:[#allocation3 + $0x19c] sm:$0xf] }
 0x3d8   : > { %v4399_v14 = vunpack.i.h.bf16 %v4397_v10  ;;  %v4398_v61 = vunpack.i.l.bf16 %v4397_v10  ;;  %v4445_v27 = vpack.i.bf16 %v1913_v16, %v1912_v1  ;;  %v2069_v16 = vsel %vm2060_vm1, %v1892_v54, %v4403_v51  ;;  %v3762_v51 = vld [vmem:[#allocation3 + $0x1b8] sm:$0xf0] }
 0x3d9   : > { %4451 = vrot.lane.b32.xlu0 %v4450_v12, %s4536_s23  ;;  %v3794_v12 = vld [vmem:[#allocation3 + $0x1f8] sm:$0xf0] }
 0x3da   : > { %v1627_v55 = vmax.f32 %v6659_v26, %v4399_v14  ;;  %v1626_v19 = vmax.f32 %v6665_v0, %v4398_v61  ;;  %4446 = vrot.lane.b32.xlu2 %v4445_v27, %s4535_s22  ;;  %v4071_v26 = vld [vmem:[#allocation3 + $0x1f4] sm:$0xf0]  ;;  %v3752_v27 = vld [vmem:[#allocation3 + $0x190] sm:$0xf]  ;;  %v6823_v30 = vpop.permute.xlu2 %4431 }
 0x3db   : > { %v3793_v23 = vor.u32 %v4071_v26, %v3792_v32  ;;  %v3760_v32 = vld [vmem:[#allocation3 + $0x198] sm:$0xf] }
 0x3dc   : > { %v1691_v15 = vmax.f32 %v1627_v55, %v4409_v56  ;;  %v1690_v57 = vmax.f32 %v1626_v19, %v4408_v24  ;;  %v3797_v55 = vor.u32 %v4067_v6, %v3794_v12  ;;  %v4062_v19 = vld [vmem:[#allocation3 + $0x1ac] sm:$0xf0]  ;;  %v4051_v6 = vld [vmem:[#allocation3 + $0x15c] sm:$0xf] }
 0x3dd   : > { %2814 = vmatpush.bf16.msra.mxu0 %v3793_v23  ;;  %v3753_v54 = vor.u32 %v4062_v19, %v3752_v27  ;;  %v4063_v23 = vld [vmem:[#allocation3 + $0x1b4] sm:$0xf0] }
 0x3de   : > { %v4422_v0 = vpop.permute.xlu0 %4421  ;;  %v1754_v43 = vmax.f32 %v1690_v57, %v4418_v11  ;;  %v1755_v2 = vmax.f32 %v1691_v15, %v4419_v48  ;;  %v4058_v48 = vld [vmem:[#allocation3 + $0x194] sm:$0xf]  ;;  %2863 = vmatpush.bf16.msra.mxu1 %v3797_v55 }
 0x3df   : > { %v4424_v25 = vunpack.i.h.bf16 %v4422_v0  ;;  %v4423_v4 = vunpack.i.l.bf16 %v4422_v0  ;;  %v4412_v50 = vpop.permute.xlu1 %4411  ;;  %v6804_v59 = vpop.f32.mrf.mxu0  ;;  %2717 = vmatpush.bf16.msra.mxu2 %v3753_v54  ;;  %v3690_v54 = vld [vmem:[#allocation3 + $0x130] sm:$0xf0] }
 0x3e0   : > { %v1930_v63 = vmax.f32 %v1754_v43, 0.0  ;;  %v1931_v9 = vmax.f32 %v1755_v2, 0.0  ;;  %v4414_v37 = vunpack.i.h.bf16 %v4412_v50  ;;  %v4413_v34 = vunpack.i.l.bf16 %v4412_v50  ;;  %v6812_v20 = vpop.f32.mrf.mxu1 }
 0x3e1   : > { %v6806_v52 = vmax.f32 %v1754_v43, %v4423_v4  ;;  %v6808_v1 = vmax.f32 %v1755_v2, %v4424_v25  ;;  %v2930_v11 = vmax.f32 %v6804_v59, 0.0  ;;  %v3757_v2 = vor.u32 %v4058_v48, %v3754_v13  ;;  %v4054_v59 = vld [vmem:[#allocation3 + $0x16c] sm:$0xf0] }
 0x3e2   : > { %v2086_v31 = vsel %vm2077_vm10, %v2069_v16, %v4413_v34  ;;  %v2087_v53 = vsel %vm2077_vm10, %v2070_v5, %v4414_v37  ;;  %v4465_v22 = vpack.i.bf16 %v1931_v9, %v1930_v63  ;;  %v4434_v25 = vunpack.i.h.bf16 %v6823_v30  ;;  %v3720_v9 = vld [vmem:[#allocation3 + $0x150] sm:$0xf] }
 0x3e3   : > { %v1914_v38 = vmax.f32 %v6806_v52, 0.0  ;;  %v1915_v10 = vmax.f32 %v6808_v1, 0.0  ;;  %v2103_v45 = vsel %vm2094_vm11, %v2086_v31, 1.0  ;;  %v2104_v44 = vsel %vm2094_vm11, %v2087_v53, 1.0  ;;  %2766 = vmatpush.bf16.msra.mxu3 %v3757_v2  ;;  %v4050_v53 = vld [vmem:[#allocation3 + $0x154] sm:$0xf] }
 0x3e4   : > { %4466 = vrot.lane.b32.xlu0 %v4465_v22, %s4536_s23  ;;  %v6821_v56 = vpack.c.bf16 %v2104_v44, %v2103_v45  ;;  %v2534_v14 = vpop.f32.mrf.mxu2  ;;  %v4433_v4 = vunpack.i.l.bf16 %v6823_v30  ;;  %v2931_v37 = vmax.f32 %v6812_v20, 0.0  ;;  %v3761_v31 = vor.u32 %v4063_v23, %v3760_v32  ;;  %v3722_v22 = vld [vmem:[#allocation3 + $0x170] sm:$0xf0]  ;;  %v3730_v30 = vld [vmem:[#allocation3 + $0x178] sm:$0xf0] }
 0x3e5   : > { %v4460_v61 = vpack.i.bf16 %v1915_v10, %v1914_v38  ;;  %v2928_v58 = vmax.f32 %v2534_v14, 0.0  ;;  %v2583_v24 = vpop.f32.mrf.mxu3  ;;  %v3076_v38 = vmul.f32 %v6757_v49, %v2930_v11  ;;  %v3765_v45 = vor.u32 %v4059_v41, %v3762_v51  ;;  %v3728_v14 = vld [vmem:[#allocation3 + $0x158] sm:$0xf] }
 0x3e6   : > { %v2929_v15 = vmax.f32 %v2583_v24, 0.0  ;;  %3812 = vmatmul.msk.bf16.gmra.mxu2 %vm6615_vm3, %v6821_v56  ;;  %3836 = vmatmul.msk.bf16.gmra.mxu3 %vm6615_vm3, %v6821_v56  ;;  %v3721_v44 = vor.u32 %v4054_v59, %v3720_v9  ;;  %v3733_v11 = vor.u32 %v4051_v6, %v3730_v30  ;;  %v4047_v51 = vld [vmem:[#allocation3 + $0x134] sm:$0xf0]  ;;  %v3656_v9 = vld [vmem:[#allocation3 + $0xd0] sm:$0xf] }
 0x3e7   : > { %4461 = vrot.lane.b32.xlu2 %v4460_v61, %s4535_s22  ;;  %v3074_v26 = vmul.f32 %v6749_v21, %v2928_v58  ;;  %3860 = vmatmul.msk.bf16.gmra.mxu0 %vm6615_vm3, %v6821_v56  ;;  %v6844_v34 = vpop.f32.mrf.mxu0  ;;  %v4055_v61 = vld [vmem:[#allocation3 + $0x174] sm:$0xf0]  ;;  %v3688_v58 = vld [vmem:[#allocation3 + $0x110] sm:$0xf] }
 0x3e8   : > { %v3075_v50 = vmul.f32 %v6752_v62, %v2929_v15  ;;  %3884 = vmatmul.msk.bf16.gmra.mxu1 %vm6615_vm3, %v6821_v56  ;;  %v6849_v20 = vpop.f32.mrf.mxu1  ;;  %2815 = vmatpush.bf16.msra.mxu0 %v3761_v31  ;;  %v3729_v48 = vor.u32 %v4055_v61, %v3728_v14  ;;  %v4046_v15 = vld [vmem:[#allocation3 + $0x12c] sm:$0xf0] }
 0x3e9   : > { %v4427_v57 = vpop.permute.xlu1 %4426  ;;  %2718 = vmatpush.bf16.msra.mxu2 %v3721_v44  ;;  %2864 = vmatpush.bf16.msra.mxu1 %v3765_v45  ;;  %v4038_v59 = vld [vmem:[#allocation3 + $0xec] sm:$0xf0] }
 0x3ea   : > { %v4429_v0 = vunpack.i.h.bf16 %v4427_v57  ;;  %v4428_v43 = vunpack.i.l.bf16 %v4427_v57  ;;  %v3204_v10 = vadd.f32 %v3075_v50, %v3074_v26  ;;  %v4042_v57 = vld [vmem:[#allocation3 + $0x114] sm:$0xf]  ;;  %v4043_v50 = vld [vmem:[#allocation3 + $0x11c] sm:$0xf] }
 0x3eb   : > { %v3693_v41 = vor.u32 %v4042_v57, %v3690_v54  ;;  %v3664_v57 = vld [vmem:[#allocation3 + $0xd8] sm:$0xf] }
 0x3ec   : > { %v1879_v16 = vmax.f32 %v6721_v40, %v4429_v0  ;;  %v1878_v5 = vmax.f32 %v6719_v39, %v4428_v43  ;;  %v3725_v39 = vor.u32 %v4050_v53, %v3722_v22  ;;  %v3205_v24 = vadd.f32 %v3204_v10, %v3076_v38  ;;  %v6851_v19 = vpop.f32.mrf.mxu2  ;;  %v3696_v43 = vld [vmem:[#allocation3 + $0x118] sm:$0xf]  ;;  %2816 = vmatpush.bf16.msra.mxu0 %v3729_v48 }
 0x3ed   : > { %v6855_v26 = vpop.f32.mrf.mxu3  ;;  %v3689_v0 = vor.u32 %v4046_v15, %v3688_v58  ;;  %2865 = vmatpush.bf16.msra.mxu1 %v3733_v11  ;;  %v3697_v53 = vor.u32 %v4047_v51, %v3696_v43  ;;  %v3657_v38 = vor.u32 %v4038_v59, %v3656_v9  ;;  %v4039_v54 = vld [vmem:[#allocation3 + $0xf4] sm:$0xf0] }
 0x3ee   : > { %v1895_v27 = vmax.f32 %v1879_v16, 0.0  ;;  %v1894_v40 = vmax.f32 %v1878_v5, 0.0  ;;  %2767 = vmatpush.bf16.msra.mxu3 %v3725_v39  ;;  %v3658_v16 = vld [vmem:[#allocation3 + $0xf0] sm:$0xf0]  ;;  %v3632_v9 = vld [vmem:[#allocation3 + $0x98] sm:$0xf] }
 0x3ef   : > { %2719 = vmatpush.bf16.msra.mxu2 %v3689_v0  ;;  %v3666_v0 = vld [vmem:[#allocation3 + $0xf8] sm:$0xf0]  ;;  %v4031_v59 = vld [vmem:[#allocation3 + $0xb4] sm:$0xf0] }
 0x3f0   : > { %v4437_v63 = vpop.permute.xlu0 %4436  ;;  %v2071_v13 = vsel %vm2060_vm1, %v1894_v40, %v4433_v4  ;;  %v2072_v32 = vsel %vm2060_vm1, %v1895_v27, %v4434_v25  ;;  %v3077_v4 = vmul.f32 %v6777_v36, %v2931_v37  ;;  %v4034_v25 = vld [vmem:[#allocation3 + $0xd4] sm:$0xf]  ;;  %2817 = vmatpush.bf16.msra.mxu0 %v3697_v53  ;;  %v4022_v53 = vld [vmem:[#allocation3 + $0x6c] sm:$0xf0] }
 0x3f1   : > { %v4439_v12 = vunpack.i.h.bf16 %v4437_v63  ;;  %v4438_v55 = vunpack.i.l.bf16 %v4437_v63  ;;  %v3698_v63 = vld [vmem:[#allocation3 + $0x138] sm:$0xf0]  ;;  %v3661_v45 = vor.u32 %v4034_v25, %v3658_v16  ;;  %v3633_v25 = vor.u32 %v4031_v59, %v3632_v9 }
 0x3f2   : > { %2768 = vmatpush.bf16.msra.mxu3 %v3693_v41  ;;  %v3701_v22 = vor.u32 %v4043_v50, %v3698_v63  ;;  %v6862_v44 = vadd.f32 %v3205_v24, %v3077_v4  ;;  %v4026_v41 = vld [vmem:[#allocation3 + $0x94] sm:$0xf]  ;;  %v4027_v4 = vld [vmem:[#allocation3 + $0x9c] sm:$0xf] }
 0x3f3   : > { %v2088_v2 = vsel %vm2077_vm10, %v2071_v13, %v4438_v55  ;;  %v2089_v23 = vsel %vm2077_vm10, %v2072_v32, %v4439_v12  ;;  %v2637_v10 = vpop.f32.mrf.mxu0  ;;  %2720 = vmatpush.bf16.msra.mxu2 %v3657_v38  ;;  %v2686_v61 = vpop.f32.mrf.mxu1  ;;  %v4035_v13 = vld [vmem:[#allocation3 + $0xdc] sm:$0xf]  ;;  %v3665_v32 = vor.u32 %v4039_v54, %v3664_v57  ;;  %v3626_v50 = vld [vmem:[#allocation3 + $0xb0] sm:$0xf0] }
 0x3f4   : > { %v2105_v5 = vsel %vm2094_vm11, %v2088_v2, 1.0  ;;  %v2106_v31 = vsel %vm2094_vm11, %v2089_v23, 1.0  ;;  %2866 = vmatpush.bf16.msra.mxu1 %v3701_v22  ;;  %v2946_v27 = vmax.f32 %v2637_v10, 0.0  ;;  %v2947_v30 = vmax.f32 %v2686_v61, 0.0  ;;  %v3624_v2 = vld [vmem:[#allocation3 + $0x90] sm:$0xf] }
 0x3f5   : > { %v6864_v14 = vpack.c.bf16 %v2106_v31, %v2105_v5  ;;  %v3669_v43 = vor.u32 %v4035_v13, %v3666_v0  ;;  %2818 = vmatpush.bf16.msra.mxu0 %v3665_v32  ;;  %v4030_v23 = vld [vmem:[#allocation3 + $0xac] sm:$0xf0]  ;;  %v3629_v63 = vor.u32 %v4026_v41, %v3626_v50  ;;  %v3634_v16 = vld [vmem:[#allocation3 + $0xb8] sm:$0xf0]  ;;  %v4018_v38 = vld [vmem:[#allocation3 + $0x54] sm:$0xf] }
 0x3f6   : > { %2769 = vmatpush.bf16.msra.mxu3 %v3661_v45  ;;  %v3092_v24 = vmul.f32 %v6757_v49, %v2946_v27  ;;  %v3093_v48 = vmul.f32 %v6777_v36, %v2947_v30  ;;  %v3625_v51 = vor.u32 %v4030_v23, %v3624_v2  ;;  %v3637_v5 = vor.u32 %v4027_v4, %v3634_v16  ;;  %v3592_v31 = vld [vmem:[#allocation3 + $0x50] sm:$0xf]  ;;  %v3594_v10 = vld [vmem:[#allocation3 + $0x70] sm:$0xf0]  ;;  %v3600_v61 = vld [vmem:[#allocation3 + $0x58] sm:$0xf] }
 0x3f7   : > { %3815 = vmatmul.msk.bf16.gmra.mxu2 %vm6615_vm3, %v6864_v14  ;;  %3839 = vmatmul.msk.bf16.gmra.mxu3 %vm6615_vm3, %v6864_v14  ;;  %v3593_v22 = vor.u32 %v4022_v53, %v3592_v31  ;;  %v3597_v45 = vor.u32 %v4018_v38, %v3594_v10  ;;  %v4010_v0 = vld [vmem:[#allocation3 + $0x14] sm:$0xf] }
 0x3f8   : > { %v2539_v37 = vpop.f32.mrf.mxu2  ;;  %v2588_v12 = vpop.f32.mrf.mxu3  ;;  %3863 = vmatmul.msk.bf16.gmra.mxu0 %vm6615_vm3, %v6864_v14  ;;  %3887 = vmatmul.msk.bf16.gmra.mxu1 %vm6615_vm3, %v6864_v14 }
 0x3f9   : > { %v2944_v6 = vmax.f32 %v2539_v37, 0.0  ;;  %v2945_v40 = vmax.f32 %v2588_v12, 0.0  ;;  %2867 = vmatpush.bf16.msra.mxu1 %v3669_v43  ;;  %2721 = vmatpush.bf16.msra.mxu2 %v3625_v51  ;;  %v4442_v37 = vpop.permute.xlu1 %4441  ;;  %v4019_v12 = vld [vmem:[#allocation3 + $0x5c] sm:$0xf]  ;;  %v3562_v43 = vld [vmem:[#allocation3 + $0x30] sm:$0xf0] }
 0x3fa   : > { %2770 = vmatpush.bf16.msra.mxu3 %v3629_v63  ;;  %2819 = vmatpush.bf16.msra.mxu0 %v3633_v25  ;;  %v4444_v30 = vunpack.i.h.bf16 %v4442_v37  ;;  %v3565_v41 = vor.u32 %v4010_v0, %v3562_v43 }
 0x3fb   : > { %v3090_v39 = vmul.f32 %v6749_v21, %v2944_v6  ;;  %v3091_v58 = vmul.f32 %v6752_v62, %v2945_v40  ;;  %v4023_v6 = vld [vmem:[#allocation3 + $0x74] sm:$0xf0]  ;;  %v3602_v40 = vld [vmem:[#allocation3 + $0x78] sm:$0xf0]  ;;  %v6888_v32 = vpop.f32.mrf.mxu1 }
 0x3fc   : > { %v3601_v27 = vor.u32 %v4023_v6, %v3600_v61  ;;  %v1881_v54 = vmax.f32 %v6781_v3, %v4444_v30  ;;  %v3568_v30 = vld [vmem:[#allocation3 + $0x18] sm:$0xf] }
 0x3fd   : > { %v3222_v55 = vadd.f32 %v3091_v58, %v3090_v39  ;;  %2868 = vmatpush.bf16.msra.mxu1 %v3637_v5  ;;  %2722 = vmatpush.bf16.msra.mxu2 %v3593_v22  ;;  %v3605_v39 = vor.u32 %v4019_v12, %v3602_v40  ;;  %v4443_v58 = vunpack.i.l.bf16 %v4442_v37 }
 0x3fe   : > { %2771 = vmatpush.bf16.msra.mxu3 %v3597_v45  ;;  %2820 = vmatpush.bf16.msra.mxu0 %v3601_v27  ;;  %v1897_v9 = vmax.f32 %v1881_v54, 0.0 }
 0x3ff   : > { %v3223_v11 = vadd.f32 %v3222_v55, %v3092_v24  ;;  %v3560_v24 = vld [vmem:[#allocation3 + $0x10] sm:$0xf]  ;;  %v1880_v13 = vmax.f32 %v6779_v46, %v4443_v58  ;;  %v4015_v58 = vld [vmem:[#allocation3 + $0x34] sm:$0xf0] }
 0x400   : > { %v4014_v55 = vld [vmem:[#allocation3 + $0x2c] sm:$0xf0]  ;;  %v6890_v2 = vpop.f32.mrf.mxu2  ;;  %v6892_v23 = vpop.f32.mrf.mxu3  ;;  %v3569_v54 = vor.u32 %v4015_v58, %v3568_v30 }
 0x401   : > { %v6882_v15 = vadd.f32 %v3223_v11, %v3093_v48  ;;  %2869 = vmatpush.bf16.msra.mxu1 %v3605_v39  ;;  %v3561_v48 = vor.u32 %v4014_v55, %v3560_v24  ;;  %v6884_v11 = vpop.f32.mrf.mxu0  ;;  %v4457_v51 = vpop.permute.xlu1 %4456  ;;  %v1896_v59 = vmax.f32 %v1880_v13, 0.0  ;;  %v4011_v24 = vld [vmem:[#allocation3 + $0x1c] sm:$0xf] }
 0x402   : > { %2772 = vmatpush.bf16.msra.mxu3 %v3565_v41  ;;  %v4459_v25 = vunpack.i.h.bf16 %v4457_v51  ;;  %v4458_v3 = vunpack.i.l.bf16 %v4457_v51  ;;  %v3570_v13 = vld [vmem:[#allocation3 + $0x38] sm:$0xf0]  ;;  %2821 = vmatpush.bf16.msra.mxu0 %v3569_v54 }
 0x403   : > { %2723 = vmatpush.bf16.msra.mxu2 %v3561_v48 }
 0x404   : > { %v1882_v6 = vmax.f32 %v6806_v52, %v4458_v3  ;;  %v1883_v12 = vmax.f32 %v6808_v1, %v4459_v25  ;;  %v3573_v52 = vor.u32 %v4011_v24, %v3570_v13 }
 0x406   : > { %2870 = vmatpush.bf16.msra.mxu1 %v3573_v52 }
 0x434   : > { %v4447_v57 = vpop.permute.xlu2 %4446 }
 0x435   : > { %v4449_v50 = vunpack.i.h.bf16 %v4447_v57  ;;  %v4448_v63 = vunpack.i.l.bf16 %v4447_v57 }
 0x437   : > { %v2074_v5 = vsel %vm2060_vm1, %v1897_v9, %v4449_v50  ;;  %v2073_v31 = vsel %vm2060_vm1, %v1896_v59, %v4448_v63  ;;  %v1898_v50 = vmax.f32 %v1882_v6, 0.0  ;;  %v1899_v63 = vmax.f32 %v1883_v12, 0.0 }
 0x441   : > { %v4462_v10 = vpop.permute.xlu2 %4461 }
 0x442   : > { %v4464_v0 = vunpack.i.h.bf16 %v4462_v10  ;;  %v4463_v43 = vunpack.i.l.bf16 %v4462_v10 }
 0x44b   : > { %v4452_v4 = vpop.permute.xlu0 %4451 }
 0x44c   : > { %v4454_v16 = vunpack.i.h.bf16 %v4452_v4  ;;  %v4453_v46 = vunpack.i.l.bf16 %v4452_v4 }
 0x44d   : > { %v2642_v38 = vpop.f32.mrf.mxu0  ;;  %v2691_v61 = vpop.f32.mrf.mxu1 }
 0x44e   : > { %v2090_v53 = vsel %vm2077_vm10, %v2073_v31, %v4453_v46  ;;  %v2091_v22 = vsel %vm2077_vm10, %v2074_v5, %v4454_v16  ;;  %v2962_v55 = vmax.f32 %v2642_v38, 0.0  ;;  %v2963_v1 = vmax.f32 %v2691_v61, 0.0 }
 0x44f   : > { %v2107_v45 = vsel %vm2094_vm11, %v2090_v53, 1.0  ;;  %v2108_v37 = vsel %vm2094_vm11, %v2091_v22, 1.0  ;;  %v2076_v16 = vsel %vm2060_vm1, %v1899_v63, %v4464_v0  ;;  %v2075_v46 = vsel %vm2060_vm1, %v1898_v50, %v4463_v43 }
 0x450   : > { %v6902_v27 = vpack.c.bf16 %v2108_v37, %v2107_v45  ;;  %v3108_v59 = vmul.f32 %v6757_v49, %v2962_v55  ;;  %v3109_v5 = vmul.f32 %v6777_v36, %v2963_v1 }
 0x452   : > { %v2544_v40 = vpop.f32.mrf.mxu2  ;;  %v2593_v39 = vpop.f32.mrf.mxu3  ;;  %3818 = vmatmul.msk.bf16.gmra.mxu2 %vm6615_vm3, %v6902_v27  ;;  %3842 = vmatmul.msk.bf16.gmra.mxu3 %vm6615_vm3, %v6902_v27 }
 0x453   : > { %v2960_v48 = vmax.f32 %v2544_v40, 0.0  ;;  %v2961_v57 = vmax.f32 %v2593_v39, 0.0  ;;  %3866 = vmatmul.msk.bf16.gmra.mxu0 %vm6615_vm3, %v6902_v27  ;;  %3890 = vmatmul.msk.bf16.gmra.mxu1 %vm6615_vm3, %v6902_v27 }
 0x455   : > { %v3106_v41 = vmul.f32 %v6749_v21, %v2960_v48  ;;  %v3107_v51 = vmul.f32 %v6752_v62, %v2961_v57  ;;  %v6930_v61 = vpop.f32.mrf.mxu0  ;;  %v6932_v6 = vpop.f32.mrf.mxu1 }
 0x456   : > { %v4467_v9 = vpop.permute.xlu0 %4466 }
 0x457   : > { %v3240_v4 = vadd.f32 %v3107_v51, %v3106_v41  ;;  %v4469_v25 = vunpack.i.h.bf16 %v4467_v9  ;;  %v4468_v3 = vunpack.i.l.bf16 %v4467_v9 }
 0x459   : > { %v3241_v31 = vadd.f32 %v3240_v4, %v3108_v59  ;;  %v2092_v53 = vsel %vm2077_vm10, %v2075_v46, %v4468_v3  ;;  %v2093_v22 = vsel %vm2077_vm10, %v2076_v16, %v4469_v25 }
 0x45a   : > { %v2109_v38 = vsel %vm2094_vm11, %v2092_v53, 1.0  ;;  %v2110_v10 = vsel %vm2094_vm11, %v2093_v22, 1.0  ;;  %v6934_v12 = vpop.f32.mrf.mxu2  ;;  %v6936_v40 = vpop.f32.mrf.mxu3 }
 0x45b   : > { %v6926_v45 = vpack.c.bf16 %v2110_v10, %v2109_v38  ;;  %v6928_v37 = vadd.f32 %v3241_v31, %v3109_v5 }
 0x462   : > { %3821 = vmatmul.msk.bf16.gmra.mxu2 %vm6615_vm3, %v6926_v45  ;;  %3845 = vmatmul.msk.bf16.gmra.mxu3 %vm6615_vm3, %v6926_v45 }
 0x463   : > { %3869 = vmatmul.msk.bf16.gmra.mxu0 %vm6615_vm3, %v6926_v45  ;;  %3893 = vmatmul.msk.bf16.gmra.mxu1 %vm6615_vm3, %v6926_v45 }
 0x464   : > { %v2647_v39 = vpop.f32.mrf.mxu0 }
 0x465   : > { %v2696_v30 = vpop.f32.mrf.mxu1  ;;  %v2978_v48 = vmax.f32 %v2647_v39, 0.0 }
 0x466   : > { %v2979_v13 = vmax.f32 %v2696_v30, 0.0 }
 0x467   : > { %v3124_v52 = vmul.f32 %v6757_v49, %v2978_v48 }
 0x468   : > { %v3125_v51 = vmul.f32 %v6777_v36, %v2979_v13 }
 0x469   : > { %v2549_v58 = vpop.f32.mrf.mxu2  ;;  %v2598_v55 = vpop.f32.mrf.mxu3 }
 0x46a   : > { %v2976_v24 = vmax.f32 %v2549_v58, 0.0  ;;  %v2977_v57 = vmax.f32 %v2598_v55, 0.0 }
 0x46c   : > { %v3122_v54 = vmul.f32 %v6749_v21, %v2976_v24  ;;  %v3123_v0 = vmul.f32 %v6752_v62, %v2977_v57  ;;  %v2649_v43 = vpop.f32.mrf.mxu0 }
 0x46d   : > { %v2698_v41 = vpop.f32.mrf.mxu1  ;;  %v2986_v4 = vmax.f32 %v2649_v43, 0.0 }
 0x46e   : > { %v3258_v1 = vadd.f32 %v3123_v0, %v3122_v54  ;;  %v2987_v46 = vmax.f32 %v2698_v41, 0.0 }
 0x46f   : > { %v3132_v31 = vmul.f32 %v6757_v49, %v2986_v4 }
 0x470   : > { %v3259_v50 = vadd.f32 %v3258_v1, %v3124_v52  ;;  %v3133_v38 = vmul.f32 %v6777_v36, %v2987_v46 }
 0x471   : > { %v2551_v63 = vpop.f32.mrf.mxu2  ;;  %v2600_v59 = vpop.f32.mrf.mxu3 }
 0x472   : > { %v2984_v9 = vmax.f32 %v2551_v63, 0.0  ;;  %v2985_v25 = vmax.f32 %v2600_v59, 0.0  ;;  %3896 = vmatmul.msk.bf16.vlgmr.msra.gmra.mxu2 %vm6615_vm3, %v6619_v18  ;;  %3920 = vmatmul.msk.bf16.vlgmr.msra.gmra.mxu3 %vm6615_vm3, %v6619_v18  ;;  %v6960_v3 = vadd.f32 %v3259_v50, %v3125_v51 }
 0x473   : > { %3944 = vmatmul.msk.bf16.vlgmr.msra.gmra.mxu0 %vm6615_vm3, %v6619_v18  ;;  %3968 = vmatmul.msk.bf16.vlgmr.msra.gmra.mxu1 %vm6615_vm3, %v6619_v18 }
 0x474   : > { %v3130_v16 = vmul.f32 %v6749_v21, %v2984_v9  ;;  %v3131_v5 = vmul.f32 %v6752_v62, %v2985_v25 }
 0x475   : > { %v2652_v22 = vpop.f32.mrf.mxu0  ;;  %v2701_v30 = vpop.f32.mrf.mxu1 }
 0x476   : > { %v3267_v53 = vadd.f32 %v3131_v5, %v3130_v16  ;;  %v2994_v55 = vmax.f32 %v2652_v22, 0.0  ;;  %v2995_v54 = vmax.f32 %v2701_v30, 0.0 }
 0x478   : > { %v3268_v10 = vadd.f32 %v3267_v53, %v3132_v31  ;;  %v3140_v0 = vmul.f32 %v6757_v49, %v2994_v55  ;;  %v3141_v52 = vmul.f32 %v6777_v36, %v2995_v54 }
 0x47a   : > { %v2554_v39 = vpop.f32.mrf.mxu2  ;;  %v2603_v24 = vpop.f32.mrf.mxu3  ;;  %v6972_v57 = vadd.f32 %v3268_v10, %v3133_v38 }
 0x47b   : > { %v2992_v58 = vmax.f32 %v2554_v39, 0.0  ;;  %v2993_v48 = vmax.f32 %v2603_v24, 0.0 }
 0x47d   : > { %v3138_v18 = vmul.f32 %v6749_v21, %v2992_v58  ;;  %v3139_v13 = vmul.f32 %v6752_v62, %v2993_v48 }
 0x47f   : > { %v3276_v43 = vadd.f32 %v3139_v13, %v3138_v18 }
 0x481   : > { %v3277_v1 = vadd.f32 %v3276_v43, %v3140_v0 }
 0x482   : > { %3899 = vmatmul.msk.bf16.gmra.mxu2 %vm6615_vm3, %v6667_v33  ;;  %3923 = vmatmul.msk.bf16.gmra.mxu3 %vm6615_vm3, %v6667_v33 }
 0x483   : > { %v6984_v41 = vadd.f32 %v3277_v1, %v3141_v52  ;;  %3947 = vmatmul.msk.bf16.gmra.mxu0 %vm6615_vm3, %v6667_v33  ;;  %3971 = vmatmul.msk.bf16.gmra.mxu1 %vm6615_vm3, %v6667_v33  ;;  %v7040_v33 = vpop.f32.mrf.mxu0 }
 0x492   : > { %3902 = vmatmul.msk.bf16.gmra.mxu2 %vm6615_vm3, %v6705_v47  ;;  %3926 = vmatmul.msk.bf16.gmra.mxu3 %vm6615_vm3, %v6705_v47 }
 0x493   : > { %3950 = vmatmul.msk.bf16.gmra.mxu0 %vm6615_vm3, %v6705_v47  ;;  %3974 = vmatmul.msk.bf16.gmra.mxu1 %vm6615_vm3, %v6705_v47  ;;  %v7042_v47 = vpop.f32.mrf.mxu1 }
 0x4a2   : > { %3905 = vmatmul.msk.bf16.gmra.mxu2 %vm6615_vm3, %v6754_v35  ;;  %3929 = vmatmul.msk.bf16.gmra.mxu3 %vm6615_vm3, %v6754_v35 }
 0x4a3   : > { %3953 = vmatmul.msk.bf16.gmra.mxu0 %vm6615_vm3, %v6754_v35  ;;  %3977 = vmatmul.msk.bf16.gmra.mxu1 %vm6615_vm3, %v6754_v35  ;;  %v7044_v35 = vpop.f32.mrf.mxu2 }
 0x4b2   : > { %3908 = vmatmul.msk.bf16.gmra.mxu2 %vm6615_vm3, %v6821_v56  ;;  %3932 = vmatmul.msk.bf16.gmra.mxu3 %vm6615_vm3, %v6821_v56 }
 0x4b3   : > { %3956 = vmatmul.msk.bf16.gmra.mxu0 %vm6615_vm3, %v6821_v56  ;;  %3980 = vmatmul.msk.bf16.gmra.mxu1 %vm6615_vm3, %v6821_v56  ;;  %v7046_v56 = vpop.f32.mrf.mxu3 }
 0x4c2   : > { %3911 = vmatmul.msk.bf16.gmra.mxu2 %vm6615_vm3, %v6864_v14  ;;  %3935 = vmatmul.msk.bf16.gmra.mxu3 %vm6615_vm3, %v6864_v14 }
 0x4c3   : > { %3959 = vmatmul.msk.bf16.gmra.mxu0 %vm6615_vm3, %v6864_v14  ;;  %3983 = vmatmul.msk.bf16.gmra.mxu1 %vm6615_vm3, %v6864_v14 }
 0x4d0   : > { %v2657_v51 = vpop.f32.mrf.mxu0  ;;  %v2706_v50 = vpop.f32.mrf.mxu1 }
 0x4d1   : > { %v3010_v9 = vmax.f32 %v2657_v51, 0.0  ;;  %v3011_v25 = vmax.f32 %v2706_v50, 0.0 }
 0x4d2   : > { %3914 = vmatmul.msk.bf16.gmra.mxu2 %vm6615_vm3, %v6902_v27  ;;  %3938 = vmatmul.msk.bf16.gmra.mxu3 %vm6615_vm3, %v6902_v27 }
 0x4d3   : > { %3962 = vmatmul.msk.bf16.gmra.mxu0 %vm6615_vm3, %v6902_v27  ;;  %3986 = vmatmul.msk.bf16.gmra.mxu1 %vm6615_vm3, %v6902_v27  ;;  %v3156_v53 = vmul.f32 %v6757_v49, %v3010_v9  ;;  %v3157_v38 = vmul.f32 %v6777_v36, %v3011_v25 }
 0x4d5   : > { %v2559_v14 = vpop.f32.mrf.mxu2  ;;  %v2608_v63 = vpop.f32.mrf.mxu3 }
 0x4d6   : > { %v3008_v59 = vmax.f32 %v2559_v14, 0.0  ;;  %v3009_v4 = vmax.f32 %v2608_v63, 0.0 }
 0x4d8   : > { %v3154_v16 = vmul.f32 %v6749_v21, %v3008_v59  ;;  %v3155_v46 = vmul.f32 %v6752_v62, %v3009_v4  ;;  %v2659_v5 = vpop.f32.mrf.mxu0  ;;  %v2708_v31 = vpop.f32.mrf.mxu1 }
 0x4d9   : > { %v3018_v30 = vmax.f32 %v2659_v5, 0.0  ;;  %v3019_v48 = vmax.f32 %v2708_v31, 0.0 }
 0x4da   : > { %v3294_v22 = vadd.f32 %v3155_v46, %v3154_v16 }
 0x4db   : > { %v3164_v43 = vmul.f32 %v6757_v49, %v3018_v30  ;;  %v3165_v1 = vmul.f32 %v6777_v36, %v3019_v48  ;;  %v2921_v48 = vmax.f32 %v6800_v60, 0.0  ;;  %v2922_v60 = vmax.f32 %v6788_v17, 0.0 }
 0x4dc   : > { %v3295_v10 = vadd.f32 %v3294_v22, %v3156_v53 }
 0x4dd   : > { %v2561_v39 = vpop.f32.mrf.mxu2  ;;  %v2610_v27 = vpop.f32.mrf.mxu3 }
 0x4de   : > { %v3016_v58 = vmax.f32 %v2561_v39, 0.0  ;;  %v3017_v24 = vmax.f32 %v2610_v27, 0.0  ;;  %v7064_v55 = vadd.f32 %v3295_v10, %v3157_v38 }
 0x4e0   : > { %v3162_v18 = vmul.f32 %v6749_v21, %v3016_v58  ;;  %v3163_v54 = vmul.f32 %v6752_v62, %v3017_v24  ;;  %v2662_v13 = vpop.f32.mrf.mxu0  ;;  %v2711_v0 = vpop.f32.mrf.mxu1  ;;  %v2920_v24 = vmax.f32 %v6798_v28, 0.0  ;;  %v7099_v28 = vperm.slane %v6742_v7, 4 }
 0x4e1   : > { %v3026_v63 = vmax.f32 %v2662_v13, 0.0  ;;  %v3027_v25 = vmax.f32 %v2711_v0, 0.0 }
 0x4e2   : > { %v3303_v52 = vadd.f32 %v3163_v54, %v3162_v18  ;;  %3917 = vmatmul.msk.bf16.gmra.mxu2 %vm6615_vm3, %v6926_v45  ;;  %3941 = vmatmul.msk.bf16.gmra.mxu3 %vm6615_vm3, %v6926_v45 }
 0x4e3   : > { %3965 = vmatmul.msk.bf16.gmra.mxu0 %vm6615_vm3, %v6926_v45  ;;  %3989 = vmatmul.msk.bf16.gmra.mxu1 %vm6615_vm3, %v6926_v45  ;;  %v3172_v8 = vmul.f32 %v6757_v49, %v3026_v63  ;;  %v3173_v53 = vmul.f32 %v6777_v36, %v3027_v25 }
 0x4e4   : > { %v3304_v51 = vadd.f32 %v3303_v52, %v3164_v43 }
 0x4e5   : > { %v2564_v50 = vpop.f32.mrf.mxu2  ;;  %v2613_v14 = vpop.f32.mrf.mxu3 }
 0x4e6   : > { %v3024_v9 = vmax.f32 %v2564_v50, 0.0  ;;  %v3025_v59 = vmax.f32 %v2613_v14, 0.0  ;;  %v7082_v4 = vadd.f32 %v3304_v51, %v3165_v1  ;;  %v3066_v51 = vmul.f32 %v6749_v21, %v2920_v24 }
 0x4e7   : > { %v3067_v50 = vmul.f32 %v6752_v62, %v2921_v48 }
 0x4e8   : > { %v3170_v16 = vmul.f32 %v6749_v21, %v3024_v9  ;;  %v3171_v46 = vmul.f32 %v6752_v62, %v3025_v59  ;;  %v2664_v5 = vpop.f32.mrf.mxu0  ;;  %v2713_v31 = vpop.f32.mrf.mxu1 }
 0x4e9   : > { %v3034_v39 = vmax.f32 %v2664_v5, 0.0  ;;  %v3035_v18 = vmax.f32 %v2713_v31, 0.0 }
 0x4ea   : > { %v3312_v45 = vadd.f32 %v3171_v46, %v3170_v16  ;;  %v4475_v46 = vld [vmem:[%s7268_s3] sm:$0xff] }
 0x4eb   : > { %v3180_v52 = vmul.f32 %v6757_v49, %v3034_v39  ;;  %v3181_v14 = vmul.f32 %v6777_v36, %v3035_v18  ;;  %v7105_v5 = vperm.slane %v4475_v46, 5 }
 0x4ec   : > { %v3313_v22 = vadd.f32 %v3312_v45, %v3172_v8  ;;  %v3195_v8 = vadd.f32 %v3067_v50, %v3066_v51 }
 0x4ed   : > { %v2566_v38 = vpop.f32.mrf.mxu2  ;;  %v2615_v10 = vpop.f32.mrf.mxu3 }
 0x4ee   : > { %v3032_v27 = vmax.f32 %v2566_v38, 0.0  ;;  %v3033_v30 = vmax.f32 %v2615_v10, 0.0  ;;  %v7088_v58 = vadd.f32 %v3313_v22, %v3173_v53  ;;  %v7109_v53 = vperm.slane %v4475_v46, 6 }
 0x4ef   : > { %v3068_v38 = vmul.f32 %v6757_v49, %v2922_v60  ;;  %v2923_v10 = vmax.f32 %v6790_v29, 0.0 }
 0x4f0   : > { %v3178_v54 = vmul.f32 %v6749_v21, %v3032_v27  ;;  %v3179_v13 = vmul.f32 %v6752_v62, %v3033_v30  ;;  %v2823_v0 = vpop.f32.mrf.mxu0  ;;  %v2872_v43 = vpop.f32.mrf.mxu1  ;;  %v7114_v27 = vperm.slane %v4475_v46, 7 }
 0x4f1   : > { %v2918_v45 = vmax.f32 %v2823_v0, 0.0  ;;  %v2919_v39 = vmax.f32 %v2872_v43, 0.0  ;;  %v3196_v48 = vadd.f32 %v3195_v8, %v3068_v38  ;;  %v2936_v43 = vmax.f32 %v6851_v19, 0.0 }
 0x4f2   : > { %v3321_v1 = vadd.f32 %v3179_v13, %v3178_v54  ;;  %v3069_v13 = vmul.f32 %v6777_v36, %v2923_v10 }
 0x4f3   : > { %v3064_v18 = vmul.f32 %v7109_v53, %v2918_v45  ;;  %v3082_v45 = vmul.f32 %v6749_v21, %v2936_v43 }
 0x4f4   : > { %v3322_v63 = vadd.f32 %v3321_v1, %v3180_v52  ;;  %v3065_v1 = vmul.f32 %v7114_v27, %v2919_v39 }
 0x4f5   : > { %v2725_v9 = vpop.f32.mrf.mxu2  ;;  %v2774_v59 = vpop.f32.mrf.mxu3 }
 0x4f6   : > { %v2916_v25 = vmax.f32 %v2725_v9, 0.0  ;;  %v2917_v16 = vmax.f32 %v2774_v59, 0.0  ;;  %v7107_v31 = vadd.f32 %v3322_v63, %v3181_v14  ;;  %v3197_v14 = vadd.f32 %v3196_v48, %v3069_v13 }
 0x4f8   : > { %v3062_v7 = vmul.f32 %v7099_v28, %v2916_v25  ;;  %v2825_v22 = vpop.f32.mrf.mxu0  ;;  %v2874_v17 = vpop.f32.mrf.mxu1  ;;  %v3063_v24 = vmul.f32 %v7105_v5, %v2917_v16 }
 0x4f9   : > { %v2926_v63 = vmax.f32 %v2825_v22, 0.0  ;;  %v2927_v16 = vmax.f32 %v2874_v17, 0.0 }
 0x4fa   : > { %v3189_v30 = vadd.f32 %v6794_v42, %v3062_v7  ;;  %v2937_v42 = vmax.f32 %v6855_v26, 0.0  ;;  %v2938_v26 = vmax.f32 %v6844_v34, 0.0 }
 0x4fb   : > { %v3072_v19 = vmul.f32 %v7109_v53, %v2926_v63  ;;  %v3073_v39 = vmul.f32 %v7114_v27, %v2927_v16 }
 0x4fc   : > { %v3190_v54 = vadd.f32 %v3189_v30, %v3063_v24  ;;  %v3083_v7 = vmul.f32 %v6752_v62, %v2937_v42 }
 0x4fd   : > { %v2727_v0 = vpop.f32.mrf.mxu2  ;;  %v2776_v52 = vpop.f32.mrf.mxu3 }
 0x4fe   : > { %v2924_v51 = vmax.f32 %v2727_v0, 0.0  ;;  %v2925_v50 = vmax.f32 %v2776_v52, 0.0  ;;  %v3191_v29 = vadd.f32 %v3190_v54, %v3064_v18  ;;  %v3213_v48 = vadd.f32 %v3083_v7, %v3082_v45 }
 0x500   : > { %v3070_v60 = vmul.f32 %v7099_v28, %v2924_v51  ;;  %v2828_v9 = vpop.f32.mrf.mxu0  ;;  %v2877_v59 = vpop.f32.mrf.mxu1  ;;  %v3192_v25 = vadd.f32 %v3191_v29, %v3065_v1  ;;  %v3071_v8 = vmul.f32 %v7105_v5, %v2925_v50  ;;  %v2939_v1 = vmax.f32 %v6849_v20, 0.0 }
 0x501   : > { %v2934_v18 = vmax.f32 %v2828_v9, 0.0  ;;  %v3084_v51 = vmul.f32 %v6757_v49, %v2938_v26  ;;  %v2935_v50 = vmax.f32 %v2877_v59, 0.0  ;;  %v2952_v59 = vmax.f32 %v6890_v2, 0.0 }
 0x502   : > { %v3198_v46 = vadd.f32 %v3197_v14, %v3070_v60  ;;  %3193 = vadd.xlane.f32.xlu1 %v3192_v25  ;;  %v3085_v63 = vmul.f32 %v6777_v36, %v2939_v1 }
 0x503   : > { %v3214_v43 = vadd.f32 %v3213_v48, %v3084_v51  ;;  %v3080_v14 = vmul.f32 %v7109_v53, %v2934_v18  ;;  %v3081_v25 = vmul.f32 %v7114_v27, %v2935_v50 }
 0x504   : > { %v3199_v38 = vadd.f32 %v3198_v46, %v3071_v8 }
 0x505   : > { %v2730_v22 = vpop.f32.mrf.mxu2  ;;  %v2779_v10 = vpop.f32.mrf.mxu3  ;;  %v3215_v7 = vadd.f32 %v3214_v43, %v3085_v63 }
 0x506   : > { %v2932_v30 = vmax.f32 %v2730_v22, 0.0  ;;  %v2933_v24 = vmax.f32 %v2779_v10, 0.0  ;;  %v3200_v17 = vadd.f32 %v3199_v38, %v3072_v19 }
 0x508   : > { %v3078_v54 = vmul.f32 %v7099_v28, %v2932_v30  ;;  %v2830_v13 = vpop.f32.mrf.mxu0  ;;  %v2879_v0 = vpop.f32.mrf.mxu1  ;;  %v3201_v52 = vadd.f32 %v3200_v17, %v3073_v39  ;;  %v3079_v29 = vmul.f32 %v7105_v5, %v2933_v24  ;;  %v3098_v30 = vmul.f32 %v6749_v21, %v2952_v59 }
 0x509   : > { %v2942_v8 = vmax.f32 %v2830_v13, 0.0  ;;  %v2943_v22 = vmax.f32 %v2879_v0, 0.0 }
 0x50a   : > { %v3207_v34 = vadd.f32 %v6862_v44, %v3078_v54  ;;  %3202 = vadd.xlane.f32.xlu2 %v3201_v52  ;;  %v2953_v44 = vmax.f32 %v6892_v23, 0.0  ;;  %v2954_v23 = vmax.f32 %v6884_v11, 0.0 }
 0x50b   : > { %v3088_v2 = vmul.f32 %v7109_v53, %v2942_v8  ;;  %v3089_v54 = vmul.f32 %v7114_v27, %v2943_v22 }
 0x50c   : > { %v3208_v42 = vadd.f32 %v3207_v34, %v3079_v29  ;;  %v3099_v24 = vmul.f32 %v6752_v62, %v2953_v44 }
 0x50d   : > { %v2732_v60 = vpop.f32.mrf.mxu2  ;;  %v2781_v9 = vpop.f32.mrf.mxu3 }
 0x50e   : > { %v2940_v16 = vmax.f32 %v2732_v60, 0.0  ;;  %v2941_v20 = vmax.f32 %v2781_v9, 0.0  ;;  %v3209_v46 = vadd.f32 %v3208_v42, %v3080_v14  ;;  %v3231_v1 = vadd.f32 %v3099_v24, %v3098_v30 }
 0x50f   : > { %v3100_v14 = vmul.f32 %v6757_v49, %v2954_v23  ;;  %v2955_v42 = vmax.f32 %v6888_v32, 0.0  ;;  %v2968_v32 = vmax.f32 %v6934_v12, 0.0 }
 0x510   : > { %v3086_v45 = vmul.f32 %v7099_v28, %v2940_v16  ;;  %v2833_v19 = vpop.f32.mrf.mxu0  ;;  %v2882_v38 = vpop.f32.mrf.mxu1  ;;  %v3210_v26 = vadd.f32 %v3209_v46, %v3081_v25  ;;  %v3087_v39 = vmul.f32 %v7105_v5, %v2941_v20 }
 0x511   : > { %v2950_v51 = vmax.f32 %v2833_v19, 0.0  ;;  %v2951_v63 = vmax.f32 %v2882_v38, 0.0  ;;  %v3232_v9 = vadd.f32 %v3231_v1, %v3100_v14  ;;  %v3101_v20 = vmul.f32 %v6777_v36, %v2955_v42 }
 0x512   : > { %v3216_v10 = vadd.f32 %v3215_v7, %v3086_v45  ;;  %3211 = vadd.xlane.f32.xlu0 %v3210_v26  ;;  %v2971_v42 = vmax.f32 %v6932_v6, 0.0 }
 0x513   : > { %v3096_v25 = vmul.f32 %v7109_v53, %v2950_v51  ;;  %v3097_v44 = vmul.f32 %v7114_v27, %v2951_v63  ;;  %v3233_v19 = vadd.f32 %v3232_v9, %v3101_v20 }
 0x514   : > { %v3217_v17 = vadd.f32 %v3216_v10, %v3087_v39  ;;  %v3117_v20 = vmul.f32 %v6777_v36, %v2971_v42 }
 0x515   : > { %v2735_v48 = vpop.f32.mrf.mxu2  ;;  %v2784_v18 = vpop.f32.mrf.mxu3 }
 0x516   : > { %v2948_v13 = vmax.f32 %v2735_v48, 0.0  ;;  %v2949_v52 = vmax.f32 %v2784_v18, 0.0  ;;  %v3218_v0 = vadd.f32 %v3217_v17, %v3088_v2  ;;  %v3114_v17 = vmul.f32 %v6749_v21, %v2968_v32 }
 0x518   : > { %v3094_v50 = vmul.f32 %v7099_v28, %v2948_v13  ;;  %v2835_v34 = vpop.f32.mrf.mxu0  ;;  %v2884_v29 = vpop.f32.mrf.mxu1  ;;  %v3219_v43 = vadd.f32 %v3218_v0, %v3089_v54  ;;  %v3095_v60 = vmul.f32 %v7105_v5, %v2949_v52 }
 0x519   : > { %v2958_v38 = vmax.f32 %v2835_v34, 0.0  ;;  %v2959_v30 = vmax.f32 %v2884_v29, 0.0 }
 0x51a   : > { %v3225_v11 = vadd.f32 %v6882_v15, %v3094_v50  ;;  %3220 = vadd.xlane.f32.xlu2 %v3219_v43  ;;  %v2969_v15 = vmax.f32 %v6936_v40, 0.0  ;;  %v2970_v40 = vmax.f32 %v6930_v61, 0.0 }
 0x51b   : > { %v3104_v12 = vmul.f32 %v7109_v53, %v2958_v38  ;;  %v3105_v13 = vmul.f32 %v7114_v27, %v2959_v30 }
 0x51c   : > { %v3226_v16 = vadd.f32 %v3225_v11, %v3095_v60  ;;  %v3115_v23 = vmul.f32 %v6752_v62, %v2969_v15  ;;  %v3116_v63 = vmul.f32 %v6757_v49, %v2970_v40 }
 0x51d   : > { %v2737_v46 = vpop.f32.mrf.mxu2  ;;  %v2786_v59 = vpop.f32.mrf.mxu3 }
 0x51e   : > { %v2956_v8 = vmax.f32 %v2737_v46, 0.0  ;;  %v2957_v45 = vmax.f32 %v2786_v59, 0.0  ;;  %v3227_v7 = vadd.f32 %v3226_v16, %v3096_v25  ;;  %v3249_v51 = vadd.f32 %v3115_v23, %v3114_v17 }
 0x520   : > { %v3102_v26 = vmul.f32 %v7099_v28, %v2956_v8  ;;  %v2838_v22 = vpop.f32.mrf.mxu0  ;;  %v2887_v10 = vpop.f32.mrf.mxu1  ;;  %v3228_v39 = vadd.f32 %v3227_v7, %v3097_v44  ;;  %v3103_v2 = vmul.f32 %v7105_v5, %v2957_v45  ;;  %v3250_v9 = vadd.f32 %v3249_v51, %v3116_v63 }
 0x521   : > { %v2966_v50 = vmax.f32 %v2838_v22, 0.0  ;;  %v2967_v11 = vmax.f32 %v2887_v10, 0.0 }
 0x522   : > { %v3234_v24 = vadd.f32 %v3233_v19, %v3102_v26  ;;  %3229 = vadd.xlane.f32.xlu1 %v3228_v39 }
 0x523   : > { %v3112_v25 = vmul.f32 %v7109_v53, %v2966_v50  ;;  %v3113_v44 = vmul.f32 %v7114_v27, %v2967_v11 }
 0x524   : > { %v3235_v48 = vadd.f32 %v3234_v24, %v3103_v2 }
 0x525   : > { %v2740_v18 = vpop.f32.mrf.mxu2  ;;  %v2789_v54 = vpop.f32.mrf.mxu3 }
 0x526   : > { %v2964_v52 = vmax.f32 %v2740_v18, 0.0  ;;  %v2965_v0 = vmax.f32 %v2789_v54, 0.0  ;;  %v3236_v1 = vadd.f32 %v3235_v48, %v3104_v12 }
 0x528   : > { %v3110_v34 = vmul.f32 %v7099_v28, %v2964_v52  ;;  %v2840_v29 = vpop.f32.mrf.mxu0  ;;  %v2889_v43 = vpop.f32.mrf.mxu1  ;;  %v3237_v14 = vadd.f32 %v3236_v1, %v3105_v13  ;;  %v3111_v60 = vmul.f32 %v7105_v5, %v2965_v0 }
 0x529   : > { %v2974_v7 = vmax.f32 %v2840_v29, 0.0  ;;  %v2975_v26 = vmax.f32 %v2889_v43, 0.0 }
 0x52a   : > { %v3243_v61 = vadd.f32 %v6928_v37, %v3110_v34  ;;  %3238 = vadd.xlane.f32.xlu2 %v3237_v14  ;;  %v3251_v37 = vadd.f32 %v3250_v9, %v3117_v20 }
 0x52b   : > { %v3120_v39 = vmul.f32 %v7109_v53, %v2974_v7  ;;  %v3121_v17 = vmul.f32 %v7114_v27, %v2975_v26 }
 0x52c   : > { %v3244_v16 = vadd.f32 %v3243_v61, %v3111_v60  ;;  %v3000_v61 = vmax.f32 %v7044_v35, 0.0  ;;  %v3001_v60 = vmax.f32 %v7046_v56, 0.0  ;;  %v3002_v56 = vmax.f32 %v7040_v33, 0.0 }
 0x52d   : > { %v2742_v46 = vpop.f32.mrf.mxu2  ;;  %v2791_v59 = vpop.f32.mrf.mxu3 }
 0x52e   : > { %v2972_v8 = vmax.f32 %v2742_v46, 0.0  ;;  %v2973_v6 = vmax.f32 %v2791_v59, 0.0  ;;  %v3245_v45 = vadd.f32 %v3244_v16, %v3112_v25 }
 0x530   : > { %v3118_v32 = vmul.f32 %v7099_v28, %v2972_v8  ;;  %v2843_v19 = vpop.f32.mrf.mxu0  ;;  %v2892_v15 = vpop.f32.mrf.mxu1  ;;  %v3246_v38 = vadd.f32 %v3245_v45, %v3113_v44  ;;  %v3119_v10 = vmul.f32 %v7105_v5, %v2973_v6  ;;  %v3146_v8 = vmul.f32 %v6749_v21, %v3000_v61 }
 0x531   : > { %v2982_v40 = vmax.f32 %v2843_v19, 0.0  ;;  %v2983_v0 = vmax.f32 %v2892_v15, 0.0  ;;  %v3147_v6 = vmul.f32 %v6752_v62, %v3001_v60  ;;  %v3003_v62 = vmax.f32 %v7042_v47, 0.0 }
 0x532   : > { %v3252_v22 = vadd.f32 %v3251_v37, %v3118_v32  ;;  %3247 = vadd.xlane.f32.xlu0 %v3246_v38 }
 0x533   : > { %v3128_v50 = vmul.f32 %v7109_v53, %v2982_v40  ;;  %v3129_v14 = vmul.f32 %v7114_v27, %v2983_v0 }
 0x534   : > { %v3253_v30 = vadd.f32 %v3252_v22, %v3119_v10 }
 0x535   : > { %v2745_v24 = vpop.f32.mrf.mxu2  ;;  %v2794_v2 = vpop.f32.mrf.mxu3 }
 0x536   : > { %v2980_v23 = vmax.f32 %v2745_v24, 0.0  ;;  %v2981_v12 = vmax.f32 %v2794_v2, 0.0  ;;  %v3254_v48 = vadd.f32 %v3253_v30, %v3120_v39  ;;  %v3148_v30 = vmul.f32 %v6757_v49, %v3002_v56 }
 0x538   : > { %v3126_v18 = vmul.f32 %v7099_v28, %v2980_v23  ;;  %v2845_v54 = vpop.f32.mrf.mxu0  ;;  %v2894_v13 = vpop.f32.mrf.mxu1  ;;  %v3255_v52 = vadd.f32 %v3254_v48, %v3121_v17  ;;  %v3127_v51 = vmul.f32 %v7105_v5, %v2981_v12  ;;  %v3149_v48 = vmul.f32 %v6777_v36, %v3003_v62 }
 0x539   : > { %v2990_v9 = vmax.f32 %v2845_v54, 0.0  ;;  %v2991_v46 = vmax.f32 %v2894_v13, 0.0 }
 0x53a   : > { %v3261_v1 = vadd.f32 %v6960_v3, %v3126_v18  ;;  %3256 = vadd.xlane.f32.xlu1 %v3255_v52 }
 0x53b   : > { %v3136_v35 = vmul.f32 %v7109_v53, %v2990_v9  ;;  %v3137_v37 = vmul.f32 %v7114_v27, %v2991_v46 }
 0x53c   : > { %v3262_v34 = vadd.f32 %v3261_v1, %v3127_v51 }
 0x53d   : > { %v2747_v29 = vpop.f32.mrf.mxu2  ;;  %v2796_v43 = vpop.f32.mrf.mxu3 }
 0x53e   : > { %v2988_v42 = vmax.f32 %v2747_v29, 0.0  ;;  %v2989_v63 = vmax.f32 %v2796_v43, 0.0  ;;  %v3263_v11 = vadd.f32 %v3262_v34, %v3128_v50 }
 0x540   : > { %v3134_v3 = vmul.f32 %v7099_v28, %v2988_v42  ;;  %v2848_v25 = vpop.f32.mrf.mxu0  ;;  %v2897_v16 = vpop.f32.mrf.mxu1  ;;  %v3264_v20 = vadd.f32 %v3263_v11, %v3129_v14  ;;  %v3135_v44 = vmul.f32 %v7105_v5, %v2989_v63 }
 0x541   : > { %v2998_v26 = vmax.f32 %v2848_v25, 0.0  ;;  %v2999_v24 = vmax.f32 %v2897_v16, 0.0 }
 0x542   : > { %v3270_v59 = vadd.f32 %v6972_v57, %v3134_v3  ;;  %3265 = vadd.xlane.f32.xlu2 %v3264_v20  ;;  %v3285_v57 = vadd.f32 %v3147_v6, %v3146_v8 }
 0x543   : > { %v3144_v23 = vmul.f32 %v7109_v53, %v2998_v26  ;;  %v3145_v54 = vmul.f32 %v7114_v27, %v2999_v24 }
 0x544   : > { %v3271_v45 = vadd.f32 %v3270_v59, %v3135_v44  ;;  %v3286_v17 = vadd.f32 %v3285_v57, %v3148_v30 }
 0x545   : > { %v2750_v7 = vpop.f32.mrf.mxu2  ;;  %v2799_v32 = vpop.f32.mrf.mxu3 }
 0x546   : > { %v2996_v19 = vmax.f32 %v2750_v7, 0.0  ;;  %v2997_v15 = vmax.f32 %v2799_v32, 0.0  ;;  %v3272_v38 = vadd.f32 %v3271_v45, %v3136_v35 }
 0x548   : > { %v3142_v22 = vmul.f32 %v7099_v28, %v2996_v19  ;;  %v2850_v10 = vpop.f32.mrf.mxu0  ;;  %v2899_v21 = vpop.f32.mrf.mxu1  ;;  %v3273_v39 = vadd.f32 %v3272_v38, %v3137_v37  ;;  %v3143_v2 = vmul.f32 %v7105_v5, %v2997_v15 }
 0x549   : > { %v3006_v49 = vmax.f32 %v2850_v10, 0.0  ;;  %v3007_v34 = vmax.f32 %v2899_v21, 0.0 }
 0x54a   : > { %v3279_v33 = vadd.f32 %v6984_v41, %v3142_v22  ;;  %3274 = vadd.xlane.f32.xlu0 %v3273_v39  ;;  %v3287_v41 = vadd.f32 %v3286_v17, %v3149_v48 }
 0x54b   : > { %v3152_v36 = vmul.f32 %v7109_v53, %v3006_v49  ;;  %v3153_v11 = vmul.f32 %v7114_v27, %v3007_v34 }
 0x54c   : > { %v3280_v12 = vadd.f32 %v3279_v33, %v3143_v2 }
 0x54d   : > { %v2752_v40 = vpop.f32.mrf.mxu2  ;;  %v2801_v18 = vpop.f32.mrf.mxu3 }
 0x54e   : > { %v3004_v13 = vmax.f32 %v2752_v40, 0.0  ;;  %v3005_v47 = vmax.f32 %v2801_v18, 0.0  ;;  %v3281_v52 = vadd.f32 %v3280_v12, %v3144_v23 }
 0x550   : > { %v3150_v0 = vmul.f32 %v7099_v28, %v3004_v13  ;;  %v2853_v1 = vpop.f32.mrf.mxu0  ;;  %v2902_v51 = vpop.f32.mrf.mxu1  ;;  %v3282_v50 = vadd.f32 %v3281_v52, %v3145_v54  ;;  %v3151_v43 = vmul.f32 %v7105_v5, %v3005_v47 }
 0x551   : > { %v3014_v3 = vmax.f32 %v2853_v1, 0.0  ;;  %v3015_v46 = vmax.f32 %v2902_v51, 0.0 }
 0x552   : > { %v3288_v29 = vadd.f32 %v3287_v41, %v3150_v0  ;;  %3283 = vadd.xlane.f32.xlu1 %v3282_v50 }
 0x553   : > { %v3160_v6 = vmul.f32 %v7109_v53, %v3014_v3  ;;  %v3161_v7 = vmul.f32 %v7114_v27, %v3015_v46 }
 0x554   : > { %v3289_v14 = vadd.f32 %v3288_v29, %v3151_v43 }
 0x555   : > { %v2755_v42 = vpop.f32.mrf.mxu2  ;;  %v2804_v63 = vpop.f32.mrf.mxu3 }
 0x556   : > { %v3012_v61 = vmax.f32 %v2755_v42, 0.0  ;;  %v3013_v60 = vmax.f32 %v2804_v63, 0.0  ;;  %v3290_v9 = vadd.f32 %v3289_v14, %v3152_v36  ;;  %v4470_v63 = vld [vmem:[#allocation2] ss:$0 sm:$0xff] }
 0x558   : > { %v3158_v25 = vmul.f32 %v7099_v28, %v3012_v61  ;;  %v2855_v16 = vpop.f32.mrf.mxu0  ;;  %v3291_v20 = vadd.f32 %v3290_v9, %v3153_v11  ;;  %v3159_v44 = vmul.f32 %v7105_v5, %v3013_v60  ;;  %v2904_v8 = vpop.f32.mrf.mxu1 }
 0x559   : > { %v3022_v15 = vmax.f32 %v2855_v16, 0.0  ;;  %v3023_v26 = vmax.f32 %v2904_v8, 0.0 }
 0x55a   : > { %v3297_v59 = vadd.f32 %v7064_v55, %v3158_v25  ;;  %3292 = vadd.xlane.f32.xlu2 %v3291_v20 }
 0x55b   : > { %v3168_v21 = vmul.f32 %v7109_v53, %v3022_v15  ;;  %v3169_v33 = vmul.f32 %v7114_v27, %v3023_v26 }
 0x55c   : > { %v3298_v35 = vadd.f32 %v3297_v59, %v3159_v44 }
 0x55d   : > { %v2757_v45 = vpop.f32.mrf.mxu2  ;;  %v2806_v56 = vpop.f32.mrf.mxu3 }
 0x55e   : > { %v3020_v32 = vmax.f32 %v2757_v45, 0.0  ;;  %v3021_v37 = vmax.f32 %v2806_v56, 0.0  ;;  %v3299_v19 = vadd.f32 %v3298_v35, %v3160_v6 }
 0x560   : > { %v3166_v38 = vmul.f32 %v7099_v28, %v3020_v32  ;;  %v3300_v57 = vadd.f32 %v3299_v19, %v3161_v7  ;;  %v3167_v22 = vmul.f32 %v7105_v5, %v3021_v37  ;;  %v2858_v10 = vpop.f32.mrf.mxu0  ;;  %v2907_v62 = vpop.f32.mrf.mxu1 }
 0x561   : > { %v3030_v12 = vmax.f32 %v2858_v10, 0.0 }
 0x562   : > { %v3306_v55 = vadd.f32 %v7082_v4, %v3166_v38  ;;  %3301 = vadd.xlane.f32.xlu0 %v3300_v57  ;;  %v3031_v4 = vmax.f32 %v2907_v62, 0.0 }
 0x563   : > { %v3176_v13 = vmul.f32 %v7109_v53, %v3030_v12 }
 0x564   : > { %v3307_v39 = vadd.f32 %v3306_v55, %v3167_v22  ;;  %v3177_v41 = vmul.f32 %v7114_v27, %v3031_v4 }
 0x565   : > { %v2760_v30 = vpop.f32.mrf.mxu2  ;;  %v2809_v24 = vpop.f32.mrf.mxu3 }
 0x566   : > { %v3028_v2 = vmax.f32 %v2760_v30, 0.0  ;;  %v3029_v17 = vmax.f32 %v2809_v24, 0.0  ;;  %v3308_v23 = vadd.f32 %v3307_v39, %v3168_v21 }
 0x568   : > { %v3174_v48 = vmul.f32 %v7099_v28, %v3028_v2  ;;  %v3309_v40 = vadd.f32 %v3308_v23, %v3169_v33  ;;  %v3175_v54 = vmul.f32 %v7105_v5, %v3029_v17  ;;  %v2860_v52 = vpop.f32.mrf.mxu0  ;;  %v2909_v34 = vpop.f32.mrf.mxu1 }
 0x569   : > { %v3038_v29 = vmax.f32 %v2860_v52, 0.0  ;;  %v3039_v36 = vmax.f32 %v2909_v34, 0.0 }
 0x56a   : > { %v3315_v18 = vadd.f32 %v7088_v58, %v3174_v48  ;;  %3310 = vadd.xlane.f32.xlu1 %v3309_v40 }
 0x56b   : > { %v3184_v11 = vmul.f32 %v7109_v53, %v3038_v29 }
 0x56c   : > { %v3316_v47 = vadd.f32 %v3315_v18, %v3175_v54 }
 0x56d   : > { %v2762_v49 = vpop.f32.mrf.mxu2  ;;  %v2811_v0 = vpop.f32.mrf.mxu3 }
 0x56e   : > { %v3036_v1 = vmax.f32 %v2762_v49, 0.0  ;;  %v3037_v51 = vmax.f32 %v2811_v0, 0.0  ;;  %v3317_v50 = vadd.f32 %v3316_v47, %v3176_v13 }
 0x570   : > { %v3182_v43 = vmul.f32 %v7099_v28, %v3036_v1  ;;  %v3318_v58 = vadd.f32 %v3317_v50, %v3177_v41  ;;  %v3183_v42 = vmul.f32 %v7105_v5, %v3037_v51 }
 0x572   : > { %v3324_v14 = vadd.f32 %v7107_v31, %v3182_v43  ;;  %3319 = vadd.xlane.f32.xlu2 %v3318_v58  ;;  %v3185_v31 = vmul.f32 %v7114_v27, %v3039_v36 }
 0x574   : > { %v3325_v61 = vadd.f32 %v3324_v14, %v3183_v42 }
 0x575   : > { %v3194_v28 = vpop.xlane.xlu1 %3193 }
 0x576   : > { %v3326_v5 = vadd.f32 %v3325_v61, %v3184_v11  ;;  %v3334_v60 = vadd.f32 %v4470_v63, %v3194_v28 }
 0x578   : > { %3351 = vst.msk [vmem:[%s7227_s6] sm:$0xff] %vm3350_vm2, %v3334_v60  ;;  %v3327_v53 = vadd.f32 %v3326_v5, %v3185_v31 }
 0x57a   : > { %3328 = vadd.xlane.f32.xlu0 %v3327_v53 }
 0x57d   : > { %v3203_v9 = vpop.xlane.xlu2 %3202 }
 0x57e   : > { %v3335_v3 = vadd.f32 %v4470_v63, %v3203_v9 }
 0x580   : > { %3352 = vst.msk [vmem:[%s7227_s6 + $0x8] sm:$0xff] %vm3350_vm2, %v3335_v3 }
 0x585   : > { %v3212_v25 = vpop.xlane.xlu0 %3211 }
 0x586   : > { %v3336_v16 = vadd.f32 %v4470_v63, %v3212_v25 }
 0x588   : > { %3353 = vst.msk [vmem:[%s7227_s6 + $0x10] sm:$0xff] %vm3350_vm2, %v3336_v16 }
 0x58d   : > { %v3221_v20 = vpop.xlane.xlu2 %3220 }
 0x58e   : > { %v3337_v27 = vadd.f32 %v4470_v63, %v3221_v20 }
 0x590   : > { %3354 = vst.msk [vmem:[%s7227_s6 + $0x18] sm:$0xff] %vm3350_vm2, %v3337_v27 }
 0x595   : > { %v3230_v46 = vpop.xlane.xlu1 %3229 }
 0x596   : > { %v3338_v59 = vadd.f32 %v4470_v63, %v3230_v46 }
 0x598   : > { %3355 = vst.msk [vmem:[%s7227_s6 + $0x20] sm:$0xff] %vm3350_vm2, %v3338_v59 }
 0x59d   : > { %v3239_v44 = vpop.xlane.xlu2 %3238 }
 0x59e   : > { %v3339_v8 = vadd.f32 %v4470_v63, %v3239_v44 }
 0x5a0   : > { %3356 = vst.msk [vmem:[%s7227_s6 + $0x28] sm:$0xff] %vm3350_vm2, %v3339_v8 }
 0x5a5   : > { %v3248_v6 = vpop.xlane.xlu0 %3247 }
 0x5a6   : > { %v3340_v35 = vadd.f32 %v4470_v63, %v3248_v6 }
 0x5a8   : > { %3357 = vst.msk [vmem:[%s7227_s6 + $0x30] sm:$0xff] %vm3350_vm2, %v3340_v35 }
 0x5ad   : > { %v3257_v45 = vpop.xlane.xlu1 %3256 }
 0x5ae   : > { %v3341_v56 = vadd.f32 %v4470_v63, %v3257_v45 }
 0x5b0   : > { %3358 = vst.msk [vmem:[%s7227_s6 + $0x38] sm:$0xff] %vm3350_vm2, %v3341_v56 }
 0x5b5   : > { %v3266_v7 = vpop.xlane.xlu2 %3265 }
 0x5b6   : > { %v3342_v32 = vadd.f32 %v4470_v63, %v3266_v7 }
 0x5b8   : > { %3359 = vst.msk [vmem:[%s7227_s6 + $0x40] sm:$0xff] %vm3350_vm2, %v3342_v32 }
 0x5bd   : > { %v3275_v37 = vpop.xlane.xlu0 %3274 }
 0x5be   : > { %v3343_v19 = vadd.f32 %v4470_v63, %v3275_v37 }
 0x5c0   : > { %3360 = vst.msk [vmem:[%s7227_s6 + $0x48] sm:$0xff] %vm3350_vm2, %v3343_v19 }
 0x5c5   : > { %v3284_v15 = vpop.xlane.xlu1 %3283 }
 0x5c6   : > { %v3344_v38 = vadd.f32 %v4470_v63, %v3284_v15 }
 0x5c8   : > { %3361 = vst.msk [vmem:[%s7227_s6 + $0x50] sm:$0xff] %vm3350_vm2, %v3344_v38 }
 0x5cd   : > { %v3293_v57 = vpop.xlane.xlu2 %3292 }
 0x5ce   : > { %v3345_v26 = vadd.f32 %v4470_v63, %v3293_v57 }
 0x5d0   : > { %3362 = vst.msk [vmem:[%s7227_s6 + $0x58] sm:$0xff] %vm3350_vm2, %v3345_v26 }
 0x5d5   : > { %v3302_v55 = vpop.xlane.xlu0 %3301 }
 0x5d6   : > { %v3346_v22 = vadd.f32 %v4470_v63, %v3302_v55 }
 0x5d8   : > { %3363 = vst.msk [vmem:[%s7227_s6 + $0x60] sm:$0xff] %vm3350_vm2, %v3346_v22 }
 0x5dd   : > { %v3311_v10 = vpop.xlane.xlu1 %3310 }
 0x5de   : > { %v3347_v21 = vadd.f32 %v4470_v63, %v3311_v10 }
 0x5e0   : > { %3364 = vst.msk [vmem:[%s7227_s6 + $0x68] sm:$0xff] %vm3350_vm2, %v3347_v21 }
 0x5e5   : > { %v3320_v39 = vpop.xlane.xlu2 %3319 }
 0x5e6   : > { %v3348_v62 = vadd.f32 %v4470_v63, %v3320_v39 }
 0x5e8   : > { %3365 = vst.msk [vmem:[%s7227_s6 + $0x70] sm:$0xff] %vm3350_vm2, %v3348_v62 }
 0x5ed   : > { %v3329_v30 = vpop.xlane.xlu0 %3328 }
 0x5ee   : > { %v3349_v24 = vadd.f32 %v4470_v63, %v3329_v30 }
 0x5f0   : > { %3366 = vst.msk [vmem:[%s7227_s6 + $0x78] sm:$0xff] %vm3350_vm2, %v3349_v24 }
 0x5f1 PF: > { %s18_s20 = sadd.s32 1, %s4516_s20  }
 0x5f2   : > { %p15_p7 = scmp.ge.s32.totalorder %s18_s20, 4  }
 0x5f4   :  { %17 = sbr.rel (!%p15_p7) target bundleno = 4 (0x4), region = 75 }
 0x5f9   :  { %3389 = vsyncpa [#allocation4], 1 }
 0x5fa   :  { %3391 = vsyncpa [#allocation4 + $0x1], 1 }

</bundles_post_ra>
